<compile_context>
chip_gen: v7x
topology: tpu7x:2x2x1
jax: 0.10.0
libtpu: 0.0.40
codegen_flags: <defaults>
</compile_context>

<pallas_src>
import jax
import jax.numpy as jnp
from jax.experimental import pallas as pl
from jax.experimental.pallas import tpu as pltpu


# ----------------------------- Pallas kernels ------------------------------

def _conv_lrelu_kernel(w_ref, p_ref, o_ref):
    # [C_out, K] @ [K, TM] -> [C_out, TM]  (M on lanes -> dense stores)
    y = jnp.dot(w_ref[...], p_ref[...], preferred_element_type=jnp.float32)
    o_ref[...] = jnp.where(y >= 0.0, y, 0.2 * y).astype(o_ref.dtype)


def _conv_stats_kernel(w_ref, p_ref, y_ref, s1_ref, s2_ref):
    # Phase 1 of Conv+BN: matmul + single-pass per-channel moments
    # (sum and sum-of-squares) accumulated across the whole M axis.
    @pl.when(pl.program_id(0) == 0)
    def _():
        s1_ref[...] = jnp.zeros_like(s1_ref)
        s2_ref[...] = jnp.zeros_like(s2_ref)

    y = jnp.dot(w_ref[...], p_ref[...], preferred_element_type=jnp.float32)
    y_ref[...] = y
    s1_ref[...] += jnp.sum(y, axis=1, keepdims=True)
    s2_ref[...] += jnp.sum(y * y, axis=1, keepdims=True)


def _bn_lrelu_kernel(y_ref, scale_ref, shift_ref, o_ref):
    # Phase 2 of Conv+BN: y*scale + shift (folded batch-stat affine) + LeakyReLU
    y = y_ref[...] * scale_ref[...] + shift_ref[...]
    o_ref[...] = jnp.where(y >= 0.0, y, 0.2 * y).astype(o_ref.dtype)


def _conv_sigmoid_kernel(w_ref, p_ref, o_ref):
    y = jnp.dot(w_ref[...], p_ref[...], preferred_element_type=jnp.float32)
    # numerically stable sigmoid (exp of non-positive argument only)
    e = jnp.exp(-jnp.abs(y))
    o_ref[...] = jnp.where(y >= 0.0, 1.0 / (1.0 + e), e / (1.0 + e))


# ------------------------------- glue (JAX) --------------------------------

def _im2col_cnhw(x, kh, kw, stride, pad):
    """x: [C, N, H, W] -> patches [K, M] with K = (c, i, j) (matches PyTorch
    weight.reshape(C_out, C_in*kh*kw)) and M = (n, ho, wo).  No transposes."""
    c, n, h, w = x.shape
    if pad:
        x = jnp.pad(x, ((0, 0), (0, 0), (pad, pad), (pad, pad)))
    hp, wp = h + 2 * pad, w + 2 * pad
    ho = (hp - kh) // stride + 1
    wo = (wp - kw) // stride + 1
    cols = []
    for i in range(kh):
        for j in range(kw):
            sl = jax.lax.slice(
                x,
                (0, 0, i, j),
                (c, n, i + stride * (ho - 1) + 1, j + stride * (wo - 1) + 1),
                (1, 1, stride, stride),
            )  # [C, N, Ho, Wo]
            cols.append(sl)
    cols = jnp.stack(cols, axis=1)                       # [C, kh*kw, N, Ho, Wo]
    patches = cols.reshape(c * kh * kw, n * ho * wo)     # [K, M]
    return patches, ho, wo


def _choose_tile(m):
    """Lane-axis (M) tile: <=1024 lanes, prefer 1024/512/256/128 divisors."""
    if m <= 1024:
        return m
    for t in (1024, 512, 256, 128):
        if m % t == 0:
            return t
    # TODO(synk): pad M to a 128 multiple for arbitrary sizes instead of
    # falling back to a single whole-M block.
    return m


def _conv_layer(x, weight, stride, pad, mode, gamma=None, beta=None):
    """One conv layer on CNHW activations; matmul + epilogue in Pallas."""
    c_out, c_in, kh, kw = weight.shape
    n = x.shape[1]
    # bf16 MXU operands (epilogue math stays f32 inside the kernels).
    patches, ho, wo = _im2col_cnhw(x.astype(jnp.bfloat16), kh, kw, stride, pad)
    k, m = patches.shape
    wmat = weight.reshape(c_out, k).astype(jnp.bfloat16)      # [C_out, K]

    tm = _choose_tile(m)
    grid = (m // tm,)
    w_spec = pl.BlockSpec((c_out, k), lambda i: (0, 0))       # resident weights
    p_spec = pl.BlockSpec((k, tm), lambda i: (0, i))
    o_spec = pl.BlockSpec((c_out, tm), lambda i: (0, i))
    parallel = pltpu.CompilerParams(dimension_semantics=("parallel",))

    if mode == "lrelu":
        # Intermediate activation -> bf16 (feeds the next layer's MXU).
        y = pl.pallas_call(
            _conv_lrelu_kernel,
            out_shape=jax.ShapeDtypeStruct((c_out, m), jnp.bfloat16),
            grid=grid,
            in_specs=[w_spec, p_spec],
            out_specs=o_spec,
            compiler_params=parallel,
        )(wmat, patches)

    elif mode == "bn_lrelu":
        stat_spec = pl.BlockSpec((c_out, 1), lambda i: (0, 0))
        # Pass 1: conv + per-channel sum / sum-of-squares over the whole batch.
        # Conv result stays f32 so the BN normalization math is exact.
        y_conv, s1, s2 = pl.pallas_call(
            _conv_stats_kernel,
            out_shape=(jax.ShapeDtypeStruct((c_out, m), jnp.float32),
                       jax.ShapeDtypeStruct((c_out, 1), jnp.float32),
                       jax.ShapeDtypeStruct((c_out, 1), jnp.float32)),
            grid=grid,
            in_specs=[w_spec, p_spec],
            out_specs=(o_spec, stat_spec, stat_spec),
            compiler_params=pltpu.CompilerParams(
                dimension_semantics=("arbitrary",)),
        )(wmat, patches)
        # Tiny per-channel math in glue: fold BN into a single scale/shift.
        mean = s1 / m
        var = jnp.maximum(s2 / m - mean * mean, 0.0)          # biased variance
        scale = gamma.reshape(c_out, 1) * jax.lax.rsqrt(var + 1e-5)
        shift = beta.reshape(c_out, 1) - mean * scale
        # Pass 2: normalize + affine + LeakyReLU, tiled over M in parallel.
        # Output -> bf16 (feeds the next layer's MXU).
        y = pl.pallas_call(
            _bn_lrelu_kernel,
            out_shape=jax.ShapeDtypeStruct((c_out, m), jnp.bfloat16),
            grid=grid,
            in_specs=[o_spec, stat_spec, stat_spec],
            out_specs=o_spec,
            compiler_params=parallel,
        )(y_conv, scale.astype(jnp.float32), shift.astype(jnp.float32))

    elif mode == "sigmoid":
        # Final layer: keep f32 (network output).
        y = pl.pallas_call(
            _conv_sigmoid_kernel,
            out_shape=jax.ShapeDtypeStruct((c_out, m), jnp.float32),
            grid=grid,
            in_specs=[w_spec, p_spec],
            out_specs=o_spec,
            compiler_params=parallel,
        )(wmat, patches)
    else:
        raise ValueError(mode)

    # [C_out, M] -> CNHW for the next layer (pure reshape, no transpose).
    return y.reshape(c_out, n, ho, wo)


def init_params(key):
    nc, ndf = 3, 12
    ks = jax.random.split(key, 5)

    def w(k, shape):
        return 0.02 * jax.random.normal(k, shape, jnp.float32)

    return {
        "w1": w(ks[0], (ndf, nc, 4, 4)),
        "w2": w(ks[1], (ndf * 2, ndf, 4, 4)),
        "g2": jnp.ones((ndf * 2,), jnp.float32), "b2": jnp.zeros((ndf * 2,), jnp.float32),
        "w3": w(ks[2], (ndf * 4, ndf * 2, 4, 4)),
        "g3": jnp.ones((ndf * 4,), jnp.float32), "b3": jnp.zeros((ndf * 4,), jnp.float32),
        "w4": w(ks[3], (ndf * 8, ndf * 4, 4, 4)),
        "g4": jnp.ones((ndf * 8,), jnp.float32), "b4": jnp.zeros((ndf * 8,), jnp.float32),
        "w5": w(ks[4], (1, ndf * 8, 3, 4)),
    }


def discriminator_forward(params, x):
    # x: [N, 3, H, W] NCHW (H divisible by 16, H//16 >= 3, W//16 >= 4)
    h = jnp.transpose(x, (1, 0, 2, 3))                       # -> CNHW, once
    h = _conv_layer(h, params["w1"], 2, 1, "lrelu")
    h = _conv_layer(h, params["w2"], 2, 1, "bn_lrelu", params["g2"], params["b2"])
    h = _conv_layer(h, params["w3"], 2, 1, "bn_lrelu", params["g3"], params["b3"])
    h = _conv_layer(h, params["w4"], 2, 1, "bn_lrelu", params["g4"], params["b4"])
    h = _conv_layer(h, params["w5"], 1, 0, "sigmoid")        # [1, N, ho, wo]
    return jnp.transpose(h, (1, 0, 2, 3))                    # -> [N, 1, ho, wo]


if __name__ == "__main__":
    key = jax.random.PRNGKey(0)
    k_in, k_par = jax.random.split(key)
    # Smallest spatial size compatible with the final (3,4) valid conv: 48x64.
    x = jax.random.normal(k_in, (2, 3, 48, 64), jnp.float32)
    params = init_params(k_par)

    fwd = jax.jit(discriminator_forward)
    out = jax.block_until_ready(fwd(params, x))

    assert out.shape == (2, 1, 1, 1), out.shape
    assert bool(jnp.all(jnp.isfinite(out)))
    assert bool(jnp.all((out >= 0.0) & (out <= 1.0)))
    print("KERNEL_OK")
</pallas_src>

<mosaic_0001>
module attributes {stable_mosaic.version = 11 : i64} {
  func.func @_conv_lrelu_kernel(%arg0: i32, %arg1: memref<12x48xbf16, #tpu.memory_space<vmem>>, %arg2: memref<48x512xbf16, #tpu.memory_space<vmem>>, %arg3: memref<12x512xbf16, #tpu.memory_space<vmem>>) attributes {dimension_semantics = [#tpu.dimension_semantics<parallel>], iteration_bounds = array<i64: 3>, scalar_prefetch = 0 : i64, scratch_operands = 0 : i64, tpu.core_type = #tpu.core_type<tc>, window_params = [{pipeline_mode = #tpu.pipeline_mode<synchronous>, transform_indices = @transform_0, window_bounds = array<i64: 12, 48>}, {transform_indices = @transform_1, window_bounds = array<i64: 48, 512>}, {transform_indices = @transform_2, window_bounds = array<i64: 12, 512>}]} {
    %c0 = arith.constant 0 : index
    %c0_0 = arith.constant 0 : index
    %0 = vector.load %arg1[%c0, %c0_0] : memref<12x48xbf16, #tpu.memory_space<vmem>>, vector<12x48xbf16>
    %c0_1 = arith.constant 0 : index
    %c0_2 = arith.constant 0 : index
    %1 = vector.load %arg2[%c0_1, %c0_2] : memref<48x512xbf16, #tpu.memory_space<vmem>>, vector<48x512xbf16>
    %cst = arith.constant dense<0.000000e+00> : vector<12x512xf32>
    %2 = tpu.matmul %0, %1, %cst {dimension_numbers = #tpu.dot_dimension_numbers<[1], [0], [0], [1], [0, 0, 1, 1], [], []>} : vector<12x48xbf16>, vector<48x512xbf16>, vector<12x512xf32> -> vector<12x512xf32>
    %cst_3 = arith.constant 0.000000e+00 : f32
    %3 = vector.broadcast %cst_3 : f32 to vector<12x512xf32>
    %4 = arith.cmpf oge, %2, %3 : vector<12x512xf32>
    %cst_4 = arith.constant 2.000000e-01 : f32
    %5 = vector.broadcast %cst_4 : f32 to vector<12x512xf32>
    %6 = arith.mulf %5, %2 : vector<12x512xf32>
    %7 = arith.select %4, %2, %6 : vector<12x512xi1>, vector<12x512xf32>
    %8 = arith.truncf %7 : vector<12x512xf32> to vector<12x512xbf16>
    %c0_5 = arith.constant 0 : index
    %c0_6 = arith.constant 0 : index
    %9 = vector.load %arg3[%c0_5, %c0_6] : memref<12x512xbf16, #tpu.memory_space<vmem>>, vector<12x512xbf16>
    tpu.vector_store %arg3[%c0_5, %c0_6], %8 {strides = array<i32>} : memref<12x512xbf16, #tpu.memory_space<vmem>>, vector<12x512xbf16>,
    return
  }
  func.func @transform_0(%arg0: i32) -> (i32, i32) {
    %c0_i32 = arith.constant 0 : i32
    %c0_i32_0 = arith.constant 0 : i32
    %c0_i32_1 = arith.constant 0 : i32
    return %c0_i32, %c0_i32_0 : i32, i32
  }
  func.func @transform_1(%arg0: i32) -> (i32, i32) {
    %c0_i32 = arith.constant 0 : i32
    %c0_i32_0 = arith.constant 0 : i32
    return %c0_i32, %arg0 : i32, i32
  }
  func.func @transform_2(%arg0: i32) -> (i32, i32) {
    %c0_i32 = arith.constant 0 : i32
    %c0_i32_0 = arith.constant 0 : i32
    return %c0_i32, %arg0 : i32, i32
  }
}

module attributes {stable_mosaic.version = 11 : i64} {
  func.func @_conv_stats_kernel(%arg0: i32, %arg1: memref<24x192xbf16, #tpu.memory_space<vmem>>, %arg2: memref<192x384xbf16, #tpu.memory_space<vmem>>, %arg3: memref<24x384xf32, #tpu.memory_space<vmem>>, %arg4: memref<24x1xf32, #tpu.memory_space<vmem>>, %arg5: memref<24x1xf32, #tpu.memory_space<vmem>>) attributes {dimension_semantics = [#tpu.dimension_semantics<arbitrary>], iteration_bounds = array<i64: 1>, scalar_prefetch = 0 : i64, scratch_operands = 0 : i64, tpu.core_type = #tpu.core_type<tc>, window_params = [{pipeline_mode = #tpu.pipeline_mode<synchronous>, transform_indices = @transform_0, window_bounds = array<i64: 24, 192>}, {transform_indices = @transform_1, window_bounds = array<i64: 192, 384>}, {transform_indices = @transform_2, window_bounds = array<i64: 24, 384>}, {pipeline_mode = #tpu.pipeline_mode<synchronous>, transform_indices = @transform_3, window_bounds = array<i64: 24, 1>}, {pipeline_mode = #tpu.pipeline_mode<synchronous>, transform_indices = @transform_4, window_bounds = array<i64: 24, 1>}]} {
    %c0_i32 = arith.constant 0 : i32
    %0 = arith.cmpi eq, %arg0, %c0_i32 : i32
    %1 = arith.extui %0 : i1 to i32
    %c0_i32_0 = arith.constant 0 : i32
    %2 = arith.cmpi ne, %1, %c0_i32_0 : i32
    scf.if %2 {
      %cst_16 = arith.constant 0.000000e+00 : f32
      %18 = vector.broadcast %cst_16 : f32 to vector<24x1xf32>
      %c0_17 = arith.constant 0 : index
      %c0_18 = arith.constant 0 : index
      %19 = vector.load %arg4[%c0_17, %c0_18] : memref<24x1xf32, #tpu.memory_space<vmem>>, vector<24x1xf32>
      tpu.vector_store %arg4[%c0_17, %c0_18], %18 {strides = array<i32>} : memref<24x1xf32, #tpu.memory_space<vmem>>, vector<24x1xf32>,
      %cst_19 = arith.constant 0.000000e+00 : f32
      %20 = vector.broadcast %cst_19 : f32 to vector<24x1xf32>
      %c0_20 = arith.constant 0 : index
      %c0_21 = arith.constant 0 : index
      %21 = vector.load %arg5[%c0_20, %c0_21] : memref<24x1xf32, #tpu.memory_space<vmem>>, vector<24x1xf32>
      tpu.vector_store %arg5[%c0_20, %c0_21], %20 {strides = array<i32>} : memref<24x1xf32, #tpu.memory_space<vmem>>, vector<24x1xf32>,
    } else {
    }
    %c0 = arith.constant 0 : index
    %c0_1 = arith.constant 0 : index
    %3 = vector.load %arg1[%c0, %c0_1] : memref<24x192xbf16, #tpu.memory_space<vmem>>, vector<24x192xbf16>
    %c0_2 = arith.constant 0 : index
    %c0_3 = arith.constant 0 : index
    %4 = vector.load %arg2[%c0_2, %c0_3] : memref<192x384xbf16, #tpu.memory_space<vmem>>, vector<192x384xbf16>
    %cst = arith.constant dense<0.000000e+00> : vector<24x384xf32>
    %5 = tpu.matmul %3, %4, %cst {dimension_numbers = #tpu.dot_dimension_numbers<[1], [0], [0], [1], [0, 0, 1, 1], [], []>} : vector<24x192xbf16>, vector<192x384xbf16>, vector<24x384xf32> -> vector<24x384xf32>
    %c0_4 = arith.constant 0 : index
    %c0_5 = arith.constant 0 : index
    %6 = vector.load %arg3[%c0_4, %c0_5] : memref<24x384xf32, #tpu.memory_space<vmem>>, vector<24x384xf32>
    tpu.vector_store %arg3[%c0_4, %c0_5], %5 {strides = array<i32>} : memref<24x384xf32, #tpu.memory_space<vmem>>, vector<24x384xf32>,
    %c0_6 = arith.constant 0 : index
    %c0_7 = arith.constant 0 : index
    %7 = vector.load %arg4[%c0_6, %c0_7] : memref<24x1xf32, #tpu.memory_space<vmem>>, vector<24x1xf32>
    %cst_8 = arith.constant dense<0.000000e+00> : vector<24xf32>
    %8 = vector.multi_reduction <add>, %5, %cst_8 [1] : vector<24x384xf32> to vector<24xf32>
    %9 = vector.shape_cast %8 : vector<24xf32> to vector<24x1xf32>
    %10 = arith.addf %7, %9 : vector<24x1xf32>
    %c0_9 = arith.constant 0 : index
    %c0_10 = arith.constant 0 : index
    %11 = vector.load %arg4[%c0_9, %c0_10] : memref<24x1xf32, #tpu.memory_space<vmem>>, vector<24x1xf32>
    tpu.vector_store %arg4[%c0_9, %c0_10], %10 {strides = array<i32>} : memref<24x1xf32, #tpu.memory_space<vmem>>, vector<24x1xf32>,
    %c0_11 = arith.constant 0 : index
    %c0_12 = arith.constant 0 : index
    %12 = vector.load %arg5[%c0_11, %c0_12] : memref<24x1xf32, #tpu.memory_space<vmem>>, vector<24x1xf32>
    %13 = arith.mulf %5, %5 : vector<24x384xf32>
    %cst_13 = arith.constant dense<0.000000e+00> : vector<24xf32>
    %14 = vector.multi_reduction <add>, %13, %cst_13 [1] : vector<24x384xf32> to vector<24xf32>
    %15 = vector.shape_cast %14 : vector<24xf32> to vector<24x1xf32>
    %16 = arith.addf %12, %15 : vector<24x1xf32>
    %c0_14 = arith.constant 0 : index
    %c0_15 = arith.constant 0 : index
    %17 = vector.load %arg5[%c0_14, %c0_15] : memref<24x1xf32, #tpu.memory_space<vmem>>, vector<24x1xf32>
    tpu.vector_store %arg5[%c0_14, %c0_15], %16 {strides = array<i32>} : memref<24x1xf32, #tpu.memory_space<vmem>>, vector<24x1xf32>,
    return
  }
  func.func @transform_0(%arg0: i32) -> (i32, i32) {
    %c0_i32 = arith.constant 0 : i32
    %c0_i32_0 = arith.constant 0 : i32
    %c0_i32_1 = arith.constant 0 : i32
    return %c0_i32, %c0_i32_0 : i32, i32
  }
  func.func @transform_1(%arg0: i32) -> (i32, i32) {
    %c0_i32 = arith.constant 0 : i32
    %c0_i32_0 = arith.constant 0 : i32
    return %c0_i32, %arg0 : i32, i32
  }
  func.func @transform_2(%arg0: i32) -> (i32, i32) {
    %c0_i32 = arith.constant 0 : i32
    %c0_i32_0 = arith.constant 0 : i32
    return %c0_i32, %arg0 : i32, i32
  }
  func.func @transform_3(%arg0: i32) -> (i32, i32) {
    %c0_i32 = arith.constant 0 : i32
    %c0_i32_0 = arith.constant 0 : i32
    %c0_i32_1 = arith.constant 0 : i32
    return %c0_i32, %c0_i32_0 : i32, i32
  }
  func.func @transform_4(%arg0: i32) -> (i32, i32) {
    %c0_i32 = arith.constant 0 : i32
    %c0_i32_0 = arith.constant 0 : i32
    %c0_i32_1 = arith.constant 0 : i32
    return %c0_i32, %c0_i32_0 : i32, i32
  }
}

module attributes {stable_mosaic.version = 11 : i64} {
  func.func @_bn_lrelu_kernel(%arg0: i32, %arg1: memref<24x384xf32, #tpu.memory_space<vmem>>, %arg2: memref<24x1xf32, #tpu.memory_space<vmem>>, %arg3: memref<24x1xf32, #tpu.memory_space<vmem>>, %arg4: memref<24x384xbf16, #tpu.memory_space<vmem>>) attributes {dimension_semantics = [#tpu.dimension_semantics<parallel>], iteration_bounds = array<i64: 1>, scalar_prefetch = 0 : i64, scratch_operands = 0 : i64, tpu.core_type = #tpu.core_type<tc>, window_params = [{transform_indices = @transform_0, window_bounds = array<i64: 24, 384>}, {pipeline_mode = #tpu.pipeline_mode<synchronous>, transform_indices = @transform_1, window_bounds = array<i64: 24, 1>}, {pipeline_mode = #tpu.pipeline_mode<synchronous>, transform_indices = @transform_2, window_bounds = array<i64: 24, 1>}, {transform_indices = @transform_3, window_bounds = array<i64: 24, 384>}]} {
    %c0 = arith.constant 0 : index
    %c0_0 = arith.constant 0 : index
    %0 = vector.load %arg1[%c0, %c0_0] : memref<24x384xf32, #tpu.memory_space<vmem>>, vector<24x384xf32>
    %c0_1 = arith.constant 0 : index
    %c0_2 = arith.constant 0 : index
    %1 = vector.load %arg2[%c0_1, %c0_2] : memref<24x1xf32, #tpu.memory_space<vmem>>, vector<24x1xf32>
    %2 = vector.broadcast %1 : vector<24x1xf32> to vector<24x384xf32>
    %3 = arith.mulf %0, %2 : vector<24x384xf32>
    %c0_3 = arith.constant 0 : index
    %c0_4 = arith.constant 0 : index
    %4 = vector.load %arg3[%c0_3, %c0_4] : memref<24x1xf32, #tpu.memory_space<vmem>>, vector<24x1xf32>
    %5 = vector.broadcast %4 : vector<24x1xf32> to vector<24x384xf32>
    %6 = arith.addf %3, %5 : vector<24x384xf32>
    %cst = arith.constant 0.000000e+00 : f32
    %7 = vector.broadcast %cst : f32 to vector<24x384xf32>
    %8 = arith.cmpf oge, %6, %7 : vector<24x384xf32>
    %cst_5 = arith.constant 2.000000e-01 : f32
    %9 = vector.broadcast %cst_5 : f32 to vector<24x384xf32>
    %10 = arith.mulf %9, %6 : vector<24x384xf32>
    %11 = arith.select %8, %6, %10 : vector<24x384xi1>, vector<24x384xf32>
    %12 = arith.truncf %11 : vector<24x384xf32> to vector<24x384xbf16>
    %c0_6 = arith.constant 0 : index
    %c0_7 = arith.constant 0 : index
    %13 = vector.load %arg4[%c0_6, %c0_7] : memref<24x384xbf16, #tpu.memory_space<vmem>>, vector<24x384xbf16>
    tpu.vector_store %arg4[%c0_6, %c0_7], %12 {strides = array<i32>} : memref<24x384xbf16, #tpu.memory_space<vmem>>, vector<24x384xbf16>,
    return
  }
  func.func @transform_0(%arg0: i32) -> (i32, i32) {
    %c0_i32 = arith.constant 0 : i32
    %c0_i32_0 = arith.constant 0 : i32
    return %c0_i32, %arg0 : i32, i32
  }
  func.func @transform_1(%arg0: i32) -> (i32, i32) {
    %c0_i32 = arith.constant 0 : i32
    %c0_i32_0 = arith.constant 0 : i32
    %c0_i32_1 = arith.constant 0 : i32
    return %c0_i32, %c0_i32_0 : i32, i32
  }
  func.func @transform_2(%arg0: i32) -> (i32, i32) {
    %c0_i32 = arith.constant 0 : i32
    %c0_i32_0 = arith.constant 0 : i32
    %c0_i32_1 = arith.constant 0 : i32
    return %c0_i32, %c0_i32_0 : i32, i32
  }
  func.func @transform_3(%arg0: i32) -> (i32, i32) {
    %c0_i32 = arith.constant 0 : i32
    %c0_i32_0 = arith.constant 0 : i32
    return %c0_i32, %arg0 : i32, i32
  }
}

module attributes {stable_mosaic.version = 11 : i64} {
  func.func @_conv_stats_kernel(%arg0: i32, %arg1: memref<48x384xbf16, #tpu.memory_space<vmem>>, %arg2: memref<384x96xbf16, #tpu.memory_space<vmem>>, %arg3: memref<48x96xf32, #tpu.memory_space<vmem>>, %arg4: memref<48x1xf32, #tpu.memory_space<vmem>>, %arg5: memref<48x1xf32, #tpu.memory_space<vmem>>) attributes {dimension_semantics = [#tpu.dimension_semantics<arbitrary>], iteration_bounds = array<i64: 1>, scalar_prefetch = 0 : i64, scratch_operands = 0 : i64, tpu.core_type = #tpu.core_type<tc>, window_params = [{pipeline_mode = #tpu.pipeline_mode<synchronous>, transform_indices = @transform_0, window_bounds = array<i64: 48, 384>}, {transform_indices = @transform_1, window_bounds = array<i64: 384, 96>}, {transform_indices = @transform_2, window_bounds = array<i64: 48, 96>}, {pipeline_mode = #tpu.pipeline_mode<synchronous>, transform_indices = @transform_3, window_bounds = array<i64: 48, 1>}, {pipeline_mode = #tpu.pipeline_mode<synchronous>, transform_indices = @transform_4, window_bounds = array<i64: 48, 1>}]} {
    %c0_i32 = arith.constant 0 : i32
    %0 = arith.cmpi eq, %arg0, %c0_i32 : i32
    %1 = arith.extui %0 : i1 to i32
    %c0_i32_0 = arith.constant 0 : i32
    %2 = arith.cmpi ne, %1, %c0_i32_0 : i32
    scf.if %2 {
      %cst_16 = arith.constant 0.000000e+00 : f32
      %18 = vector.broadcast %cst_16 : f32 to vector<48x1xf32>
      %c0_17 = arith.constant 0 : index
      %c0_18 = arith.constant 0 : index
      %19 = vector.load %arg4[%c0_17, %c0_18] : memref<48x1xf32, #tpu.memory_space<vmem>>, vector<48x1xf32>
      tpu.vector_store %arg4[%c0_17, %c0_18], %18 {strides = array<i32>} : memref<48x1xf32, #tpu.memory_space<vmem>>, vector<48x1xf32>,
      %cst_19 = arith.constant 0.000000e+00 : f32
      %20 = vector.broadcast %cst_19 : f32 to vector<48x1xf32>
      %c0_20 = arith.constant 0 : index
      %c0_21 = arith.constant 0 : index
      %21 = vector.load %arg5[%c0_20, %c0_21] : memref<48x1xf32, #tpu.memory_space<vmem>>, vector<48x1xf32>
      tpu.vector_store %arg5[%c0_20, %c0_21], %20 {strides = array<i32>} : memref<48x1xf32, #tpu.memory_space<vmem>>, vector<48x1xf32>,
    } else {
    }
    %c0 = arith.constant 0 : index
    %c0_1 = arith.constant 0 : index
    %3 = vector.load %arg1[%c0, %c0_1] : memref<48x384xbf16, #tpu.memory_space<vmem>>, vector<48x384xbf16>
    %c0_2 = arith.constant 0 : index
    %c0_3 = arith.constant 0 : index
    %4 = vector.load %arg2[%c0_2, %c0_3] : memref<384x96xbf16, #tpu.memory_space<vmem>>, vector<384x96xbf16>
    %cst = arith.constant dense<0.000000e+00> : vector<48x96xf32>
    %5 = tpu.matmul %3, %4, %cst {dimension_numbers = #tpu.dot_dimension_numbers<[1], [0], [0], [1], [0, 0, 1, 1], [], []>} : vector<48x384xbf16>, vector<384x96xbf16>, vector<48x96xf32> -> vector<48x96xf32>
    %c0_4 = arith.constant 0 : index
    %c0_5 = arith.constant 0 : index
    %6 = vector.load %arg3[%c0_4, %c0_5] : memref<48x96xf32, #tpu.memory_space<vmem>>, vector<48x96xf32>
    tpu.vector_store %arg3[%c0_4, %c0_5], %5 {strides = array<i32>} : memref<48x96xf32, #tpu.memory_space<vmem>>, vector<48x96xf32>,
    %c0_6 = arith.constant 0 : index
    %c0_7 = arith.constant 0 : index
    %7 = vector.load %arg4[%c0_6, %c0_7] : memref<48x1xf32, #tpu.memory_space<vmem>>, vector<48x1xf32>
    %cst_8 = arith.constant dense<0.000000e+00> : vector<48xf32>
    %8 = vector.multi_reduction <add>, %5, %cst_8 [1] : vector<48x96xf32> to vector<48xf32>
    %9 = vector.shape_cast %8 : vector<48xf32> to vector<48x1xf32>
    %10 = arith.addf %7, %9 : vector<48x1xf32>
    %c0_9 = arith.constant 0 : index
    %c0_10 = arith.constant 0 : index
    %11 = vector.load %arg4[%c0_9, %c0_10] : memref<48x1xf32, #tpu.memory_space<vmem>>, vector<48x1xf32>
    tpu.vector_store %arg4[%c0_9, %c0_10], %10 {strides = array<i32>} : memref<48x1xf32, #tpu.memory_space<vmem>>, vector<48x1xf32>,
    %c0_11 = arith.constant 0 : index
    %c0_12 = arith.constant 0 : index
    %12 = vector.load %arg5[%c0_11, %c0_12] : memref<48x1xf32, #tpu.memory_space<vmem>>, vector<48x1xf32>
    %13 = arith.mulf %5, %5 : vector<48x96xf32>
    %cst_13 = arith.constant dense<0.000000e+00> : vector<48xf32>
    %14 = vector.multi_reduction <add>, %13, %cst_13 [1] : vector<48x96xf32> to vector<48xf32>
    %15 = vector.shape_cast %14 : vector<48xf32> to vector<48x1xf32>
    %16 = arith.addf %12, %15 : vector<48x1xf32>
    %c0_14 = arith.constant 0 : index
    %c0_15 = arith.constant 0 : index
    %17 = vector.load %arg5[%c0_14, %c0_15] : memref<48x1xf32, #tpu.memory_space<vmem>>, vector<48x1xf32>
    tpu.vector_store %arg5[%c0_14, %c0_15], %16 {strides = array<i32>} : memref<48x1xf32, #tpu.memory_space<vmem>>, vector<48x1xf32>,
    return
  }
  func.func @transform_0(%arg0: i32) -> (i32, i32) {
    %c0_i32 = arith.constant 0 : i32
    %c0_i32_0 = arith.constant 0 : i32
    %c0_i32_1 = arith.constant 0 : i32
    return %c0_i32, %c0_i32_0 : i32, i32
  }
  func.func @transform_1(%arg0: i32) -> (i32, i32) {
    %c0_i32 = arith.constant 0 : i32
    %c0_i32_0 = arith.constant 0 : i32
    return %c0_i32, %arg0 : i32, i32
  }
  func.func @transform_2(%arg0: i32) -> (i32, i32) {
    %c0_i32 = arith.constant 0 : i32
    %c0_i32_0 = arith.constant 0 : i32
    return %c0_i32, %arg0 : i32, i32
  }
  func.func @transform_3(%arg0: i32) -> (i32, i32) {
    %c0_i32 = arith.constant 0 : i32
    %c0_i32_0 = arith.constant 0 : i32
    %c0_i32_1 = arith.constant 0 : i32
    return %c0_i32, %c0_i32_0 : i32, i32
  }
  func.func @transform_4(%arg0: i32) -> (i32, i32) {
    %c0_i32 = arith.constant 0 : i32
    %c0_i32_0 = arith.constant 0 : i32
    %c0_i32_1 = arith.constant 0 : i32
    return %c0_i32, %c0_i32_0 : i32, i32
  }
}

module attributes {stable_mosaic.version = 11 : i64} {
  func.func @_bn_lrelu_kernel(%arg0: i32, %arg1: memref<48x96xf32, #tpu.memory_space<vmem>>, %arg2: memref<48x1xf32, #tpu.memory_space<vmem>>, %arg3: memref<48x1xf32, #tpu.memory_space<vmem>>, %arg4: memref<48x96xbf16, #tpu.memory_space<vmem>>) attributes {dimension_semantics = [#tpu.dimension_semantics<parallel>], iteration_bounds = array<i64: 1>, scalar_prefetch = 0 : i64, scratch_operands = 0 : i64, tpu.core_type = #tpu.core_type<tc>, window_params = [{transform_indices = @transform_0, window_bounds = array<i64: 48, 96>}, {pipeline_mode = #tpu.pipeline_mode<synchronous>, transform_indices = @transform_1, window_bounds = array<i64: 48, 1>}, {pipeline_mode = #tpu.pipeline_mode<synchronous>, transform_indices = @transform_2, window_bounds = array<i64: 48, 1>}, {transform_indices = @transform_3, window_bounds = array<i64: 48, 96>}]} {
    %c0 = arith.constant 0 : index
    %c0_0 = arith.constant 0 : index
    %0 = vector.load %arg1[%c0, %c0_0] : memref<48x96xf32, #tpu.memory_space<vmem>>, vector<48x96xf32>
    %c0_1 = arith.constant 0 : index
    %c0_2 = arith.constant 0 : index
    %1 = vector.load %arg2[%c0_1, %c0_2] : memref<48x1xf32, #tpu.memory_space<vmem>>, vector<48x1xf32>
    %2 = vector.broadcast %1 : vector<48x1xf32> to vector<48x96xf32>
    %3 = arith.mulf %0, %2 : vector<48x96xf32>
    %c0_3 = arith.constant 0 : index
    %c0_4 = arith.constant 0 : index
    %4 = vector.load %arg3[%c0_3, %c0_4] : memref<48x1xf32, #tpu.memory_space<vmem>>, vector<48x1xf32>
    %5 = vector.broadcast %4 : vector<48x1xf32> to vector<48x96xf32>
    %6 = arith.addf %3, %5 : vector<48x96xf32>
    %cst = arith.constant 0.000000e+00 : f32
    %7 = vector.broadcast %cst : f32 to vector<48x96xf32>
    %8 = arith.cmpf oge, %6, %7 : vector<48x96xf32>
    %cst_5 = arith.constant 2.000000e-01 : f32
    %9 = vector.broadcast %cst_5 : f32 to vector<48x96xf32>
    %10 = arith.mulf %9, %6 : vector<48x96xf32>
    %11 = arith.select %8, %6, %10 : vector<48x96xi1>, vector<48x96xf32>
    %12 = arith.truncf %11 : vector<48x96xf32> to vector<48x96xbf16>
    %c0_6 = arith.constant 0 : index
    %c0_7 = arith.constant 0 : index
    %13 = vector.load %arg4[%c0_6, %c0_7] : memref<48x96xbf16, #tpu.memory_space<vmem>>, vector<48x96xbf16>
    tpu.vector_store %arg4[%c0_6, %c0_7], %12 {strides = array<i32>} : memref<48x96xbf16, #tpu.memory_space<vmem>>, vector<48x96xbf16>,
    return
  }
  func.func @transform_0(%arg0: i32) -> (i32, i32) {
    %c0_i32 = arith.constant 0 : i32
    %c0_i32_0 = arith.constant 0 : i32
    return %c0_i32, %arg0 : i32, i32
  }
  func.func @transform_1(%arg0: i32) -> (i32, i32) {
    %c0_i32 = arith.constant 0 : i32
    %c0_i32_0 = arith.constant 0 : i32
    %c0_i32_1 = arith.constant 0 : i32
    return %c0_i32, %c0_i32_0 : i32, i32
  }
  func.func @transform_2(%arg0: i32) -> (i32, i32) {
    %c0_i32 = arith.constant 0 : i32
    %c0_i32_0 = arith.constant 0 : i32
    %c0_i32_1 = arith.constant 0 : i32
    return %c0_i32, %c0_i32_0 : i32, i32
  }
  func.func @transform_3(%arg0: i32) -> (i32, i32) {
    %c0_i32 = arith.constant 0 : i32
    %c0_i32_0 = arith.constant 0 : i32
    return %c0_i32, %arg0 : i32, i32
  }
}

module attributes {stable_mosaic.version = 11 : i64} {
  func.func @_conv_stats_kernel(%arg0: i32, %arg1: memref<96x768xbf16, #tpu.memory_space<vmem>>, %arg2: memref<768x24xbf16, #tpu.memory_space<vmem>>, %arg3: memref<96x24xf32, #tpu.memory_space<vmem>>, %arg4: memref<96x1xf32, #tpu.memory_space<vmem>>, %arg5: memref<96x1xf32, #tpu.memory_space<vmem>>) attributes {dimension_semantics = [#tpu.dimension_semantics<arbitrary>], iteration_bounds = array<i64: 1>, scalar_prefetch = 0 : i64, scratch_operands = 0 : i64, tpu.core_type = #tpu.core_type<tc>, window_params = [{pipeline_mode = #tpu.pipeline_mode<synchronous>, transform_indices = @transform_0, window_bounds = array<i64: 96, 768>}, {transform_indices = @transform_1, window_bounds = array<i64: 768, 24>}, {transform_indices = @transform_2, window_bounds = array<i64: 96, 24>}, {pipeline_mode = #tpu.pipeline_mode<synchronous>, transform_indices = @transform_3, window_bounds = array<i64: 96, 1>}, {pipeline_mode = #tpu.pipeline_mode<synchronous>, transform_indices = @transform_4, window_bounds = array<i64: 96, 1>}]} {
    %c0_i32 = arith.constant 0 : i32
    %0 = arith.cmpi eq, %arg0, %c0_i32 : i32
    %1 = arith.extui %0 : i1 to i32
    %c0_i32_0 = arith.constant 0 : i32
    %2 = arith.cmpi ne, %1, %c0_i32_0 : i32
    scf.if %2 {
      %cst_16 = arith.constant 0.000000e+00 : f32
      %18 = vector.broadcast %cst_16 : f32 to vector<96x1xf32>
      %c0_17 = arith.constant 0 : index
      %c0_18 = arith.constant 0 : index
      %19 = vector.load %arg4[%c0_17, %c0_18] : memref<96x1xf32, #tpu.memory_space<vmem>>, vector<96x1xf32>
      tpu.vector_store %arg4[%c0_17, %c0_18], %18 {strides = array<i32>} : memref<96x1xf32, #tpu.memory_space<vmem>>, vector<96x1xf32>,
      %cst_19 = arith.constant 0.000000e+00 : f32
      %20 = vector.broadcast %cst_19 : f32 to vector<96x1xf32>
      %c0_20 = arith.constant 0 : index
      %c0_21 = arith.constant 0 : index
      %21 = vector.load %arg5[%c0_20, %c0_21] : memref<96x1xf32, #tpu.memory_space<vmem>>, vector<96x1xf32>
      tpu.vector_store %arg5[%c0_20, %c0_21], %20 {strides = array<i32>} : memref<96x1xf32, #tpu.memory_space<vmem>>, vector<96x1xf32>,
    } else {
    }
    %c0 = arith.constant 0 : index
    %c0_1 = arith.constant 0 : index
    %3 = vector.load %arg1[%c0, %c0_1] : memref<96x768xbf16, #tpu.memory_space<vmem>>, vector<96x768xbf16>
    %c0_2 = arith.constant 0 : index
    %c0_3 = arith.constant 0 : index
    %4 = vector.load %arg2[%c0_2, %c0_3] : memref<768x24xbf16, #tpu.memory_space<vmem>>, vector<768x24xbf16>
    %cst = arith.constant dense<0.000000e+00> : vector<96x24xf32>
    %5 = tpu.matmul %3, %4, %cst {dimension_numbers = #tpu.dot_dimension_numbers<[1], [0], [0], [1], [0, 0, 1, 1], [], []>} : vector<96x768xbf16>, vector<768x24xbf16>, vector<96x24xf32> -> vector<96x24xf32>
    %c0_4 = arith.constant 0 : index
    %c0_5 = arith.constant 0 : index
    %6 = vector.load %arg3[%c0_4, %c0_5] : memref<96x24xf32, #tpu.memory_space<vmem>>, vector<96x24xf32>
    tpu.vector_store %arg3[%c0_4, %c0_5], %5 {strides = array<i32>} : memref<96x24xf32, #tpu.memory_space<vmem>>, vector<96x24xf32>,
    %c0_6 = arith.constant 0 : index
    %c0_7 = arith.constant 0 : index
    %7 = vector.load %arg4[%c0_6, %c0_7] : memref<96x1xf32, #tpu.memory_space<vmem>>, vector<96x1xf32>
    %cst_8 = arith.constant dense<0.000000e+00> : vector<96xf32>
    %8 = vector.multi_reduction <add>, %5, %cst_8 [1] : vector<96x24xf32> to vector<96xf32>
    %9 = vector.shape_cast %8 : vector<96xf32> to vector<96x1xf32>
    %10 = arith.addf %7, %9 : vector<96x1xf32>
    %c0_9 = arith.constant 0 : index
    %c0_10 = arith.constant 0 : index
    %11 = vector.load %arg4[%c0_9, %c0_10] : memref<96x1xf32, #tpu.memory_space<vmem>>, vector<96x1xf32>
    tpu.vector_store %arg4[%c0_9, %c0_10], %10 {strides = array<i32>} : memref<96x1xf32, #tpu.memory_space<vmem>>, vector<96x1xf32>,
    %c0_11 = arith.constant 0 : index
    %c0_12 = arith.constant 0 : index
    %12 = vector.load %arg5[%c0_11, %c0_12] : memref<96x1xf32, #tpu.memory_space<vmem>>, vector<96x1xf32>
    %13 = arith.mulf %5, %5 : vector<96x24xf32>
    %cst_13 = arith.constant dense<0.000000e+00> : vector<96xf32>
    %14 = vector.multi_reduction <add>, %13, %cst_13 [1] : vector<96x24xf32> to vector<96xf32>
    %15 = vector.shape_cast %14 : vector<96xf32> to vector<96x1xf32>
    %16 = arith.addf %12, %15 : vector<96x1xf32>
    %c0_14 = arith.constant 0 : index
    %c0_15 = arith.constant 0 : index
    %17 = vector.load %arg5[%c0_14, %c0_15] : memref<96x1xf32, #tpu.memory_space<vmem>>, vector<96x1xf32>
    tpu.vector_store %arg5[%c0_14, %c0_15], %16 {strides = array<i32>} : memref<96x1xf32, #tpu.memory_space<vmem>>, vector<96x1xf32>,
    return
  }
  func.func @transform_0(%arg0: i32) -> (i32, i32) {
    %c0_i32 = arith.constant 0 : i32
    %c0_i32_0 = arith.constant 0 : i32
    %c0_i32_1 = arith.constant 0 : i32
    return %c0_i32, %c0_i32_0 : i32, i32
  }
  func.func @transform_1(%arg0: i32) -> (i32, i32) {
    %c0_i32 = arith.constant 0 : i32
    %c0_i32_0 = arith.constant 0 : i32
    return %c0_i32, %arg0 : i32, i32
  }
  func.func @transform_2(%arg0: i32) -> (i32, i32) {
    %c0_i32 = arith.constant 0 : i32
    %c0_i32_0 = arith.constant 0 : i32
    return %c0_i32, %arg0 : i32, i32
  }
  func.func @transform_3(%arg0: i32) -> (i32, i32) {
    %c0_i32 = arith.constant 0 : i32
    %c0_i32_0 = arith.constant 0 : i32
    %c0_i32_1 = arith.constant 0 : i32
    return %c0_i32, %c0_i32_0 : i32, i32
  }
  func.func @transform_4(%arg0: i32) -> (i32, i32) {
    %c0_i32 = arith.constant 0 : i32
    %c0_i32_0 = arith.constant 0 : i32
    %c0_i32_1 = arith.constant 0 : i32
    return %c0_i32, %c0_i32_0 : i32, i32
  }
}

module attributes {stable_mosaic.version = 11 : i64} {
  func.func @_bn_lrelu_kernel(%arg0: i32, %arg1: memref<96x24xf32, #tpu.memory_space<vmem>>, %arg2: memref<96x1xf32, #tpu.memory_space<vmem>>, %arg3: memref<96x1xf32, #tpu.memory_space<vmem>>, %arg4: memref<96x24xbf16, #tpu.memory_space<vmem>>) attributes {dimension_semantics = [#tpu.dimension_semantics<parallel>], iteration_bounds = array<i64: 1>, scalar_prefetch = 0 : i64, scratch_operands = 0 : i64, tpu.core_type = #tpu.core_type<tc>, window_params = [{transform_indices = @transform_0, window_bounds = array<i64: 96, 24>}, {pipeline_mode = #tpu.pipeline_mode<synchronous>, transform_indices = @transform_1, window_bounds = array<i64: 96, 1>}, {pipeline_mode = #tpu.pipeline_mode<synchronous>, transform_indices = @transform_2, window_bounds = array<i64: 96, 1>}, {transform_indices = @transform_3, window_bounds = array<i64: 96, 24>}]} {
    %c0 = arith.constant 0 : index
    %c0_0 = arith.constant 0 : index
    %0 = vector.load %arg1[%c0, %c0_0] : memref<96x24xf32, #tpu.memory_space<vmem>>, vector<96x24xf32>
    %c0_1 = arith.constant 0 : index
    %c0_2 = arith.constant 0 : index
    %1 = vector.load %arg2[%c0_1, %c0_2] : memref<96x1xf32, #tpu.memory_space<vmem>>, vector<96x1xf32>
    %2 = vector.broadcast %1 : vector<96x1xf32> to vector<96x24xf32>
    %3 = arith.mulf %0, %2 : vector<96x24xf32>
    %c0_3 = arith.constant 0 : index
    %c0_4 = arith.constant 0 : index
    %4 = vector.load %arg3[%c0_3, %c0_4] : memref<96x1xf32, #tpu.memory_space<vmem>>, vector<96x1xf32>
    %5 = vector.broadcast %4 : vector<96x1xf32> to vector<96x24xf32>
    %6 = arith.addf %3, %5 : vector<96x24xf32>
    %cst = arith.constant 0.000000e+00 : f32
    %7 = vector.broadcast %cst : f32 to vector<96x24xf32>
    %8 = arith.cmpf oge, %6, %7 : vector<96x24xf32>
    %cst_5 = arith.constant 2.000000e-01 : f32
    %9 = vector.broadcast %cst_5 : f32 to vector<96x24xf32>
    %10 = arith.mulf %9, %6 : vector<96x24xf32>
    %11 = arith.select %8, %6, %10 : vector<96x24xi1>, vector<96x24xf32>
    %12 = arith.truncf %11 : vector<96x24xf32> to vector<96x24xbf16>
    %c0_6 = arith.constant 0 : index
    %c0_7 = arith.constant 0 : index
    %13 = vector.load %arg4[%c0_6, %c0_7] : memref<96x24xbf16, #tpu.memory_space<vmem>>, vector<96x24xbf16>
    tpu.vector_store %arg4[%c0_6, %c0_7], %12 {strides = array<i32>} : memref<96x24xbf16, #tpu.memory_space<vmem>>, vector<96x24xbf16>,
    return
  }
  func.func @transform_0(%arg0: i32) -> (i32, i32) {
    %c0_i32 = arith.constant 0 : i32
    %c0_i32_0 = arith.constant 0 : i32
    return %c0_i32, %arg0 : i32, i32
  }
  func.func @transform_1(%arg0: i32) -> (i32, i32) {
    %c0_i32 = arith.constant 0 : i32
    %c0_i32_0 = arith.constant 0 : i32
    %c0_i32_1 = arith.constant 0 : i32
    return %c0_i32, %c0_i32_0 : i32, i32
  }
  func.func @transform_2(%arg0: i32) -> (i32, i32) {
    %c0_i32 = arith.constant 0 : i32
    %c0_i32_0 = arith.constant 0 : i32
    %c0_i32_1 = arith.constant 0 : i32
    return %c0_i32, %c0_i32_0 : i32, i32
  }
  func.func @transform_3(%arg0: i32) -> (i32, i32) {
    %c0_i32 = arith.constant 0 : i32
    %c0_i32_0 = arith.constant 0 : i32
    return %c0_i32, %arg0 : i32, i32
  }
}

module attributes {stable_mosaic.version = 11 : i64} {
  func.func @_conv_sigmoid_kernel(%arg0: i32, %arg1: memref<1x1152xbf16, #tpu.memory_space<vmem>>, %arg2: memref<1152x2xbf16, #tpu.memory_space<vmem>>, %arg3: memref<1x2xf32, #tpu.memory_space<vmem>>) attributes {dimension_semantics = [#tpu.dimension_semantics<parallel>], iteration_bounds = array<i64: 1>, scalar_prefetch = 0 : i64, scratch_operands = 0 : i64, tpu.core_type = #tpu.core_type<tc>, window_params = [{pipeline_mode = #tpu.pipeline_mode<synchronous>, transform_indices = @transform_0, window_bounds = array<i64: 1, 1152>}, {transform_indices = @transform_1, window_bounds = array<i64: 1152, 2>}, {transform_indices = @transform_2, window_bounds = array<i64: 1, 2>}]} {
    %c0 = arith.constant 0 : index
    %c0_0 = arith.constant 0 : index
    %0 = vector.load %arg1[%c0, %c0_0] : memref<1x1152xbf16, #tpu.memory_space<vmem>>, vector<1x1152xbf16>
    %c0_1 = arith.constant 0 : index
    %c0_2 = arith.constant 0 : index
    %1 = vector.load %arg2[%c0_1, %c0_2] : memref<1152x2xbf16, #tpu.memory_space<vmem>>, vector<1152x2xbf16>
    %cst = arith.constant dense<0.000000e+00> : vector<1x2xf32>
    %2 = tpu.matmul %0, %1, %cst {dimension_numbers = #tpu.dot_dimension_numbers<[1], [0], [0], [1], [0, 0, 1, 1], [], []>} : vector<1x1152xbf16>, vector<1152x2xbf16>, vector<1x2xf32> -> vector<1x2xf32>
    %3 = math.absf %2 : vector<1x2xf32>
    %cst_3 = arith.constant 0.000000e+00 : f32
    %4 = vector.broadcast %cst_3 : f32 to vector<1x2xf32>
    %5 = arith.subf %4, %3 : vector<1x2xf32>
    %6 = math.exp %5 : vector<1x2xf32>
    %cst_4 = arith.constant 0.000000e+00 : f32
    %7 = vector.broadcast %cst_4 : f32 to vector<1x2xf32>
    %8 = arith.cmpf oge, %2, %7 : vector<1x2xf32>
    %cst_5 = arith.constant 1.000000e+00 : f32
    %9 = vector.broadcast %cst_5 : f32 to vector<1x2xf32>
    %10 = arith.addf %9, %6 : vector<1x2xf32>
    %cst_6 = arith.constant 1.000000e+00 : f32
    %11 = vector.broadcast %cst_6 : f32 to vector<1x2xf32>
    %12 = arith.divf %11, %10 : vector<1x2xf32>
    %cst_7 = arith.constant 1.000000e+00 : f32
    %13 = vector.broadcast %cst_7 : f32 to vector<1x2xf32>
    %14 = arith.addf %13, %6 : vector<1x2xf32>
    %15 = arith.divf %6, %14 : vector<1x2xf32>
    %16 = arith.select %8, %12, %15 : vector<1x2xi1>, vector<1x2xf32>
    %c0_8 = arith.constant 0 : index
    %c0_9 = arith.constant 0 : index
    %17 = vector.load %arg3[%c0_8, %c0_9] : memref<1x2xf32, #tpu.memory_space<vmem>>, vector<1x2xf32>
    tpu.vector_store %arg3[%c0_8, %c0_9], %16 {strides = array<i32>} : memref<1x2xf32, #tpu.memory_space<vmem>>, vector<1x2xf32>,
    return
  }
  func.func @transform_0(%arg0: i32) -> (i32, i32) {
    %c0_i32 = arith.constant 0 : i32
    %c0_i32_0 = arith.constant 0 : i32
    %c0_i32_1 = arith.constant 0 : i32
    return %c0_i32, %c0_i32_0 : i32, i32
  }
  func.func @transform_1(%arg0: i32) -> (i32, i32) {
    %c0_i32 = arith.constant 0 : i32
    %c0_i32_0 = arith.constant 0 : i32
    return %c0_i32, %arg0 : i32, i32
  }
  func.func @transform_2(%arg0: i32) -> (i32, i32) {
    %c0_i32 = arith.constant 0 : i32
    %c0_i32_0 = arith.constant 0 : i32
    return %c0_i32, %arg0 : i32, i32
  }
}

</mosaic_0001>

<bundles_post_ra>
// kernel: discriminator_forward.8
= control target key start
LH: loop header
LB: loop body
LE: loop exit
PB: predicated region body
PF: predicated region fallthrough
CT: control target
= control target key end

     0   :  { %s617_s9 = smov 0   ;;  %s619_s10 = smov 0   ;;  %s684_s0 = inlined_call_operand.vmem [shape: bf16[12,48], index: 0, kind: input, shape index: {}]   ;;  %s685_s1 = inlined_call_operand.vmem [shape: bf16[48,1536], index: 1, kind: input, shape index: {}]   ;;  %s686_s2 = inlined_call_operand.vmem [shape: bf16[12,1536], index: 2, kind: output, shape index: {}]  }
   0x1   :  { %s621_s11 = smov 0  }
   0x2 LB: > { %s493_s12 = sadd.s32 4294967295, %s599_s11   ;;  %s634_s13 = sadd.s32 1, %s599_s11   ;;  %s599_s11 = sphi %s621_s11, %s690_s11   ;;  %s595_s10 = sphi %s619_s10, %s689_s10   ;;  %s591_s9 = sphi %s617_s9, %s688_s9  }
   0x3   : > { %s37_s14 = ssub.s32 %s599_s11, %s634_s13  ;;  %s40_s15 = sadd.s32 1, %s595_s10 }
   0x4   : > { %p38_p0 = scmp.eq.s32.totalorder %s37_s14, 0  ;;  %p47_p1 = scmp.ne.s32.totalorder %s595_s10, %s591_s9 }
   0x5   : > { %p48_p2 = scmp.eq.s32.totalorder %s599_s11, 0  ;;  %p77_p3 = scmp.eq.s32.totalorder %s493_s12, 2 }
   0x6   : > { %s645_s16 = scalar_select %p38_p0, %s595_s10, %s40_s15  }
   0x7   : > { %p49_p4 = por %p48_p2, %p47_p1  ;;  %p647_p5 = por %p77_p3, %p47_p1 }
   0x8   : > { %p496_p6 = scmp.ge.s32.totalorder %s599_s11, 3 }
   0xa   : > { %102 = sbr.rel (%p496_p6) target bundleno = 28 (0x1c), region = 20 }
  0x11   : > { %105 = sbr.rel (!%p49_p4) target bundleno = 28 (0x1c), region = 24  ;;  %s107_s18 = sand.u32 (%p49_p4), 1, %s595_s10  }
  0x12   : > { %s525_s19 = sshll.u32 (%p49_p4), %s599_s11, 4  ;;  %s531_s20 = smul.u32 (%p49_p4), 96, %s107_s18 }
  0x13   : > { %s112_s23 = scalar_lea.vmem (%p49_p4), %s685_s1, %s525_s19 }
  0x14   : > { %v125_v0 = vld [vmem:[%s112_s23] sm:$0xff] (%p49_p4)  ;;  %v127_v1 = vld [vmem:[%s112_s23 + $0x8] sm:$0xff] (%p49_p4)  ;;  %v129_v2 = vld [vmem:[%s112_s23 + $0x30] sm:$0xff] (%p49_p4)  ;;  %s109_s24 = scalar_lea.vmem (%p49_p4), [#allocation2], %s531_s20 }
  0x15   : > { %v131_v3 = vld [vmem:[%s112_s23 + $0x38] sm:$0xff] (%p49_p4)  ;;  %v133_v4 = vld [vmem:[%s112_s23 + $0x60] sm:$0xff] (%p49_p4)  ;;  %v135_v5 = vld [vmem:[%s112_s23 + $0x68] sm:$0xff] (%p49_p4)  ;;  %126 = vst [vmem:[%s109_s24] sm:$0xff] (%p49_p4), %v125_v0 }
  0x16   : > { %128 = vst [vmem:[%s109_s24 + $0x8] sm:$0xff] (%p49_p4), %v127_v1  ;;  %130 = vst [vmem:[%s109_s24 + $0x10] sm:$0xff] (%p49_p4), %v129_v2  ;;  %v137_v6 = vld [vmem:[%s112_s23 + $0x90] sm:$0xff] (%p49_p4)  ;;  %v139_v7 = vld [vmem:[%s112_s23 + $0x98] sm:$0xff] (%p49_p4) }
  0x17   : > { %132 = vst [vmem:[%s109_s24 + $0x18] sm:$0xff] (%p49_p4), %v131_v3  ;;  %134 = vst [vmem:[%s109_s24 + $0x20] sm:$0xff] (%p49_p4), %v133_v4  ;;  %v141_v8 = vld [vmem:[%s112_s23 + $0xc0] sm:$0xff] (%p49_p4)  ;;  %v143_v9 = vld [vmem:[%s112_s23 + $0xc8] sm:$0xff] (%p49_p4) }
  0x18   : > { %136 = vst [vmem:[%s109_s24 + $0x28] sm:$0xff] %v135_v5  ;;  %138 = vst [vmem:[%s109_s24 + $0x30] sm:$0xff] %v137_v6  ;;  %v145_v10 = vld [vmem:[%s112_s23 + $0xf0] sm:$0xff]  ;;  %v147_v11 = vld [vmem:[%s112_s23 + $0xf8] sm:$0xff] }
  0x19   : > { %140 = vst [vmem:[%s109_s24 + $0x38] sm:$0xff] %v139_v7  ;;  %142 = vst [vmem:[%s109_s24 + $0x40] sm:$0xff] %v141_v8 }
  0x1a   : > { %144 = vst [vmem:[%s109_s24 + $0x48] sm:$0xff] %v143_v9  ;;  %146 = vst [vmem:[%s109_s24 + $0x50] sm:$0xff] %v145_v10 }
  0x1b   : > { %148 = vst [vmem:[%s109_s24 + $0x58] sm:$0xff] %v147_v11 }
  0x1c PF: > { %p499_p7 = scmp.ge.s32.totalorder %s599_s11, 1  ;;  %p153_p8 = scmp.lt.s32.totalorder %s599_s11, 4 }
  0x1e   : > { %p154_p9 = pnand %p499_p7, %p153_p8 }
  0x1f   : > { %s160_s25 = sand.u32 (!%p154_p9), 1, %s591_s9   ;;  %v601_v12 = vmov (!%p154_p9), 0   ;;  %v576_v25 = vld [vmem:[%s684_s0] sm:$0x3f] (!%p154_p9)   ;;  %vm262_vm0 = vcmask (!%p154_p9), 392192  }
  0x20   : > { %157 = sbr.rel (%p154_p9) target bundleno = 282 (0x11a), region = 47  ;;  %298 = vmatprep.mubr.bf16.mxu0 (!%p154_p9), %v601_v12  ;;  %341 = vmatprep.mubr.bf16.mxu1 (!%p154_p9), %v601_v12  ;;  %s500_s30 = sshll.u32 (!%p154_p9), %s160_s25, 5 }
  0x21   : > { %s532_s26 = smul.u32 (!%p154_p9), 96, %s160_s25  ;;  %s179_s3 = scalar_lea.vmem (!%p154_p9), [#allocation3], %s500_s30 }
  0x23   : > { %s162_s27 = scalar_lea.vmem (!%p154_p9), [#allocation2], %s532_s26 }
  0x24   : > { %v558_v13 = vld [vmem:[%s162_s27 + $0x4] ss:$16 sps:$4 sm:$0xff] (!%p154_p9)   ;;  %v560_v14 = vld [vmem:[%s162_s27 + $0xc] ss:$16 sps:$4 sm:$0xff] (!%p154_p9)   ;;  %v562_v15 = vld [vmem:[%s162_s27] ss:$16 sps:$4 sm:$0xff] (!%p154_p9)  }
  0x25   : > { %266 = vmatprep.subr.bf16.mxu0 (!%p154_p9), %v558_v13  ;;  %v563_v16 = vld [vmem:[%s162_s27 + $0x8] ss:$16 sps:$4 sm:$0xff] (!%p154_p9)   ;;  %309 = vmatprep.subr.bf16.mxu1 (!%p154_p9), %v560_v14  ;;  %v564_v17 = vld [vmem:[%s162_s27 + $0x24] ss:$16 sps:$4 sm:$0xff] (!%p154_p9)   ;;  %v566_v18 = vld [vmem:[%s162_s27 + $0x2c] ss:$16 sps:$4 sm:$0xff] (!%p154_p9)  }
  0x26   : > { %267 = vmatpush1.bf16.msra.mxu0 (!%p154_p9), %v562_v15  ;;  %310 = vmatpush1.bf16.msra.mxu1 (!%p154_p9), %v563_v16  ;;  %v568_v19 = vld [vmem:[%s162_s27 + $0x20] ss:$16 sps:$4 sm:$0xff] (!%p154_p9)   ;;  %v569_v20 = vld [vmem:[%s162_s27 + $0x28] ss:$16 sps:$4 sm:$0xff] (!%p154_p9)   ;;  %v570_v21 = vld [vmem:[%s162_s27 + $0x44] ss:$16 sps:$4 sm:$0xff] (!%p154_p9)  }
  0x27   : > { %268 = vmatprep.subr.bf16.mxu0 %v564_v17  ;;  %311 = vmatprep.subr.bf16.mxu1 %v566_v18  ;;  %v572_v22 = vld [vmem:[%s162_s27 + $0x4c] ss:$16 sps:$4 sm:$0xff]   ;;  %v574_v23 = vld [vmem:[%s162_s27 + $0x40] ss:$16 sps:$4 sm:$0xff]   ;;  %v575_v24 = vld [vmem:[%s162_s27 + $0x48] ss:$16 sps:$4 sm:$0xff]  }
  0x28   : > { %s530_s4 = sshll.u32 (%p647_p5), %s493_s12, 4 }
  0x29   : > { %s413_s7 = scalar_lea.vmem (%p647_p5), %s686_s2, %s530_s4 }
  0x2a   : > { %269 = vmatpush1.bf16.msra.mxu0 %v568_v19  ;;  %312 = vmatpush1.bf16.msra.mxu1 %v569_v20 }
  0x2b   : > { %270 = vmatprep.subr.bf16.mxu0 %v570_v21  ;;  %313 = vmatprep.subr.bf16.mxu1 %v572_v22 }
  0x2e   : > { %271 = vmatpush1.bf16.msra.mxu0 %v574_v23  ;;  %314 = vmatpush1.bf16.msra.mxu1 %v575_v24 }
  0x31   : > { %514 = vmatmul.mubr.msk.bf16.vlgmr.msra.gmra.mrb[0].mxu0 %vm262_vm0, %v576_v25  ;;  %515 = vmatmul.mubr.msk.bf16.vlgmr.msra.gmra.mrb[0].mxu1 %vm262_vm0, %v576_v25 }
 0x104   : > { %v300_v26 = vpop.f32.mrb[0].mxu0  ;;  %v343_v27 = vpop.f32.mrb[0].mxu1 }
 0x105   : > { %vm352_vm1 = vcmp.ge.f32.partialorder %v300_v26, 0.0  ;;  %v360_v28 = vmul.f32 0.2, %v300_v26  ;;  %vm354_vm2 = vcmp.ge.f32.partialorder %v343_v27, 0.0  ;;  %v362_v29 = vmul.f32 0.2, %v343_v27 }
 0x106   : > { %v302_v30 = vpop.f32.mrb[1].mxu0  ;;  %v345_v31 = vpop.f32.mrb[1].mxu1 }
 0x107   : > { %v368_v32 = vsel %vm352_vm1, %v300_v26, %v360_v28  ;;  %v370_v33 = vsel %vm354_vm2, %v343_v27, %v362_v29  ;;  %vm353_vm3 = vcmp.ge.f32.partialorder %v302_v30, 0.0  ;;  %v361_v34 = vmul.f32 0.2, %v302_v30  ;;  %v304_v35 = vpop.f32.mrb[2].mxu0  ;;  %v347_v36 = vpop.f32.mrb[2].mxu1 }
 0x108   : > { %vm355_vm4 = vcmp.ge.f32.partialorder %v345_v31, 0.0  ;;  %v363_v37 = vmul.f32 0.2, %v345_v31  ;;  %vm356_vm5 = vcmp.ge.f32.partialorder %v304_v35, 0.0  ;;  %v364_v38 = vmul.f32 0.2, %v304_v35 }
 0x109   : > { %v369_v39 = vsel %vm353_vm3, %v302_v30, %v361_v34  ;;  %vm358_vm6 = vcmp.ge.f32.partialorder %v347_v36, 0.0  ;;  %v366_v40 = vmul.f32 0.2, %v347_v36  ;;  %v306_v41 = vpop.f32.mrb[3].mxu0  ;;  %v349_v42 = vpop.f32.mrb[3].mxu1 }
 0x10a   : > { %v526_v43 = vpack.c.bf16 %v369_v39, %v368_v32  ;;  %v371_v44 = vsel %vm355_vm4, %v345_v31, %v363_v37  ;;  %vm357_vm7 = vcmp.ge.f32.partialorder %v306_v41, 0.0  ;;  %v372_v46 = vsel %vm356_vm5, %v304_v35, %v364_v38 }
 0x10b   : > { %v527_v45 = vpack.c.bf16 %v371_v44, %v370_v33  ;;  %v365_v47 = vmul.f32 0.2, %v306_v41  ;;  %vm359_vm8 = vcmp.ge.f32.partialorder %v349_v42, 0.0  ;;  %v374_v48 = vsel %vm358_vm6, %v347_v36, %v366_v40  ;;  %410 = sbr.rel (!%p647_p5) target bundleno = 282 (0x11a), region = 55 }
 0x10c   : > { %400 = vst [vmem:[%s179_s3] sm:$0xff] %v526_v43  ;;  %v367_v49 = vmul.f32 0.2, %v349_v42 }
 0x10d   : > { %401 = vst [vmem:[%s179_s3 + $0x8] sm:$0xff] %v527_v45  ;;  %v373_v50 = vsel %vm357_vm7, %v306_v41, %v365_v47 }
 0x10e   : > { %v528_v51 = vpack.c.bf16 %v373_v50, %v372_v46  ;;  %v375_v52 = vsel %vm359_vm8, %v349_v42, %v367_v49 }
 0x10f   : > { %v529_v53 = vpack.c.bf16 %v375_v52, %v374_v48 }
 0x110   : > { %402 = vst [vmem:[%s179_s3 + $0x10] sm:$0x33] %v528_v51 }
 0x111   : > { %403 = vst [vmem:[%s179_s3 + $0x18] sm:$0x33] %v529_v53 }
 0x113   : > { %v426_v54 = vld [vmem:[%s179_s3] sm:$0xff] }
 0x114   : > { %v428_v55 = vld [vmem:[%s179_s3 + $0x8] sm:$0xff]  ;;  %427 = vst [vmem:[%s413_s7] sm:$0xff] %v426_v54 }
 0x115   : > { %429 = vst [vmem:[%s413_s7 + $0x8] sm:$0xff] %v428_v55 }
 0x117   : > { %v430_v56 = vld [vmem:[%s179_s3 + $0x10] sm:$0xff] }
 0x118   : > { %v432_v57 = vld [vmem:[%s179_s3 + $0x18] sm:$0xff]  ;;  %431 = vst [vmem:[%s413_s7 + $0x30] sm:$0xff] %v430_v56 }
 0x119   : > { %433 = vst [vmem:[%s413_s7 + $0x38] sm:$0xff] %v432_v57 }
 0x11a PF: > { %p9_p10 = scmp.ge.s32.totalorder %s634_s13, 5   ;;  %s688_s9 = smov %s595_s10 }
 0x11b   : > { %s689_s10 = smov %s645_s16  ;;  %s690_s11 = smov %s634_s13 }
 0x11c   :  { %11 = sbr.rel (!%p9_p10) target bundleno = 2 (0x2), region = 109 }

// kernel: discriminator_forward.9
= control target key start
LH: loop header
LB: loop body
LE: loop exit
PB: predicated region body
PF: predicated region fallthrough
CT: control target
= control target key end

     0   :  { %v562_v1 = vmov 0   ;;  %vm284_vm0 = vcmask 523264   ;;  %vm19_vm1 = vcmask 7168   ;;  %v563_v42 = vmov 0.0   ;;  %s815_s1 = inlined_call_operand.vmem [shape: bf16[192,384], index: 1, kind: input, shape index: {}]   ;;  %s816_s0 = inlined_call_operand.vmem [shape: bf16[24,192], index: 0, kind: input, shape index: {}]   ;;  %s817_s3 = inlined_call_operand.vmem [shape: f32[24,1], index: 3, kind: output, shape index: {1}]   ;;  %s818_s2 = inlined_call_operand.vmem [shape: f32[24,384], index: 2, kind: output, shape index: {0}]   ;;  %s819_s4 = inlined_call_operand.vmem [shape: f32[24,1], index: 4, kind: output, shape index: {2}]  }
   0x1   :  { %v509_v0 = vld [vmem:[%s815_s1 + $0x4] ss:$12 sps:$4 sm:$0xff]   ;;  %342 = vmatprep.subr.bf16.mxu1 %v562_v1  ;;  %v511_v2 = vld [vmem:[%s815_s1] ss:$12 sps:$4 sm:$0xff]   ;;  %v512_v3 = vld [vmem:[%s815_s1 + $0x8] ss:$12 sps:$4 sm:$0xff]  }
   0x2   :  { %291 = vmatprep.subr.bf16.mxu0 %v509_v0  ;;  %v513_v4 = vld [vmem:[%s815_s1 + $0x1c] ss:$12 sps:$4 sm:$0xff]   ;;  %v515_v5 = vld [vmem:[%s815_s1 + $0x18] ss:$12 sps:$4 sm:$0xff]   ;;  %343 = vmatpush1.bf16.msra.mxu1 %v512_v3  ;;  %v516_v6 = vld [vmem:[%s815_s1 + $0x20] ss:$12 sps:$4 sm:$0xff]  }
   0x3   :  { %292 = vmatpush1.bf16.msra.mxu0 %v511_v2  ;;  %344 = vmatprep.subr.bf16.mxu1 %v562_v1  ;;  %v517_v7 = vld [vmem:[%s815_s1 + $0x34] ss:$12 sps:$4 sm:$0xff]   ;;  %v519_v8 = vld [vmem:[%s815_s1 + $0x30] ss:$12 sps:$4 sm:$0xff]   ;;  %v520_v9 = vld [vmem:[%s815_s1 + $0x38] ss:$12 sps:$4 sm:$0xff]  }
   0x4   :  { %293 = vmatprep.subr.bf16.mxu0 %v513_v4  ;;  %v521_v10 = vld [vmem:[%s815_s1 + $0x4c] ss:$12 sps:$4 sm:$0xff]   ;;  %v523_v11 = vld [vmem:[%s815_s1 + $0x48] ss:$12 sps:$4 sm:$0xff]   ;;  %v524_v12 = vld [vmem:[%s815_s1 + $0x50] ss:$12 sps:$4 sm:$0xff]  }
   0x5   :  { %v525_v13 = vld [vmem:[%s815_s1 + $0x64] ss:$12 sps:$4 sm:$0xff]   ;;  %v527_v14 = vld [vmem:[%s815_s1 + $0x60] ss:$12 sps:$4 sm:$0xff]   ;;  %v528_v15 = vld [vmem:[%s815_s1 + $0x68] ss:$12 sps:$4 sm:$0xff]  }
   0x6   :  { %345 = vmatpush1.bf16.msra.mxu1 %v516_v6  ;;  %v529_v16 = vld [vmem:[%s815_s1 + $0x7c] ss:$12 sps:$4 sm:$0xff]   ;;  %v531_v17 = vld [vmem:[%s815_s1 + $0x78] ss:$12 sps:$4 sm:$0xff]   ;;  %v532_v18 = vld [vmem:[%s815_s1 + $0x80] ss:$12 sps:$4 sm:$0xff]  }
   0x7   :  { %294 = vmatpush1.bf16.msra.mxu0 %v515_v5  ;;  %346 = vmatprep.subr.bf16.mxu1 %v562_v1  ;;  %v533_v19 = vld [vmem:[%s815_s1 + $0x94] ss:$12 sps:$4 sm:$0xff]   ;;  %v535_v20 = vld [vmem:[%s815_s1 + $0x90] ss:$12 sps:$4 sm:$0xff]   ;;  %v536_v21 = vld [vmem:[%s815_s1 + $0x98] ss:$12 sps:$4 sm:$0xff]  }
   0x8   :  { %295 = vmatprep.subr.bf16.mxu0 %v517_v7  ;;  %v537_v22 = vld [vmem:[%s815_s1 + $0xac] ss:$12 sps:$4 sm:$0xff]   ;;  %v539_v23 = vld [vmem:[%s815_s1 + $0xa8] ss:$12 sps:$4 sm:$0xff]   ;;  %v540_v24 = vld [vmem:[%s815_s1 + $0xb0] ss:$12 sps:$4 sm:$0xff]  }
   0x9   :  { %v541_v25 = vld [vmem:[%s815_s1 + $0xc4] ss:$12 sps:$4 sm:$0xff]   ;;  %v543_v27 = vld [vmem:[%s815_s1 + $0xc0] ss:$12 sps:$4 sm:$0xff]   ;;  %v544_v28 = vld [vmem:[%s815_s1 + $0xc8] ss:$12 sps:$4 sm:$0xff]  }
   0xa   :  { %347 = vmatpush1.bf16.msra.mxu1 %v520_v9  ;;  %v559_v26 = vld [vmem:[%s816_s0 + $0x4] ss:$8 sps:$4 sm:$0xff]   ;;  %v545_v29 = vld [vmem:[%s815_s1 + $0xdc] ss:$12 sps:$4 sm:$0xff]   ;;  %v549_v32 = vld [vmem:[%s815_s1 + $0xf4] ss:$12 sps:$4 sm:$0xff]  }
   0xb   :  { %296 = vmatpush1.bf16.msra.mxu0 %v519_v8  ;;  %348 = vmatprep.subr.bf16.mxu1 %v562_v1  ;;  %v547_v30 = vld [vmem:[%s815_s1 + $0xd8] ss:$12 sps:$4 sm:$0xff]   ;;  %v548_v31 = vld [vmem:[%s815_s1 + $0xe0] ss:$12 sps:$4 sm:$0xff]   ;;  %v551_v33 = vld [vmem:[%s815_s1 + $0xf0] ss:$12 sps:$4 sm:$0xff]  }
   0xc   :  { %297 = vmatprep.subr.bf16.mxu0 %v521_v10  ;;  %503 = vmatprep.mubr.msk.bf16.mxu0 %vm284_vm0, %v559_v26  ;;  %v552_v34 = vld [vmem:[%s815_s1 + $0xf8] ss:$12 sps:$4 sm:$0xff]   ;;  %v555_v36 = vld [vmem:[%s815_s1 + $0x108] ss:$12 sps:$4 sm:$0xff]   ;;  %v556_v37 = vld [vmem:[%s815_s1 + $0x110] ss:$12 sps:$4 sm:$0xff]  }
   0xd   :  { %505 = vmatprep.mubr.msk.bf16.mxu1 %vm284_vm0, %v559_v26  ;;  %v553_v35 = vld [vmem:[%s815_s1 + $0x10c] ss:$12 sps:$4 sm:$0xff]   ;;  %v28_v38 = vld [vmem:[%s816_s0 + $0x10] sm:$0xff]  ;;  %v557_v39 = vld [vmem:[%s816_s0] ss:$8 sps:$4 sm:$0xff]   ;;  %20 = vst.msk [vmem:[%s817_s3] sm:$0xff] %vm19_vm1, %v563_v42 }
   0xe   :  { %349 = vmatpush1.bf16.msra.mxu1 %v524_v12  ;;  %v466_v40 = vcombine.high %v28_v38, %v28_v38  ;;  %v465_v41 = vcombine.low %v28_v38, %v28_v38  ;;  %21 = vst.msk [vmem:[%s817_s3 + $0x8] sm:$0xff] %vm19_vm1, %v563_v42  ;;  %22 = vst.msk [vmem:[%s817_s3 + $0x10] sm:$0xff] %vm19_vm1, %v563_v42 }
   0xf   :  { %298 = vmatpush1.bf16.msra.mxu0 %v523_v11  ;;  %350 = vmatprep.subr.bf16.mxu1 %v562_v1  ;;  %23 = vst.msk [vmem:[%s819_s4] sm:$0xff] %vm19_vm1, %v563_v42  ;;  %24 = vst.msk [vmem:[%s819_s4 + $0x8] sm:$0xff] %vm19_vm1, %v563_v42 }
  0x10   :  { %299 = vmatprep.subr.bf16.mxu0 %v525_v13  ;;  %25 = vst.msk [vmem:[%s819_s4 + $0x10] sm:$0xff] %vm19_vm1, %v563_v42 }
  0x12   :  { %351 = vmatpush1.bf16.msra.mxu1 %v528_v15 }
  0x13   :  { %300 = vmatpush1.bf16.msra.mxu0 %v527_v14  ;;  %352 = vmatprep.subr.bf16.mxu1 %v562_v1 }
  0x14   :  { %301 = vmatprep.subr.bf16.mxu0 %v529_v16  ;;  %v399_v16 = vld [vmem:[%s817_s3] sm:$0xff] }
  0x15   :  { %v401_v26 = vld [vmem:[%s817_s3 + $0x10] sm:$0xff] }
  0x16   :  { %353 = vmatpush1.bf16.msra.mxu1 %v532_v18  ;;  %v421_v18 = vld [vmem:[%s819_s4] sm:$0xff] }
  0x17   :  { %302 = vmatpush1.bf16.msra.mxu0 %v531_v17  ;;  %354 = vmatprep.subr.bf16.mxu1 %v562_v1 }
  0x18   :  { %303 = vmatprep.subr.bf16.mxu0 %v533_v19 }
  0x1a   :  { %355 = vmatpush1.bf16.msra.mxu1 %v536_v21  ;;  %v400_v21 = vld [vmem:[%s817_s3 + $0x8] sm:$0xff] }
  0x1b   :  { %304 = vmatpush1.bf16.msra.mxu0 %v535_v20  ;;  %356 = vmatprep.subr.bf16.mxu1 %v562_v1 }
  0x1c   :  { %305 = vmatprep.subr.bf16.mxu0 %v537_v22 }
  0x1e   :  { %357 = vmatpush1.bf16.msra.mxu1 %v540_v24 }
  0x1f   :  { %306 = vmatpush1.bf16.msra.mxu0 %v539_v23  ;;  %358 = vmatprep.subr.bf16.mxu1 %v562_v1 }
  0x20   :  { %307 = vmatprep.subr.bf16.mxu0 %v541_v25  ;;  %v422_v25 = vld [vmem:[%s819_s4 + $0x8] sm:$0xff] }
  0x22   :  { %359 = vmatpush1.bf16.msra.mxu1 %v544_v28 }
  0x23   :  { %308 = vmatpush1.bf16.msra.mxu0 %v543_v27  ;;  %360 = vmatprep.subr.bf16.mxu1 %v562_v1 }
  0x24   :  { %309 = vmatprep.subr.bf16.mxu0 %v545_v29 }
  0x26   :  { %361 = vmatpush1.bf16.msra.mxu1 %v548_v31  ;;  %v423_v31 = vld [vmem:[%s819_s4 + $0x10] sm:$0xff] }
  0x27   :  { %310 = vmatpush1.bf16.msra.mxu0 %v547_v30  ;;  %362 = vmatprep.subr.bf16.mxu1 %v562_v1 }
  0x28   :  { %311 = vmatprep.subr.bf16.mxu0 %v549_v32 }
  0x2a   :  { %363 = vmatpush1.bf16.msra.mxu1 %v552_v34 }
  0x2b   :  { %312 = vmatpush1.bf16.msra.mxu0 %v551_v33  ;;  %364 = vmatprep.subr.bf16.mxu1 %v562_v1 }
  0x2c   :  { %313 = vmatprep.subr.bf16.mxu0 %v553_v35 }
  0x2e   :  { %365 = vmatpush1.bf16.msra.mxu1 %v556_v37 }
  0x2f   :  { %314 = vmatpush1.bf16.msra.mxu0 %v555_v36 }
  0x31   :  { %375 = vmatmul.mubr.bf16.vlgmr.msra.gmra.mrb[0].mxu1 %v557_v39 }
  0x32   :  { %324 = vmatmul.mubr.bf16.vlgmr.msra.gmra.mrb[0].mxu0 %v557_v39  ;;  %506 = vmatprep.mubr.msk.bf16.mxu1 %vm284_vm0, %v466_v40 }
  0x33   :  { %504 = vmatprep.mubr.msk.bf16.mxu0 %vm284_vm0, %v466_v40 }
  0x39   :  { %383 = vmatmul.mubr.bf16.gmra.mrb[4].mxu1 %v465_v41 }
  0x3a   :  { %334 = vmatmul.mubr.bf16.gmra.mrb[4].mxu0 %v465_v41 }
 0x104   :  { %v376_v45 = vpop.f32.mrb[0].mxu1 }
 0x105   :  { %v325_v43 = vpop.f32.mrb[0].mxu0  ;;  %392 = vst [vmem:[%s818_s2 + $0x10] sm:$0xff] %v376_v45  ;;  %v378_v48 = vpop.f32.mrb[1].mxu1  ;;  %v426_v51 = vmul.f32 %v376_v45, %v376_v45 }
 0x106   :  { %390 = vst [vmem:[%s818_s2] sm:$0xff] %v325_v43  ;;  %v424_v44 = vmul.f32 %v325_v43, %v325_v43  ;;  %v327_v46 = vpop.f32.mrb[1].mxu0  ;;  %v379_v53 = vpop.f32.mrb[2].mxu1 }
 0x107   :  { %391 = vst [vmem:[%s818_s2 + $0x8] sm:$0xff] %v327_v46  ;;  %v425_v47 = vmul.f32 %v327_v46, %v327_v46  ;;  %v329_v49 = vpop.f32.mrb[2].mxu0  ;;  %v402_v50 = vadd.f32 %v327_v46, %v325_v43  ;;  %395 = vst [vmem:[%s818_s2 + $0x28] sm:$0xff] %v379_v53  ;;  %v381_v56 = vpop.f32.mrb[3].mxu1  ;;  %v429_v62 = vmul.f32 %v379_v53, %v379_v53 }
 0x108   :  { %393 = vst [vmem:[%s818_s2 + $0x18] sm:$0xff] %v329_v49  ;;  %v427_v52 = vmul.f32 %v329_v49, %v329_v49  ;;  %v331_v54 = vpop.f32.mrb[3].mxu0 }
 0x109   :  { %394 = vst [vmem:[%s818_s2 + $0x20] sm:$0xff] %v331_v54  ;;  %v428_v55 = vmul.f32 %v331_v54, %v331_v54  ;;  %v403_v57 = vadd.f32 %v402_v50, %v376_v45  ;;  %v433_v58 = vadd.f32 %v425_v47, %v424_v44  ;;  %v406_v59 = vadd.f32 %v331_v54, %v329_v49 }
 0x10b   :  { %404 = vadd.xlane.f32.xlu0 %v403_v57  ;;  %v434_v60 = vadd.f32 %v433_v58, %v426_v51  ;;  %v407_v61 = vadd.f32 %v406_v59, %v379_v53  ;;  %v437_v63 = vadd.f32 %v428_v55, %v427_v52 }
 0x10c   :  { %v384_v2 = vpop.f32.mrb[4].mxu1 }
 0x10d   :  { %435 = vadd.xlane.f32.xlu1 %v434_v60  ;;  %v335_v0 = vpop.f32.mrb[4].mxu0  ;;  %v438_v1 = vadd.f32 %v437_v63, %v429_v62  ;;  %398 = vst [vmem:[%s818_s2 + $0x40] sm:$0xff] %v384_v2  ;;  %v386_v6 = vpop.f32.mrb[5].mxu1  ;;  %v432_v9 = vmul.f32 %v384_v2, %v384_v2 }
 0x10e   :  { %396 = vst [vmem:[%s818_s2 + $0x30] sm:$0xff] %v335_v0  ;;  %v430_v3 = vmul.f32 %v335_v0, %v335_v0  ;;  %v337_v4 = vpop.f32.mrb[5].mxu0  ;;  %v387_v10 = vpop.f32.mrb[6].mxu1 }
 0x10f   :  { %397 = vst [vmem:[%s818_s2 + $0x38] sm:$0xff] %v337_v4  ;;  %v431_v5 = vmul.f32 %v337_v4, %v337_v4  ;;  %408 = vadd.xlane.f32.xlu0 %v407_v61  ;;  %v339_v7 = vpop.f32.mrb[6].mxu0  ;;  %v410_v8 = vadd.f32 %v337_v4, %v335_v0  ;;  %v388_v12 = vpop.f32.mrb[7].mxu1 }
 0x110   :  { %v340_v11 = vpop.f32.mrb[7].mxu0 }
 0x111   :  { %v411_v13 = vadd.f32 %v410_v8, %v384_v2  ;;  %v441_v14 = vadd.f32 %v431_v5, %v430_v3 }
 0x113   :  { %439 = vadd.xlane.f32.xlu0 %v438_v1  ;;  %412 = vadd.xlane.f32.xlu1 %v411_v13  ;;  %v442_v15 = vadd.f32 %v441_v14, %v432_v9 }
 0x117   :  { %443 = vadd.xlane.f32.xlu1 %v442_v15 }
 0x198   :  { %v405_v17 = vpop.xlane.xlu0 %404 }
 0x199   :  { %v414_v19 = vadd.f32 %v405_v17, %v399_v16 }
 0x19a   :  { %v436_v20 = vpop.xlane.xlu1 %435 }
 0x19b   :  { %418 = vst.msk [vmem:[%s817_s3] sm:$0xff] %vm19_vm1, %v414_v19  ;;  %v445_v22 = vadd.f32 %v436_v20, %v421_v18 }
 0x19c   :  { %v409_v23 = vpop.xlane.xlu0 %408 }
 0x19d   :  { %448 = vst.msk [vmem:[%s819_s4] sm:$0xff] %vm19_vm1, %v445_v22  ;;  %v415_v24 = vadd.f32 %v409_v23, %v400_v21 }
 0x19f   :  { %419 = vst.msk [vmem:[%s817_s3 + $0x8] sm:$0xff] %vm19_vm1, %v415_v24 }
 0x1a0   :  { %v440_v27 = vpop.xlane.xlu0 %439  ;;  %v413_v28 = vpop.xlane.xlu1 %412 }
 0x1a1   :  { %v446_v29 = vadd.f32 %v440_v27, %v422_v25  ;;  %v416_v30 = vadd.f32 %v413_v28, %v401_v26 }
 0x1a3   :  { %449 = vst.msk [vmem:[%s819_s4 + $0x8] sm:$0xff] %vm19_vm1, %v446_v29  ;;  %420 = vst.msk [vmem:[%s817_s3 + $0x10] sm:$0xff] %vm19_vm1, %v416_v30 }
 0x1a4   :  { %v444_v32 = vpop.xlane.xlu1 %443 }
 0x1a5   :  { %v447_v33 = vadd.f32 %v444_v32, %v423_v31 }
 0x1a7   :  { %450 = vst.msk [vmem:[%s819_s4 + $0x10] sm:$0xff] %vm19_vm1, %v447_v33 }

// kernel: discriminator_forward.10
= control target key start
LH: loop header
LB: loop body
LE: loop exit
PB: predicated region body
PF: predicated region fallthrough
CT: control target
= control target key end

     0   :  { %v162_v0 = vmov 0   ;;  %s246_s1 = inlined_call_operand.vmem [shape: f32[24,1], index: 1, kind: input, shape index: {}]   ;;  %s247_s2 = inlined_call_operand.vmem [shape: f32[24,1], index: 2, kind: input, shape index: {}]   ;;  %s248_s0 = inlined_call_operand.vmem [shape: f32[24,384], index: 0, kind: input, shape index: {}]   ;;  %s249_s3 = inlined_call_operand.vmem [shape: bf16[24,384], index: 3, kind: output, shape index: {}]  }
   0x1   :  { %161 = vset.pattern.permute.xlu1 %v162_v0  ;;  %160 = vset.pattern.permute.xlu0 %v162_v0  ;;  %v25_v1 = vld [vmem:[%s246_s1 + $0x10] sm:$0xff]  ;;  %v23_v2 = vld [vmem:[%s246_s1] sm:$0xff]  ;;  %v24_v4 = vld [vmem:[%s246_s1 + $0x8] sm:$0xff] }
   0x2   :  { %38 = vperm.xlu1 %161, %v25_v1   ;;  %28 = vperm.xlu0 %160, %v23_v2   ;;  %v50_v3 = vld [vmem:[%s247_s2] sm:$0xff]  ;;  %v52_v5 = vld [vmem:[%s247_s2 + $0x10] sm:$0xff]  ;;  %v51_v6 = vld [vmem:[%s247_s2 + $0x8] sm:$0xff] }
   0x3   :  { %v14_v9 = vld [vmem:[%s248_s0] sm:$0xff]  ;;  %v15_v10 = vld [vmem:[%s248_s0 + $0x8] sm:$0xff]  ;;  %v16_v11 = vld [vmem:[%s248_s0 + $0x10] sm:$0xff] }
   0x4   :  { %v20_v12 = vld [vmem:[%s248_s0 + $0x30] sm:$0xff]  ;;  %v21_v13 = vld [vmem:[%s248_s0 + $0x38] sm:$0xff]  ;;  %v22_v14 = vld [vmem:[%s248_s0 + $0x40] sm:$0xff] }
   0x5   :  { %v17_v18 = vld [vmem:[%s248_s0 + $0x18] sm:$0xff]  ;;  %v18_v24 = vld [vmem:[%s248_s0 + $0x20] sm:$0xff]  ;;  %v19_v25 = vld [vmem:[%s248_s0 + $0x28] sm:$0xff] }
   0x6   :  { %55 = vperm.xlu1 %161, %v50_v3   ;;  %33 = vperm.xlu0 %160, %v24_v4  }
   0xa   :  { %65 = vperm.xlu1 %161, %v52_v5   ;;  %60 = vperm.xlu0 %160, %v51_v6  }
  0x81   :  { %v39_v7 = vpop.permute.xlu1 %38  ;;  %v29_v8 = vpop.permute.xlu0 %28 }
  0x82   :  { %v41_v15 = vmul.f32 %v29_v8, %v14_v9  ;;  %v42_v16 = vmul.f32 %v29_v8, %v15_v10  ;;  %v43_v17 = vmul.f32 %v29_v8, %v16_v11  ;;  %v47_v26 = vmul.f32 %v39_v7, %v20_v12 }
  0x83   :  { %v48_v27 = vmul.f32 %v39_v7, %v21_v13  ;;  %v49_v28 = vmul.f32 %v39_v7, %v22_v14 }
  0x85   :  { %v56_v19 = vpop.permute.xlu1 %55  ;;  %v34_v20 = vpop.permute.xlu0 %33 }
  0x86   :  { %v68_v21 = vadd.f32 %v56_v19, %v41_v15  ;;  %v69_v22 = vadd.f32 %v56_v19, %v42_v16  ;;  %v70_v23 = vadd.f32 %v56_v19, %v43_v17  ;;  %v44_v29 = vmul.f32 %v34_v20, %v17_v18 }
  0x87   :  { %v45_v33 = vmul.f32 %v34_v20, %v18_v24  ;;  %v46_v34 = vmul.f32 %v34_v20, %v19_v25 }
  0x88   :  { %vm77_vm0 = vcmp.ge.f32.partialorder %v68_v21, 0.0  ;;  %vm78_vm1 = vcmp.ge.f32.partialorder %v69_v22, 0.0  ;;  %vm79_vm2 = vcmp.ge.f32.partialorder %v70_v23, 0.0  ;;  %v86_v30 = vmul.f32 0.2, %v68_v21 }
  0x89   :  { %v87_v31 = vmul.f32 0.2, %v69_v22  ;;  %v88_v32 = vmul.f32 0.2, %v70_v23  ;;  %v66_v35 = vpop.permute.xlu1 %65  ;;  %v61_v36 = vpop.permute.xlu0 %60 }
  0x8a   :  { %v95_v37 = vsel %vm77_vm0, %v68_v21, %v86_v30  ;;  %v74_v38 = vadd.f32 %v66_v35, %v47_v26  ;;  %v75_v39 = vadd.f32 %v66_v35, %v48_v27  ;;  %v76_v40 = vadd.f32 %v66_v35, %v49_v28 }
  0x8b   :  { %v96_v41 = vsel %vm78_vm1, %v69_v22, %v87_v31  ;;  %v97_v42 = vsel %vm79_vm2, %v70_v23, %v88_v32  ;;  %v71_v43 = vadd.f32 %v61_v36, %v44_v29  ;;  %v72_v44 = vadd.f32 %v61_v36, %v45_v33 }
  0x8c   :  { %v153_v45 = vpack.c.bf16 %v96_v41, %v95_v37  ;;  %v154_v46 = vpack.c.bf16 %v97_v42, %v97_v42  ;;  %vm83_vm3 = vcmp.ge.f32.partialorder %v74_v38, 0.0  ;;  %vm84_vm4 = vcmp.ge.f32.partialorder %v75_v39, 0.0 }
  0x8d   :  { %vm85_vm5 = vcmp.ge.f32.partialorder %v76_v40, 0.0  ;;  %v92_v47 = vmul.f32 0.2, %v74_v38  ;;  %v93_v48 = vmul.f32 0.2, %v75_v39  ;;  %v73_v49 = vadd.f32 %v61_v36, %v46_v34 }
  0x8e   :  { %137 = vst [vmem:[%s249_s3] sm:$0xff] %v153_v45  ;;  %138 = vst [vmem:[%s249_s3 + $0x8] sm:$0xf] %v154_v46  ;;  %v94_v50 = vmul.f32 0.2, %v76_v40  ;;  %vm80_vm6 = vcmp.ge.f32.partialorder %v71_v43, 0.0  ;;  %vm81_vm7 = vcmp.ge.f32.partialorder %v72_v44, 0.0 }
  0x8f   :  { %v89_v51 = vmul.f32 0.2, %v71_v43  ;;  %v101_v52 = vsel %vm83_vm3, %v74_v38, %v92_v47  ;;  %v102_v53 = vsel %vm84_vm4, %v75_v39, %v93_v48  ;;  %vm82_vm8 = vcmp.ge.f32.partialorder %v73_v49, 0.0 }
  0x90   :  { %v90_v54 = vmul.f32 0.2, %v72_v44  ;;  %v103_v55 = vsel %vm85_vm5, %v76_v40, %v94_v50  ;;  %v157_v56 = vpack.c.bf16 %v102_v53, %v101_v52  ;;  %v91_v57 = vmul.f32 0.2, %v73_v49 }
  0x91   :  { %v98_v58 = vsel %vm80_vm6, %v71_v43, %v89_v51  ;;  %v158_v59 = vpack.c.bf16 %v103_v55, %v103_v55 }
  0x92   :  { %v99_v60 = vsel %vm81_vm7, %v72_v44, %v90_v54  ;;  %141 = vst [vmem:[%s249_s3 + $0x18] sm:$0xff] %v157_v56  ;;  %v100_v61 = vsel %vm82_vm8, %v73_v49, %v91_v57 }
  0x93   :  { %v155_v62 = vpack.c.bf16 %v99_v60, %v98_v58  ;;  %142 = vst [vmem:[%s249_s3 + $0x20] sm:$0xf] %v158_v59  ;;  %v156_v63 = vpack.c.bf16 %v100_v61, %v100_v61 }
  0x95   :  { %139 = vst [vmem:[%s249_s3 + $0xc] sm:$0xff] %v155_v62  ;;  %140 = vst [vmem:[%s249_s3 + $0x14] sm:$0xf] %v156_v63 }

// kernel: discriminator_forward.11
= control target key start
LH: loop header
LB: loop body
LE: loop exit
PB: predicated region body
PF: predicated region fallthrough
CT: control target
= control target key end

     0   :  { %v640_v1 = vmov 0.0   ;;  %vm641_vm0 = vmmov 0   ;;  %vm19_vm1 = vcmask 7168   ;;  %vm398_vm2 = vcmask 785408   ;;  %s960_s1 = inlined_call_operand.vmem [shape: bf16[384,96], index: 1, kind: input, shape index: {}]   ;;  %s961_s0 = inlined_call_operand.vmem [shape: bf16[48,384], index: 0, kind: input, shape index: {}]   ;;  %s962_s3 = inlined_call_operand.vmem [shape: f32[48,1], index: 3, kind: output, shape index: {1}]   ;;  %s963_s2 = inlined_call_operand.vmem [shape: f32[48,96], index: 2, kind: output, shape index: {0}]   ;;  %s964_s4 = inlined_call_operand.vmem [shape: f32[48,1], index: 4, kind: output, shape index: {2}]  }
   0x1   :  { %v604_v0 = vld [vmem:[%s960_s1 + $0x40] sm:$0xff]   ;;  %574 = vmatprep.subr.bf16.mxu1 %v640_v1  ;;  %590 = vmatprep.mubr.msk.bf16.mxu1 %vm641_vm0, %v640_v1  ;;  %v607_v4 = vld [vmem:[%s960_s1 + $0x48] sm:$0xff]   ;;  %v610_v7 = vld [vmem:[%s960_s1 + $0x50] sm:$0xff]   ;;  %20 = vst.msk [vmem:[%s962_s3] sm:$0xff] %vm19_vm1, %v640_v1 }
   0x2   :  { %v605_v2 = vld [vmem:[%s960_s1] sm:$0xff]   ;;  %529 = vmatprep.subr.bf16.mxu0 %v604_v0  ;;  %v608_v5 = vld [vmem:[%s960_s1 + $0x8] sm:$0xff]   ;;  %v611_v8 = vld [vmem:[%s960_s1 + $0x10] sm:$0xff]   ;;  %21 = vst.msk [vmem:[%s962_s3 + $0x8] sm:$0xff] %vm19_vm1, %v640_v1 }
   0x3   :  { %v606_v3 = vld [vmem:[%s960_s1 + $0x80] sm:$0xff]   ;;  %530 = vmatpush3.bf16.msra.mxu0 %v605_v2  ;;  %v609_v6 = vld [vmem:[%s960_s1 + $0x88] sm:$0xff]   ;;  %v612_v9 = vld [vmem:[%s960_s1 + $0x90] sm:$0xff]   ;;  %22 = vst.msk [vmem:[%s962_s3 + $0x10] sm:$0xff] %vm19_vm1, %v640_v1 }
   0x4   :  { %575 = vmatpush3.bf16.msra.mxu1 %v606_v3  ;;  %531 = vmatprep.subr.bf16.mxu0 %v607_v4  ;;  %v613_v10 = vld [vmem:[%s960_s1 + $0x58] sm:$0xff]   ;;  %v616_v13 = vld [vmem:[%s960_s1 + $0x60] sm:$0xff]   ;;  %v619_v16 = vld [vmem:[%s960_s1 + $0x68] sm:$0xff]   ;;  %23 = vst.msk [vmem:[%s962_s3 + $0x18] sm:$0xff] %vm19_vm1, %v640_v1 }
   0x5   :  { %576 = vmatprep.subr.bf16.mxu1 %v640_v1  ;;  %v614_v11 = vld [vmem:[%s960_s1 + $0x18] sm:$0xff]   ;;  %v617_v14 = vld [vmem:[%s960_s1 + $0x20] sm:$0xff]   ;;  %v620_v17 = vld [vmem:[%s960_s1 + $0x28] sm:$0xff]   ;;  %24 = vst.msk [vmem:[%s962_s3 + $0x20] sm:$0xff] %vm19_vm1, %v640_v1 }
   0x6   :  { %v615_v12 = vld [vmem:[%s960_s1 + $0x98] sm:$0xff]   ;;  %v618_v15 = vld [vmem:[%s960_s1 + $0xa0] sm:$0xff]   ;;  %v621_v18 = vld [vmem:[%s960_s1 + $0xa8] sm:$0xff]   ;;  %25 = vst.msk [vmem:[%s962_s3 + $0x28] sm:$0xff] %vm19_vm1, %v640_v1 }
   0x7   :  { %532 = vmatpush3.bf16.msra.mxu0 %v608_v5  ;;  %v622_v19 = vld [vmem:[%s960_s1 + $0x70] sm:$0xff]   ;;  %v625_v22 = vld [vmem:[%s960_s1 + $0x78] sm:$0xff]   ;;  %v628_v26 = vld [vmem:[%s961_s0] ss:$12 sps:$4 sm:$0xff]   ;;  %27 = vst.msk [vmem:[%s964_s4 + $0x8] sm:$0xff] %vm19_vm1, %v640_v1 }
   0x8   :  { %577 = vmatpush3.bf16.msra.mxu1 %v609_v6  ;;  %533 = vmatprep.subr.bf16.mxu0 %v610_v7  ;;  %v623_v20 = vld [vmem:[%s960_s1 + $0x30] sm:$0xff]   ;;  %v626_v24 = vld [vmem:[%s960_s1 + $0x38] sm:$0xff]   ;;  %v635_v30 = vld [vmem:[%s961_s0 + $0x20] ss:$12 sps:$4 sm:$0xff]   ;;  %26 = vst.msk [vmem:[%s964_s4] sm:$0xff] %vm19_vm1, %v640_v1 }
   0x9   :  { %578 = vmatprep.subr.bf16.mxu1 %v640_v1  ;;  %v624_v21 = vld [vmem:[%s960_s1 + $0xb0] sm:$0xff]   ;;  %v627_v25 = vld [vmem:[%s960_s1 + $0xb8] sm:$0xff]   ;;  %28 = vst.msk [vmem:[%s964_s4 + $0x10] sm:$0xff] %vm19_vm1, %v640_v1  ;;  %29 = vst.msk [vmem:[%s964_s4 + $0x18] sm:$0xff] %vm19_vm1, %v640_v1 }
   0xa   :  { %v630_v23 = vld [vmem:[%s961_s0 + $0x4] ss:$12 sps:$4 sm:$0xff]   ;;  %v631_v27 = vld [vmem:[%s961_s0 + $0x8] ss:$12 sps:$4 sm:$0xff]   ;;  %30 = vst.msk [vmem:[%s964_s4 + $0x20] sm:$0xff] %vm19_vm1, %v640_v1  ;;  %31 = vst.msk [vmem:[%s964_s4 + $0x28] sm:$0xff] %vm19_vm1, %v640_v1 }
   0xb   :  { %534 = vmatpush3.bf16.msra.mxu0 %v611_v8  ;;  %316 = vmatprep.mubr.bf16.mxu0 %v630_v23  ;;  %v632_v28 = vld [vmem:[%s961_s0 + $0x1c] ss:$12 sps:$4 sm:$0xff]   ;;  %v634_v29 = vld [vmem:[%s961_s0 + $0x18] ss:$12 sps:$4 sm:$0xff]   ;;  %v636_v31 = vld [vmem:[%s961_s0 + $0x34] ss:$12 sps:$4 sm:$0xff]  }
   0xc   :  { %579 = vmatpush3.bf16.msra.mxu1 %v612_v9  ;;  %535 = vmatprep.subr.bf16.mxu0 %v613_v10  ;;  %v638_v32 = vld [vmem:[%s961_s0 + $0x30] ss:$12 sps:$4 sm:$0xff]   ;;  %v639_v33 = vld [vmem:[%s961_s0 + $0x38] ss:$12 sps:$4 sm:$0xff]  }
   0xd   :  { %580 = vmatprep.subr.bf16.mxu1 %v640_v1 }
   0xf   :  { %536 = vmatpush3.bf16.msra.mxu0 %v614_v11 }
  0x10   :  { %581 = vmatpush3.bf16.msra.mxu1 %v615_v12  ;;  %537 = vmatprep.subr.bf16.mxu0 %v616_v13 }
  0x11   :  { %582 = vmatprep.subr.bf16.mxu1 %v640_v1 }
  0x13   :  { %538 = vmatpush3.bf16.msra.mxu0 %v617_v14 }
  0x14   :  { %583 = vmatpush3.bf16.msra.mxu1 %v618_v15  ;;  %539 = vmatprep.subr.bf16.mxu0 %v619_v16 }
  0x15   :  { %584 = vmatprep.subr.bf16.mxu1 %v640_v1 }
  0x17   :  { %540 = vmatpush3.bf16.msra.mxu0 %v620_v17 }
  0x18   :  { %585 = vmatpush3.bf16.msra.mxu1 %v621_v18  ;;  %541 = vmatprep.subr.bf16.mxu0 %v622_v19 }
  0x19   :  { %586 = vmatprep.subr.bf16.mxu1 %v640_v1 }
  0x1b   :  { %542 = vmatpush3.bf16.msra.mxu0 %v623_v20 }
  0x1c   :  { %587 = vmatpush3.bf16.msra.mxu1 %v624_v21  ;;  %543 = vmatprep.subr.bf16.mxu0 %v625_v22 }
  0x1d   :  { %588 = vmatprep.subr.bf16.mxu1 %v640_v1 }
  0x1f   :  { %544 = vmatpush3.bf16.msra.mxu0 %v626_v24  ;;  %v405_v24 = vld [vmem:[%s962_s3] sm:$0xff] }
  0x20   :  { %589 = vmatpush3.bf16.msra.mxu1 %v627_v25 }
  0x22   :  { %317 = vmatmul.mubr.bf16.vlgmr.msra.gmra.mrb[0].mxu0 %v628_v26 }
  0x23   :  { %591 = vmatmul.mubr.bf16.vlgmr.msra.gmra.mrb[0].mxu1 %v631_v27  ;;  %324 = vmatprep.mubr.bf16.mxu0 %v632_v28  ;;  %v443_v27 = vld [vmem:[%s964_s4 + $0x8] sm:$0xff] }
  0x24   :  { %594 = vmatprep.mubr.msk.bf16.mxu1 %vm641_vm0, %v640_v1  ;;  %v406_v28 = vld [vmem:[%s962_s3 + $0x8] sm:$0xff] }
  0x2a   :  { %325 = vmatmul.mubr.bf16.gmra.mrb[4].mxu0 %v634_v29 }
  0x2b   :  { %595 = vmatmul.mubr.bf16.gmra.mrb[4].mxu1 %v635_v30  ;;  %332 = vmatprep.mubr.bf16.mxu0 %v636_v31 }
  0x2c   :  { %598 = vmatprep.mubr.msk.bf16.mxu1 %vm641_vm0, %v640_v1 }
  0x32   :  { %333 = vmatmul.mubr.bf16.gmra.mrb[8].mxu0 %v638_v32 }
  0x33   :  { %599 = vmatmul.mubr.bf16.gmra.mrb[8].mxu1 %v639_v33  ;;  %v407_v33 = vld [vmem:[%s962_s3 + $0x10] sm:$0xff] }
  0xf5   :  { %v545_v34 = vpop.f32.mrb[0].mxu0 }
  0xf6   :  { %v375_v35 = vpop.f32.mrb[0].mxu1  ;;  %v546_v36 = vpop.f32.mrb[1].mxu0 }
  0xf7   :  { %v547_v37 = vadd.f32 %v546_v36, %v545_v34  ;;  %v592_v38 = vpop.f32.mrb[1].mxu1  ;;  %v548_v39 = vpop.f32.mrb[2].mxu0  ;;  %v442_v34 = vld [vmem:[%s964_s4] sm:$0xff] }
  0xf8   :  { %v378_v40 = vpop.f32.mrb[2].mxu1  ;;  %v549_v41 = vpop.f32.mrb[3].mxu0 }
  0xf9   :  { %v376_v42 = vadd.f32 %v547_v37, %v375_v35  ;;  %v550_v43 = vadd.f32 %v549_v41, %v548_v39  ;;  %v593_v44 = vpop.f32.mrb[3].mxu1  ;;  %v408_v39 = vld [vmem:[%s962_s3 + $0x18] sm:$0xff] }
  0xfb   :  { %399 = vst.msk [vmem:[%s963_s2] sm:$0xff] %vm398_vm2, %v376_v42  ;;  %v379_v45 = vadd.f32 %v550_v43, %v378_v40  ;;  %v411_v46 = vsel %vm398_vm2, %v376_v42, 0.0  ;;  %v448_v56 = vmul.f32 %v376_v42, %v376_v42  ;;  %v444_v40 = vld [vmem:[%s964_s4 + $0x10] sm:$0xff] }
  0xfc   :  { %412 = vadd.xlane.f32.xlu0 %v411_v46  ;;  %v409_v46 = vld [vmem:[%s962_s3 + $0x20] sm:$0xff] }
  0xfd   :  { %400 = vst.msk [vmem:[%s963_s2 + $0x8] sm:$0xff] %vm398_vm2, %v379_v45  ;;  %v551_v47 = vpop.f32.mrb[4].mxu0  ;;  %v449_v48 = vmul.f32 %v379_v45, %v379_v45  ;;  %v414_v55 = vsel %vm398_vm2, %v379_v45, 0.0  ;;  %v454_v0 = vsel %vm398_vm2, %v448_v56, 0.0  ;;  %v445_v45 = vld [vmem:[%s964_s4 + $0x18] sm:$0xff] }
  0xfe   :  { %v383_v49 = vpop.f32.mrb[4].mxu1  ;;  %v552_v50 = vpop.f32.mrb[5].mxu0 }
  0xff   :  { %v553_v51 = vadd.f32 %v552_v50, %v551_v47  ;;  %v596_v52 = vpop.f32.mrb[5].mxu1  ;;  %v554_v53 = vpop.f32.mrb[6].mxu0  ;;  %v457_v54 = vsel %vm398_vm2, %v449_v48, 0.0 }
 0x100   :  { %v386_v57 = vpop.f32.mrb[6].mxu1  ;;  %v555_v58 = vpop.f32.mrb[7].mxu0  ;;  %458 = vadd.xlane.f32.xlu1 %v457_v54  ;;  %415 = vadd.xlane.f32.xlu0 %v414_v55  ;;  %v446_v52 = vld [vmem:[%s964_s4 + $0x20] sm:$0xff] }
 0x101   :  { %v384_v59 = vadd.f32 %v553_v51, %v383_v49  ;;  %v556_v60 = vadd.f32 %v555_v58, %v554_v53  ;;  %v597_v61 = vpop.f32.mrb[7].mxu1  ;;  %v410_v51 = vld [vmem:[%s962_s3 + $0x28] sm:$0xff] }
 0x103   :  { %401 = vst.msk [vmem:[%s963_s2 + $0x10] sm:$0xff] %vm398_vm2, %v384_v59  ;;  %v387_v62 = vadd.f32 %v556_v60, %v386_v57  ;;  %v417_v63 = vsel %vm398_vm2, %v384_v59, 0.0  ;;  %v450_v2 = vmul.f32 %v384_v59, %v384_v59  ;;  %v447_v57 = vld [vmem:[%s964_s4 + $0x28] sm:$0xff] }
 0x104   :  { %418 = vadd.xlane.f32.xlu1 %v417_v63  ;;  %455 = vadd.xlane.f32.xlu0 %v454_v0 }
 0x105   :  { %402 = vst.msk [vmem:[%s963_s2 + $0x18] sm:$0xff] %vm398_vm2, %v387_v62  ;;  %v557_v3 = vpop.f32.mrb[8].mxu0  ;;  %v420_v9 = vsel %vm398_vm2, %v387_v62, 0.0  ;;  %v460_v10 = vsel %vm398_vm2, %v450_v2, 0.0  ;;  %v451_v11 = vmul.f32 %v387_v62, %v387_v62 }
 0x106   :  { %v558_v4 = vpop.f32.mrb[9].mxu0  ;;  %v391_v5 = vpop.f32.mrb[8].mxu1 }
 0x107   :  { %v559_v6 = vadd.f32 %v558_v4, %v557_v3  ;;  %v560_v7 = vpop.f32.mrb[10].mxu0  ;;  %v600_v8 = vpop.f32.mrb[9].mxu1  ;;  %v463_v18 = vsel %vm398_vm2, %v451_v11, 0.0 }
 0x108   :  { %v561_v12 = vpop.f32.mrb[11].mxu0  ;;  %421 = vadd.xlane.f32.xlu1 %v420_v9  ;;  %461 = vadd.xlane.f32.xlu0 %v460_v10  ;;  %v394_v13 = vpop.f32.mrb[10].mxu1 }
 0x109   :  { %v392_v14 = vadd.f32 %v559_v6, %v391_v5  ;;  %v562_v15 = vadd.f32 %v561_v12, %v560_v7  ;;  %v601_v16 = vpop.f32.mrb[11].mxu1 }
 0x10b   :  { %403 = vst.msk [vmem:[%s963_s2 + $0x20] sm:$0xff] %vm398_vm2, %v392_v14  ;;  %v395_v17 = vadd.f32 %v562_v15, %v394_v13  ;;  %v423_v19 = vsel %vm398_vm2, %v392_v14, 0.0  ;;  %v452_v20 = vmul.f32 %v392_v14, %v392_v14 }
 0x10c   :  { %464 = vadd.xlane.f32.xlu1 %v463_v18  ;;  %424 = vadd.xlane.f32.xlu0 %v423_v19 }
 0x10d   :  { %404 = vst.msk [vmem:[%s963_s2 + $0x28] sm:$0xff] %vm398_vm2, %v395_v17  ;;  %v466_v1 = vsel %vm398_vm2, %v452_v20, 0.0  ;;  %v426_v21 = vsel %vm398_vm2, %v395_v17, 0.0  ;;  %v453_v22 = vmul.f32 %v395_v17, %v395_v17 }
 0x10f   :  { %v469_v23 = vsel %vm398_vm2, %v453_v22, 0.0 }
 0x110   :  { %427 = vadd.xlane.f32.xlu1 %v426_v21  ;;  %467 = vadd.xlane.f32.xlu0 %v466_v1 }
 0x114   :  { %470 = vadd.xlane.f32.xlu1 %v469_v23 }
 0x189   :  { %v413_v25 = vpop.xlane.xlu0 %412 }
 0x18a   :  { %v429_v26 = vadd.f32 %v413_v25, %v405_v24 }
 0x18c   :  { %436 = vst.msk [vmem:[%s962_s3] sm:$0xff] %vm19_vm1, %v429_v26 }
 0x18d   :  { %v459_v29 = vpop.xlane.xlu1 %458  ;;  %v416_v30 = vpop.xlane.xlu0 %415 }
 0x18e   :  { %v473_v31 = vadd.f32 %v459_v29, %v443_v27  ;;  %v430_v32 = vadd.f32 %v416_v30, %v406_v28 }
 0x190   :  { %479 = vst.msk [vmem:[%s964_s4 + $0x8] sm:$0xff] %vm19_vm1, %v473_v31  ;;  %437 = vst.msk [vmem:[%s962_s3 + $0x8] sm:$0xff] %vm19_vm1, %v430_v32 }
 0x191   :  { %v419_v35 = vpop.xlane.xlu1 %418  ;;  %v456_v36 = vpop.xlane.xlu0 %455 }
 0x192   :  { %v431_v37 = vadd.f32 %v419_v35, %v407_v33  ;;  %v472_v38 = vadd.f32 %v456_v36, %v442_v34 }
 0x194   :  { %438 = vst.msk [vmem:[%s962_s3 + $0x10] sm:$0xff] %vm19_vm1, %v431_v37  ;;  %478 = vst.msk [vmem:[%s964_s4] sm:$0xff] %vm19_vm1, %v472_v38 }
 0x195   :  { %v422_v41 = vpop.xlane.xlu1 %421  ;;  %v462_v42 = vpop.xlane.xlu0 %461 }
 0x196   :  { %v432_v43 = vadd.f32 %v422_v41, %v408_v39  ;;  %v474_v44 = vadd.f32 %v462_v42, %v444_v40 }
 0x198   :  { %439 = vst.msk [vmem:[%s962_s3 + $0x18] sm:$0xff] %vm19_vm1, %v432_v43  ;;  %480 = vst.msk [vmem:[%s964_s4 + $0x10] sm:$0xff] %vm19_vm1, %v474_v44 }
 0x199   :  { %v465_v47 = vpop.xlane.xlu1 %464  ;;  %v425_v48 = vpop.xlane.xlu0 %424 }
 0x19a   :  { %v475_v49 = vadd.f32 %v465_v47, %v445_v45  ;;  %v433_v50 = vadd.f32 %v425_v48, %v409_v46 }
 0x19c   :  { %481 = vst.msk [vmem:[%s964_s4 + $0x18] sm:$0xff] %vm19_vm1, %v475_v49  ;;  %440 = vst.msk [vmem:[%s962_s3 + $0x20] sm:$0xff] %vm19_vm1, %v433_v50 }
 0x19d   :  { %v428_v53 = vpop.xlane.xlu1 %427  ;;  %v468_v54 = vpop.xlane.xlu0 %467 }
 0x19e   :  { %v434_v55 = vadd.f32 %v428_v53, %v410_v51  ;;  %v476_v56 = vadd.f32 %v468_v54, %v446_v52 }
 0x1a0   :  { %441 = vst.msk [vmem:[%s962_s3 + $0x28] sm:$0xff] %vm19_vm1, %v434_v55  ;;  %482 = vst.msk [vmem:[%s964_s4 + $0x20] sm:$0xff] %vm19_vm1, %v476_v56 }
 0x1a1   :  { %v471_v58 = vpop.xlane.xlu1 %470 }
 0x1a2   :  { %v477_v59 = vadd.f32 %v471_v58, %v447_v57 }
 0x1a4   :  { %483 = vst.msk [vmem:[%s964_s4 + $0x28] sm:$0xff] %vm19_vm1, %v477_v59 }

// kernel: discriminator_forward.12
= control target key start
LH: loop header
LB: loop body
LE: loop exit
PB: predicated region body
PF: predicated region fallthrough
CT: control target
= control target key end

     0   :  { %v172_v0 = vmov 0   ;;  %vm146_vm2 = vcmask 781312   ;;  %s271_s1 = inlined_call_operand.vmem [shape: f32[48,1], index: 1, kind: input, shape index: {}]   ;;  %s272_s2 = inlined_call_operand.vmem [shape: f32[48,1], index: 2, kind: input, shape index: {}]   ;;  %s273_s0 = inlined_call_operand.vmem [shape: f32[48,96], index: 0, kind: input, shape index: {}]   ;;  %s274_s3 = inlined_call_operand.vmem [shape: bf16[48,96], index: 3, kind: output, shape index: {}]  }
   0x1   :  { %171 = vset.pattern.permute.xlu1 %v172_v0  ;;  %170 = vset.pattern.permute.xlu0 %v172_v0  ;;  %v22_v1 = vld [vmem:[%s271_s1 + $0x10] sm:$0xff]  ;;  %v20_v2 = vld [vmem:[%s271_s1] sm:$0xff]  ;;  %v23_v3 = vld [vmem:[%s271_s1 + $0x18] sm:$0xff] }
   0x2   :  { %38 = vperm.xlu1 %171, %v22_v1   ;;  %28 = vperm.xlu0 %170, %v20_v2   ;;  %v21_v4 = vld [vmem:[%s271_s1 + $0x8] sm:$0xff]  ;;  %v24_v6 = vld [vmem:[%s271_s1 + $0x20] sm:$0xff]  ;;  %v65_v9 = vld [vmem:[%s272_s2 + $0x18] sm:$0xff] }
   0x3   :  { %v25_v5 = vld [vmem:[%s271_s1 + $0x28] sm:$0xff]  ;;  %v62_v8 = vld [vmem:[%s272_s2] sm:$0xff]  ;;  %v64_v10 = vld [vmem:[%s272_s2 + $0x10] sm:$0xff] }
   0x4   :  { %v63_v7 = vld [vmem:[%s272_s2 + $0x8] sm:$0xff]  ;;  %v66_v12 = vld [vmem:[%s272_s2 + $0x20] sm:$0xff]  ;;  %v16_v21 = vld [vmem:[%s273_s0 + $0x10] sm:$0xff] }
   0x5   :  { %v67_v11 = vld [vmem:[%s272_s2 + $0x28] sm:$0xff]  ;;  %v14_v17 = vld [vmem:[%s273_s0] sm:$0xff]  ;;  %v17_v23 = vld [vmem:[%s273_s0 + $0x18] sm:$0xff] }
   0x6   :  { %43 = vperm.xlu1 %171, %v23_v3   ;;  %33 = vperm.xlu0 %170, %v21_v4   ;;  %v15_v18 = vld [vmem:[%s273_s0 + $0x8] sm:$0xff]  ;;  %v18_v32 = vld [vmem:[%s273_s0 + $0x20] sm:$0xff] }
   0x7   :  { %v19_v31 = vld [vmem:[%s273_s0 + $0x28] sm:$0xff] }
   0xa   :  { %53 = vperm.xlu1 %171, %v25_v5   ;;  %48 = vperm.xlu0 %170, %v24_v6  }
   0xe   :  { %75 = vperm.xlu1 %171, %v63_v7   ;;  %70 = vperm.xlu0 %170, %v62_v8  }
  0x12   :  { %85 = vperm.xlu1 %171, %v65_v9   ;;  %80 = vperm.xlu0 %170, %v64_v10  }
  0x16   :  { %95 = vperm.xlu1 %171, %v67_v11   ;;  %90 = vperm.xlu0 %170, %v66_v12  }
  0x81   :  { %v39_v13 = vpop.permute.xlu1 %38  ;;  %v29_v14 = vpop.permute.xlu0 %28 }
  0x82   :  { %v56_v22 = vmul.f32 %v29_v14, %v14_v17  ;;  %v58_v29 = vmul.f32 %v39_v13, %v16_v21 }
  0x85   :  { %v44_v15 = vpop.permute.xlu1 %43  ;;  %v34_v16 = vpop.permute.xlu0 %33 }
  0x86   :  { %v57_v24 = vmul.f32 %v34_v16, %v15_v18  ;;  %v59_v30 = vmul.f32 %v44_v15, %v17_v23 }
  0x89   :  { %v54_v19 = vpop.permute.xlu1 %53  ;;  %v49_v20 = vpop.permute.xlu0 %48 }
  0x8a   :  { %v61_v41 = vmul.f32 %v54_v19, %v19_v31  ;;  %v60_v42 = vmul.f32 %v49_v20, %v18_v32 }
  0x8d   :  { %v76_v25 = vpop.permute.xlu1 %75  ;;  %v71_v26 = vpop.permute.xlu0 %70 }
  0x8e   :  { %v99_v27 = vadd.f32 %v76_v25, %v57_v24  ;;  %v98_v28 = vadd.f32 %v71_v26, %v56_v22 }
  0x90   :  { %vm105_vm0 = vcmp.ge.f32.partialorder %v99_v27, 0.0  ;;  %v111_v33 = vmul.f32 0.2, %v99_v27  ;;  %vm104_vm1 = vcmp.ge.f32.partialorder %v98_v28, 0.0  ;;  %v110_v34 = vmul.f32 0.2, %v98_v28 }
  0x91   :  { %v86_v35 = vpop.permute.xlu1 %85  ;;  %v81_v36 = vpop.permute.xlu0 %80 }
  0x92   :  { %v117_v37 = vsel %vm105_vm0, %v99_v27, %v111_v33  ;;  %v116_v38 = vsel %vm104_vm1, %v98_v28, %v110_v34  ;;  %v101_v39 = vadd.f32 %v86_v35, %v59_v30  ;;  %v100_v40 = vadd.f32 %v81_v36, %v58_v29 }
  0x93   :  { %v164_v43 = vpack.c.bf16 %v117_v37, %v117_v37  ;;  %v163_v44 = vpack.c.bf16 %v116_v38, %v116_v38 }
  0x94   :  { %vm107_vm3 = vcmp.ge.f32.partialorder %v101_v39, 0.0  ;;  %v113_v45 = vmul.f32 0.2, %v101_v39  ;;  %vm106_vm4 = vcmp.ge.f32.partialorder %v100_v40, 0.0  ;;  %v112_v46 = vmul.f32 0.2, %v100_v40 }
  0x95   :  { %148 = vst.msk [vmem:[%s274_s3 + $0x4] sm:$0xf] %vm146_vm2, %v164_v43  ;;  %147 = vst.msk [vmem:[%s274_s3] sm:$0xf] %vm146_vm2, %v163_v44  ;;  %v96_v47 = vpop.permute.xlu1 %95  ;;  %v91_v48 = vpop.permute.xlu0 %90 }
  0x96   :  { %v119_v49 = vsel %vm107_vm3, %v101_v39, %v113_v45  ;;  %v118_v50 = vsel %vm106_vm4, %v100_v40, %v112_v46  ;;  %v103_v51 = vadd.f32 %v96_v47, %v61_v41  ;;  %v102_v52 = vadd.f32 %v91_v48, %v60_v42 }
  0x97   :  { %v166_v53 = vpack.c.bf16 %v119_v49, %v119_v49  ;;  %v165_v54 = vpack.c.bf16 %v118_v50, %v118_v50 }
  0x98   :  { %vm109_vm5 = vcmp.ge.f32.partialorder %v103_v51, 0.0  ;;  %v115_v55 = vmul.f32 0.2, %v103_v51  ;;  %vm108_vm6 = vcmp.ge.f32.partialorder %v102_v52, 0.0  ;;  %v114_v56 = vmul.f32 0.2, %v102_v52 }
  0x99   :  { %150 = vst.msk [vmem:[%s274_s3 + $0xc] sm:$0xf] %vm146_vm2, %v166_v53  ;;  %149 = vst.msk [vmem:[%s274_s3 + $0x8] sm:$0xf] %vm146_vm2, %v165_v54 }
  0x9a   :  { %v121_v57 = vsel %vm109_vm5, %v103_v51, %v115_v55  ;;  %v120_v58 = vsel %vm108_vm6, %v102_v52, %v114_v56 }
  0x9b   :  { %v168_v59 = vpack.c.bf16 %v121_v57, %v121_v57  ;;  %v167_v60 = vpack.c.bf16 %v120_v58, %v120_v58 }
  0x9d   :  { %152 = vst.msk [vmem:[%s274_s3 + $0x14] sm:$0xf] %vm146_vm2, %v168_v59  ;;  %151 = vst.msk [vmem:[%s274_s3 + $0x10] sm:$0xf] %vm146_vm2, %v167_v60 }

// kernel: discriminator_forward.14
= control target key start
LH: loop header
LB: loop body
LE: loop exit
PB: predicated region body
PF: predicated region fallthrough
CT: control target
= control target key end

     0   :  { %v322_v0 = vmov 0   ;;  %vm278_vm2 = vcmask 191488   ;;  %s511_s1 = inlined_call_operand.vmem [shape: f32[96,1], index: 1, kind: input, shape index: {}]   ;;  %s512_s2 = inlined_call_operand.vmem [shape: f32[96,1], index: 2, kind: input, shape index: {}]   ;;  %s513_s0 = inlined_call_operand.vmem [shape: f32[96,24], index: 0, kind: input, shape index: {}]   ;;  %s514_s3 = inlined_call_operand.vmem [shape: bf16[96,24], index: 3, kind: output, shape index: {}]  }
   0x1   :  { %321 = vset.pattern.permute.xlu1 %v322_v0  ;;  %320 = vset.pattern.permute.xlu0 %v322_v0  ;;  %v28_v1 = vld [vmem:[%s511_s1 + $0x10] sm:$0xff]  ;;  %v26_v2 = vld [vmem:[%s511_s1] sm:$0xff]  ;;  %v29_v3 = vld [vmem:[%s511_s1 + $0x18] sm:$0xff] }
   0x2   :  { %50 = vperm.xlu1 %321, %v28_v1   ;;  %40 = vperm.xlu0 %320, %v26_v2   ;;  %v27_v4 = vld [vmem:[%s511_s1 + $0x8] sm:$0xff]  ;;  %v30_v6 = vld [vmem:[%s511_s1 + $0x20] sm:$0xff]  ;;  %v33_v7 = vld [vmem:[%s511_s1 + $0x38] sm:$0xff] }
   0x3   :  { %v31_v5 = vld [vmem:[%s511_s1 + $0x28] sm:$0xff]  ;;  %v32_v8 = vld [vmem:[%s511_s1 + $0x30] sm:$0xff]  ;;  %v34_v10 = vld [vmem:[%s511_s1 + $0x40] sm:$0xff] }
   0x4   :  { %v35_v9 = vld [vmem:[%s511_s1 + $0x48] sm:$0xff]  ;;  %v37_v11 = vld [vmem:[%s511_s1 + $0x58] sm:$0xff]  ;;  %v36_v12 = vld [vmem:[%s511_s1 + $0x50] sm:$0xff] }
   0x5   :  { %v111_v13 = vld [vmem:[%s512_s2 + $0x8] sm:$0xff]  ;;  %v110_v14 = vld [vmem:[%s512_s2] sm:$0xff]  ;;  %v113_v15 = vld [vmem:[%s512_s2 + $0x18] sm:$0xff] }
   0x6   :  { %55 = vperm.xlu1 %321, %v29_v3   ;;  %45 = vperm.xlu0 %320, %v27_v4   ;;  %v112_v16 = vld [vmem:[%s512_s2 + $0x10] sm:$0xff]  ;;  %v115_v17 = vld [vmem:[%s512_s2 + $0x28] sm:$0xff]  ;;  %v114_v18 = vld [vmem:[%s512_s2 + $0x20] sm:$0xff] }
   0x7   :  { %v117_v19 = vld [vmem:[%s512_s2 + $0x38] sm:$0xff]  ;;  %v116_v20 = vld [vmem:[%s512_s2 + $0x30] sm:$0xff]  ;;  %v119_v21 = vld [vmem:[%s512_s2 + $0x48] sm:$0xff] }
   0x8   :  { %v118_v22 = vld [vmem:[%s512_s2 + $0x40] sm:$0xff]  ;;  %v121_v23 = vld [vmem:[%s512_s2 + $0x58] sm:$0xff]  ;;  %v120_v24 = vld [vmem:[%s512_s2 + $0x50] sm:$0xff] }
   0x9   :  { %v14_v35 = vld [vmem:[%s513_s0] sm:$0xff]  ;;  %v15_v36 = vld [vmem:[%s513_s0 + $0x8] sm:$0xff]  ;;  %v16_v39 = vld [vmem:[%s513_s0 + $0x10] sm:$0xff] }
   0xa   :  { %65 = vperm.xlu1 %321, %v31_v5   ;;  %60 = vperm.xlu0 %320, %v30_v6   ;;  %v17_v41 = vld [vmem:[%s513_s0 + $0x18] sm:$0xff]  ;;  %v19_v49 = vld [vmem:[%s513_s0 + $0x28] sm:$0xff]  ;;  %v18_v50 = vld [vmem:[%s513_s0 + $0x20] sm:$0xff] }
   0xb   :  { %v21_v61 = vld [vmem:[%s513_s0 + $0x38] sm:$0xff]  ;;  %v20_v62 = vld [vmem:[%s513_s0 + $0x30] sm:$0xff] }
   0xe   :  { %75 = vperm.xlu1 %321, %v33_v7   ;;  %70 = vperm.xlu0 %320, %v32_v8  }
  0x12   :  { %85 = vperm.xlu1 %321, %v35_v9   ;;  %80 = vperm.xlu0 %320, %v34_v10  }
  0x16   :  { %95 = vperm.xlu1 %321, %v37_v11   ;;  %90 = vperm.xlu0 %320, %v36_v12   ;;  %v23_v11 = vld [vmem:[%s513_s0 + $0x48] sm:$0xff]  ;;  %v22_v12 = vld [vmem:[%s513_s0 + $0x40] sm:$0xff] }
  0x1a   :  { %129 = vperm.xlu1 %321, %v111_v13   ;;  %124 = vperm.xlu0 %320, %v110_v14  }
  0x1e   :  { %139 = vperm.xlu1 %321, %v113_v15   ;;  %134 = vperm.xlu0 %320, %v112_v16  }
  0x22   :  { %149 = vperm.xlu1 %321, %v115_v17   ;;  %144 = vperm.xlu0 %320, %v114_v18  }
  0x26   :  { %159 = vperm.xlu1 %321, %v117_v19   ;;  %154 = vperm.xlu0 %320, %v116_v20  }
  0x2a   :  { %169 = vperm.xlu1 %321, %v119_v21   ;;  %164 = vperm.xlu0 %320, %v118_v22  }
  0x2e   :  { %179 = vperm.xlu1 %321, %v121_v23   ;;  %174 = vperm.xlu0 %320, %v120_v24  }
  0x81   :  { %v51_v25 = vpop.permute.xlu1 %50  ;;  %v41_v26 = vpop.permute.xlu0 %40 }
  0x82   :  { %v98_v40 = vmul.f32 %v41_v26, %v14_v35  ;;  %v100_v47 = vmul.f32 %v51_v25, %v16_v39  ;;  %v25_v25 = vld [vmem:[%s513_s0 + $0x58] sm:$0xff]  ;;  %v24_v26 = vld [vmem:[%s513_s0 + $0x50] sm:$0xff] }
  0x85   :  { %v56_v27 = vpop.permute.xlu1 %55  ;;  %v46_v28 = vpop.permute.xlu0 %45 }
  0x86   :  { %v99_v42 = vmul.f32 %v46_v28, %v15_v36  ;;  %v101_v48 = vmul.f32 %v56_v27, %v17_v41 }
  0x89   :  { %v66_v29 = vpop.permute.xlu1 %65  ;;  %v61_v30 = vpop.permute.xlu0 %60 }
  0x8a   :  { %v103_v59 = vmul.f32 %v66_v29, %v19_v49  ;;  %v102_v60 = vmul.f32 %v61_v30, %v18_v50 }
  0x8d   :  { %v76_v31 = vpop.permute.xlu1 %75  ;;  %v71_v32 = vpop.permute.xlu0 %70 }
  0x8e   :  { %v105_v9 = vmul.f32 %v76_v31, %v21_v61  ;;  %v104_v10 = vmul.f32 %v71_v32, %v20_v62 }
  0x91   :  { %v415_v33 = vpop.permute.xlu1 %85  ;;  %v417_v34 = vpop.permute.xlu0 %80 }
  0x92   :  { %v107_v23 = vmul.f32 %v415_v33, %v23_v11  ;;  %v106_v24 = vmul.f32 %v417_v34, %v22_v12 }
  0x95   :  { %v425_v37 = vpop.permute.xlu1 %95  ;;  %v427_v38 = vpop.permute.xlu0 %90 }
  0x96   :  { %v109_v39 = vmul.f32 %v425_v37, %v25_v25 }
  0x99   :  { %v130_v43 = vpop.permute.xlu1 %129  ;;  %v125_v44 = vpop.permute.xlu0 %124 }
  0x9a   :  { %v183_v45 = vadd.f32 %v130_v43, %v99_v42  ;;  %v182_v46 = vadd.f32 %v125_v44, %v98_v40  ;;  %v108_v40 = vmul.f32 %v427_v38, %v24_v26 }
  0x9c   :  { %vm195_vm0 = vcmp.ge.f32.partialorder %v183_v45, 0.0  ;;  %v207_v51 = vmul.f32 0.2, %v183_v45  ;;  %vm194_vm1 = vcmp.ge.f32.partialorder %v182_v46, 0.0  ;;  %v206_v52 = vmul.f32 0.2, %v182_v46 }
  0x9d   :  { %v140_v53 = vpop.permute.xlu1 %139  ;;  %v135_v54 = vpop.permute.xlu0 %134 }
  0x9e   :  { %v219_v55 = vsel %vm195_vm0, %v183_v45, %v207_v51  ;;  %v218_v56 = vsel %vm194_vm1, %v182_v46, %v206_v52  ;;  %v185_v57 = vadd.f32 %v140_v53, %v101_v48  ;;  %v184_v58 = vadd.f32 %v135_v54, %v100_v47 }
  0x9f   :  { %v308_v63 = vpack.c.bf16 %v219_v55, %v219_v55  ;;  %v307_v0 = vpack.c.bf16 %v218_v56, %v218_v56 }
  0xa0   :  { %vm197_vm3 = vcmp.ge.f32.partialorder %v185_v57, 0.0  ;;  %v209_v1 = vmul.f32 0.2, %v185_v57  ;;  %vm196_vm4 = vcmp.ge.f32.partialorder %v184_v58, 0.0  ;;  %v208_v2 = vmul.f32 0.2, %v184_v58 }
  0xa1   :  { %280 = vst.msk [vmem:[%s514_s3 + $0x4] sm:$0xf] %vm278_vm2, %v308_v63  ;;  %279 = vst.msk [vmem:[%s514_s3] sm:$0xf] %vm278_vm2, %v307_v0  ;;  %v150_v3 = vpop.permute.xlu1 %149  ;;  %v145_v4 = vpop.permute.xlu0 %144 }
  0xa2   :  { %v221_v5 = vsel %vm197_vm3, %v185_v57, %v209_v1  ;;  %v220_v6 = vsel %vm196_vm4, %v184_v58, %v208_v2  ;;  %v187_v7 = vadd.f32 %v150_v3, %v103_v59  ;;  %v186_v8 = vadd.f32 %v145_v4, %v102_v60 }
  0xa3   :  { %v310_v13 = vpack.c.bf16 %v221_v5, %v221_v5  ;;  %v309_v14 = vpack.c.bf16 %v220_v6, %v220_v6 }
  0xa4   :  { %vm199_vm5 = vcmp.ge.f32.partialorder %v187_v7, 0.0  ;;  %v211_v15 = vmul.f32 0.2, %v187_v7  ;;  %vm198_vm6 = vcmp.ge.f32.partialorder %v186_v8, 0.0  ;;  %v210_v16 = vmul.f32 0.2, %v186_v8 }
  0xa5   :  { %282 = vst.msk [vmem:[%s514_s3 + $0xc] sm:$0xf] %vm278_vm2, %v310_v13  ;;  %281 = vst.msk [vmem:[%s514_s3 + $0x8] sm:$0xf] %vm278_vm2, %v309_v14  ;;  %v160_v17 = vpop.permute.xlu1 %159  ;;  %v155_v18 = vpop.permute.xlu0 %154 }
  0xa6   :  { %v223_v19 = vsel %vm199_vm5, %v187_v7, %v211_v15  ;;  %v222_v20 = vsel %vm198_vm6, %v186_v8, %v210_v16  ;;  %v189_v21 = vadd.f32 %v160_v17, %v105_v9  ;;  %v188_v22 = vadd.f32 %v155_v18, %v104_v10 }
  0xa7   :  { %v312_v27 = vpack.c.bf16 %v223_v19, %v223_v19  ;;  %v311_v28 = vpack.c.bf16 %v222_v20, %v222_v20 }
  0xa8   :  { %vm201_vm7 = vcmp.ge.f32.partialorder %v189_v21, 0.0  ;;  %v213_v29 = vmul.f32 0.2, %v189_v21  ;;  %vm200_vm8 = vcmp.ge.f32.partialorder %v188_v22, 0.0  ;;  %v212_v30 = vmul.f32 0.2, %v188_v22 }
  0xa9   :  { %284 = vst.msk [vmem:[%s514_s3 + $0x14] sm:$0xf] %vm278_vm2, %v312_v27  ;;  %283 = vst.msk [vmem:[%s514_s3 + $0x10] sm:$0xf] %vm278_vm2, %v311_v28  ;;  %v170_v31 = vpop.permute.xlu1 %169  ;;  %v165_v32 = vpop.permute.xlu0 %164 }
  0xaa   :  { %v225_v33 = vsel %vm201_vm7, %v189_v21, %v213_v29  ;;  %v224_v34 = vsel %vm200_vm8, %v188_v22, %v212_v30  ;;  %v191_v35 = vadd.f32 %v170_v31, %v107_v23  ;;  %v190_v36 = vadd.f32 %v165_v32, %v106_v24 }
  0xab   :  { %v314_v41 = vpack.c.bf16 %v225_v33, %v225_v33  ;;  %v313_v42 = vpack.c.bf16 %v224_v34, %v224_v34 }
  0xac   :  { %vm203_vm9 = vcmp.ge.f32.partialorder %v191_v35, 0.0  ;;  %v215_v43 = vmul.f32 0.2, %v191_v35  ;;  %vm202_vm10 = vcmp.ge.f32.partialorder %v190_v36, 0.0  ;;  %v214_v44 = vmul.f32 0.2, %v190_v36 }
  0xad   :  { %286 = vst.msk [vmem:[%s514_s3 + $0x1c] sm:$0xf] %vm278_vm2, %v314_v41  ;;  %285 = vst.msk [vmem:[%s514_s3 + $0x18] sm:$0xf] %vm278_vm2, %v313_v42  ;;  %v180_v45 = vpop.permute.xlu1 %179  ;;  %v175_v37 = vpop.permute.xlu0 %174 }
  0xae   :  { %v227_v46 = vsel %vm203_vm9, %v191_v35, %v215_v43  ;;  %v226_v38 = vsel %vm202_vm10, %v190_v36, %v214_v44  ;;  %v193_v47 = vadd.f32 %v180_v45, %v109_v39  ;;  %v192_v48 = vadd.f32 %v175_v37, %v108_v40 }
  0xaf   :  { %v316_v49 = vpack.c.bf16 %v227_v46, %v227_v46  ;;  %v315_v50 = vpack.c.bf16 %v226_v38, %v226_v38 }
  0xb0   :  { %vm205_vm11 = vcmp.ge.f32.partialorder %v193_v47, 0.0  ;;  %v217_v51 = vmul.f32 0.2, %v193_v47  ;;  %vm204_vm12 = vcmp.ge.f32.partialorder %v192_v48, 0.0  ;;  %v216_v52 = vmul.f32 0.2, %v192_v48 }
  0xb1   :  { %288 = vst.msk [vmem:[%s514_s3 + $0x24] sm:$0xf] %vm278_vm2, %v316_v49  ;;  %287 = vst.msk [vmem:[%s514_s3 + $0x20] sm:$0xf] %vm278_vm2, %v315_v50 }
  0xb2   :  { %v229_v53 = vsel %vm205_vm11, %v193_v47, %v217_v51  ;;  %v228_v54 = vsel %vm204_vm12, %v192_v48, %v216_v52 }
  0xb3   :  { %v318_v55 = vpack.c.bf16 %v229_v53, %v229_v53  ;;  %v317_v56 = vpack.c.bf16 %v228_v54, %v228_v54 }
  0xb5   :  { %290 = vst.msk [vmem:[%s514_s3 + $0x2c] sm:$0xf] %vm278_vm2, %v318_v55  ;;  %289 = vst.msk [vmem:[%s514_s3 + $0x28] sm:$0xf] %vm278_vm2, %v317_v56 }

// kernel: discriminator_forward.13
= control target key start
LH: loop header
LB: loop body
LE: loop exit
PB: predicated region body
PF: predicated region fallthrough
CT: control target
= control target key end

     0   :  { %vm19_vm0 = vcmask 7168   ;;  %vm887_vm1 = vcmask 195584   ;;  %s2099_s1 = inlined_call_operand.vmem [shape: bf16[768,24], index: 1, kind: input, shape index: {}]   ;;  %s2100_s0 = inlined_call_operand.vmem [shape: bf16[96,768], index: 0, kind: input, shape index: {}]   ;;  %s2101_s3 = inlined_call_operand.vmem [shape: f32[96,1], index: 3, kind: output, shape index: {1}]   ;;  %s2102_s2 = inlined_call_operand.vmem [shape: f32[96,24], index: 2, kind: output, shape index: {0}]   ;;  %s2103_s4 = inlined_call_operand.vmem [shape: f32[96,1], index: 4, kind: output, shape index: {2}]  }
   0x1   :  { %v1326_v0 = vld [vmem:[%s2099_s1 + $0x40] sm:$0xff]   ;;  %v1330_v4 = vld [vmem:[%s2099_s1 + $0x48] sm:$0xff]   ;;  %v1334_v8 = vld [vmem:[%s2099_s1 + $0x50] sm:$0xff]  }
   0x2   :  { %v1327_v1 = vld [vmem:[%s2099_s1 + $0xc0] sm:$0xff]   ;;  %1153 = vmatprep.subr.bf16.mxu0 %v1326_v0  ;;  %v1331_v5 = vld [vmem:[%s2099_s1 + $0xc8] sm:$0xff]   ;;  %v1335_v9 = vld [vmem:[%s2099_s1 + $0xd0] sm:$0xff]  }
   0x3   :  { %v1328_v2 = vld [vmem:[%s2099_s1] sm:$0xff]   ;;  %1205 = vmatprep.subr.bf16.mxu1 %v1327_v1  ;;  %v1332_v6 = vld [vmem:[%s2099_s1 + $0x8] sm:$0xff]   ;;  %v1336_v10 = vld [vmem:[%s2099_s1 + $0x10] sm:$0xff]  }
   0x4   :  { %v1329_v3 = vld [vmem:[%s2099_s1 + $0x80] sm:$0xff]   ;;  %1154 = vmatpush3.bf16.msra.mxu0 %v1328_v2  ;;  %v1333_v7 = vld [vmem:[%s2099_s1 + $0x88] sm:$0xff]   ;;  %v1337_v11 = vld [vmem:[%s2099_s1 + $0x90] sm:$0xff]  }
   0x5   :  { %1206 = vmatpush3.bf16.msra.mxu1 %v1329_v3  ;;  %1155 = vmatprep.subr.bf16.mxu0 %v1330_v4  ;;  %v1338_v12 = vld [vmem:[%s2099_s1 + $0x58] sm:$0xff]   ;;  %v1342_v16 = vld [vmem:[%s2099_s1 + $0x60] sm:$0xff]   ;;  %v1346_v20 = vld [vmem:[%s2099_s1 + $0x68] sm:$0xff]  }
   0x6   :  { %1207 = vmatprep.subr.bf16.mxu1 %v1331_v5  ;;  %v1339_v13 = vld [vmem:[%s2099_s1 + $0xd8] sm:$0xff]   ;;  %v1343_v17 = vld [vmem:[%s2099_s1 + $0xe0] sm:$0xff]   ;;  %v1347_v21 = vld [vmem:[%s2099_s1 + $0xe8] sm:$0xff]  }
   0x7   :  { %v1340_v14 = vld [vmem:[%s2099_s1 + $0x18] sm:$0xff]   ;;  %v1344_v18 = vld [vmem:[%s2099_s1 + $0x20] sm:$0xff]   ;;  %v1348_v22 = vld [vmem:[%s2099_s1 + $0x28] sm:$0xff]  }
   0x8   :  { %1156 = vmatpush3.bf16.msra.mxu0 %v1332_v6  ;;  %v1341_v15 = vld [vmem:[%s2099_s1 + $0x98] sm:$0xff]   ;;  %v1345_v19 = vld [vmem:[%s2099_s1 + $0xa0] sm:$0xff]   ;;  %v1349_v23 = vld [vmem:[%s2099_s1 + $0xa8] sm:$0xff]  }
   0x9   :  { %1208 = vmatpush3.bf16.msra.mxu1 %v1333_v7  ;;  %1157 = vmatprep.subr.bf16.mxu0 %v1334_v8  ;;  %v1350_v24 = vld [vmem:[%s2099_s1 + $0x70] sm:$0xff]   ;;  %v1354_v28 = vld [vmem:[%s2099_s1 + $0x78] sm:$0xff]   ;;  %v1361_v34 = vld [vmem:[%s2100_s0 + $0x8] ss:$24 sps:$4 sm:$0xff]  }
   0xa   :  { %1209 = vmatprep.subr.bf16.mxu1 %v1335_v9  ;;  %v1351_v25 = vld [vmem:[%s2099_s1 + $0xf0] sm:$0xff]   ;;  %v1355_v29 = vld [vmem:[%s2099_s1 + $0xf8] sm:$0xff]   ;;  %v1363_v35 = vld [vmem:[%s2100_s0 + $0xc] ss:$24 sps:$4 sm:$0xff]  }
   0xb   :  { %v1352_v26 = vld [vmem:[%s2099_s1 + $0x30] sm:$0xff]   ;;  %v1356_v30 = vld [vmem:[%s2099_s1 + $0x38] sm:$0xff]   ;;  %v1364_v36 = vld [vmem:[%s2099_s1 + $0x140] sm:$0xff]   ;;  %757 = vmatprep.mubr.bf16.mxu1 %v1363_v35 }
   0xc   :  { %1158 = vmatpush3.bf16.msra.mxu0 %v1336_v10  ;;  %v1353_v27 = vld [vmem:[%s2099_s1 + $0xb0] sm:$0xff]   ;;  %v1357_v31 = vld [vmem:[%s2099_s1 + $0xb8] sm:$0xff]   ;;  %v1365_v37 = vld [vmem:[%s2099_s1 + $0x100] sm:$0xff]  }
   0xd   :  { %1210 = vmatpush3.bf16.msra.mxu1 %v1337_v11  ;;  %1159 = vmatprep.subr.bf16.mxu0 %v1338_v12  ;;  %v1358_v32 = vld [vmem:[%s2100_s0] ss:$24 sps:$4 sm:$0xff]   ;;  %v1360_v33 = vld [vmem:[%s2100_s0 + $0x4] ss:$24 sps:$4 sm:$0xff]   ;;  %v1366_v38 = vld [vmem:[%s2099_s1 + $0x148] sm:$0xff]  }
   0xe   :  { %1211 = vmatprep.subr.bf16.mxu1 %v1339_v13  ;;  %676 = vmatprep.mubr.bf16.mxu0 %v1360_v33  ;;  %v1367_v39 = vld [vmem:[%s2100_s0 + $0x34] ss:$24 sps:$4 sm:$0xff]   ;;  %v1372_v42 = vld [vmem:[%s2100_s0 + $0x30] ss:$24 sps:$4 sm:$0xff]   ;;  %v1376_v46 = vld [vmem:[%s2100_s0 + $0x64] ss:$24 sps:$4 sm:$0xff]  }
   0xf   :  { %v1369_v40 = vld [vmem:[%s2100_s0 + $0x3c] ss:$24 sps:$4 sm:$0xff]   ;;  %v1371_v41 = vld [vmem:[%s2099_s1 + $0x108] sm:$0xff]   ;;  %v1373_v43 = vld [vmem:[%s2100_s0 + $0x38] ss:$24 sps:$4 sm:$0xff]  }
  0x10   :  { %1160 = vmatpush3.bf16.msra.mxu0 %v1340_v14  ;;  %v1374_v44 = vld [vmem:[%s2099_s1 + $0x150] sm:$0xff]   ;;  %v1378_v47 = vld [vmem:[%s2100_s0 + $0x6c] ss:$24 sps:$4 sm:$0xff]   ;;  %v1380_v48 = vld [vmem:[%s2100_s0 + $0x60] ss:$24 sps:$4 sm:$0xff]  }
  0x11   :  { %1212 = vmatpush3.bf16.msra.mxu1 %v1341_v15  ;;  %1161 = vmatprep.subr.bf16.mxu0 %v1342_v16  ;;  %v1375_v45 = vld [vmem:[%s2099_s1 + $0x110] sm:$0xff]   ;;  %v1382_v49 = vld [vmem:[%s2099_s1 + $0x158] sm:$0xff]   ;;  %v1381_v51 = vld [vmem:[%s2100_s0 + $0x68] ss:$24 sps:$4 sm:$0xff]  }
  0x12   :  { %1213 = vmatprep.subr.bf16.mxu1 %v1343_v17  ;;  %v1383_v50 = vld [vmem:[%s2099_s1 + $0x118] sm:$0xff]   ;;  %v1384_v52 = vld [vmem:[%s2100_s0 + $0x94] ss:$24 sps:$4 sm:$0xff]   ;;  %v1390_v54 = vld [vmem:[%s2099_s1 + $0x160] sm:$0xff]  }
  0x13   :  { %v1386_v53 = vld [vmem:[%s2100_s0 + $0x9c] ss:$24 sps:$4 sm:$0xff]   ;;  %v1391_v55 = vld [vmem:[%s2099_s1 + $0x120] sm:$0xff]   ;;  %v1392_v56 = vld [vmem:[%s2099_s1 + $0x168] sm:$0xff]  }
  0x14   :  { %1162 = vmatpush3.bf16.msra.mxu0 %v1344_v18  ;;  %v1388_v57 = vld [vmem:[%s2100_s0 + $0x90] ss:$24 sps:$4 sm:$0xff]   ;;  %v1393_v59 = vld [vmem:[%s2100_s0 + $0xc4] ss:$24 sps:$4 sm:$0xff]   ;;  %v1398_v0 = vld [vmem:[%s2100_s0 + $0xc0] ss:$24 sps:$4 sm:$0xff]  }
  0x15   :  { %1214 = vmatpush3.bf16.msra.mxu1 %v1345_v19  ;;  %1163 = vmatprep.subr.bf16.mxu0 %v1346_v20  ;;  %v1389_v58 = vld [vmem:[%s2100_s0 + $0x98] ss:$24 sps:$4 sm:$0xff]   ;;  %v1397_v60 = vld [vmem:[%s2099_s1 + $0x128] sm:$0xff]   ;;  %v1404_v5 = vld [vmem:[%s2100_s0 + $0xfc] ss:$24 sps:$4 sm:$0xff]   ;;  %v1428_v20 = vmov 0.0  }
  0x16   :  { %1215 = vmatprep.subr.bf16.mxu1 %v1347_v21  ;;  %v1395_v61 = vld [vmem:[%s2100_s0 + $0xcc] ss:$24 sps:$4 sm:$0xff]   ;;  %v1400_v62 = vld [vmem:[%s2099_s1 + $0x170] sm:$0xff]   ;;  %v1408_v1 = vld [vmem:[%s2099_s1 + $0x178] sm:$0xff]   ;;  %20 = vst.msk [vmem:[%s2101_s3] sm:$0xff] %vm19_vm0, %v1428_v20 }
  0x17   :  { %v1401_v63 = vld [vmem:[%s2099_s1 + $0x130] sm:$0xff]   ;;  %v1409_v2 = vld [vmem:[%s2099_s1 + $0x138] sm:$0xff]   ;;  %v1399_v3 = vld [vmem:[%s2100_s0 + $0xc8] ss:$24 sps:$4 sm:$0xff]   ;;  %21 = vst.msk [vmem:[%s2101_s3 + $0x8] sm:$0xff] %vm19_vm0, %v1428_v20 }
  0x18   :  { %1164 = vmatpush3.bf16.msra.mxu0 %v1348_v22  ;;  %v1402_v4 = vld [vmem:[%s2100_s0 + $0xf4] ss:$24 sps:$4 sm:$0xff]   ;;  %v1406_v6 = vld [vmem:[%s2100_s0 + $0xf0] ss:$24 sps:$4 sm:$0xff]   ;;  %v1415_v9 = vld [vmem:[%s2100_s0 + $0xa4] ss:$24 sps:$4 sm:$0xff]  }
  0x19   :  { %1216 = vmatpush3.bf16.msra.mxu1 %v1349_v23  ;;  %1165 = vmatprep.subr.bf16.mxu0 %v1350_v24  ;;  %v1407_v7 = vld [vmem:[%s2100_s0 + $0xf8] ss:$24 sps:$4 sm:$0xff]   ;;  %v1412_v8 = vld [vmem:[%s2100_s0 + $0x14] ss:$24 sps:$4 sm:$0xff]   ;;  %v1416_v12 = vld [vmem:[%s2100_s0 + $0x44] ss:$24 sps:$4 sm:$0xff]  }
  0x1a   :  { %1217 = vmatprep.subr.bf16.mxu1 %v1351_v25  ;;  %v1410_v10 = vld [vmem:[%s2100_s0 + $0x10] ss:$24 sps:$4 sm:$0xff]   ;;  %v1413_v11 = vld [vmem:[%s2100_s0 + $0xa0] ss:$24 sps:$4 sm:$0xff]   ;;  %v1418_v13 = vld [vmem:[%s2100_s0 + $0xd4] ss:$24 sps:$4 sm:$0xff]  }
  0x1b   :  { %v1420_v14 = vld [vmem:[%s2100_s0 + $0x40] ss:$24 sps:$4 sm:$0xff]   ;;  %v1421_v15 = vld [vmem:[%s2100_s0 + $0xd0] ss:$24 sps:$4 sm:$0xff]   ;;  %v1422_v16 = vld [vmem:[%s2100_s0 + $0x74] ss:$24 sps:$4 sm:$0xff]  }
  0x1c   :  { %1166 = vmatpush3.bf16.msra.mxu0 %v1352_v26  ;;  %v1424_v17 = vld [vmem:[%s2100_s0 + $0x104] ss:$24 sps:$4 sm:$0xff]   ;;  %v1426_v18 = vld [vmem:[%s2100_s0 + $0x70] ss:$24 sps:$4 sm:$0xff]   ;;  %v1427_v19 = vld [vmem:[%s2100_s0 + $0x100] ss:$24 sps:$4 sm:$0xff]  }
  0x1d   :  { %1218 = vmatpush3.bf16.msra.mxu1 %v1353_v27  ;;  %1167 = vmatprep.subr.bf16.mxu0 %v1354_v28  ;;  %22 = vst.msk [vmem:[%s2101_s3 + $0x10] sm:$0xff] %vm19_vm0, %v1428_v20  ;;  %23 = vst.msk [vmem:[%s2101_s3 + $0x18] sm:$0xff] %vm19_vm0, %v1428_v20 }
  0x1e   :  { %1219 = vmatprep.subr.bf16.mxu1 %v1355_v29  ;;  %24 = vst.msk [vmem:[%s2101_s3 + $0x20] sm:$0xff] %vm19_vm0, %v1428_v20  ;;  %25 = vst.msk [vmem:[%s2101_s3 + $0x28] sm:$0xff] %vm19_vm0, %v1428_v20 }
  0x1f   :  { %26 = vst.msk [vmem:[%s2101_s3 + $0x30] sm:$0xff] %vm19_vm0, %v1428_v20  ;;  %27 = vst.msk [vmem:[%s2101_s3 + $0x38] sm:$0xff] %vm19_vm0, %v1428_v20 }
  0x20   :  { %1168 = vmatpush3.bf16.msra.mxu0 %v1356_v30  ;;  %28 = vst.msk [vmem:[%s2101_s3 + $0x40] sm:$0xff] %vm19_vm0, %v1428_v20  ;;  %29 = vst.msk [vmem:[%s2101_s3 + $0x48] sm:$0xff] %vm19_vm0, %v1428_v20 }
  0x21   :  { %1220 = vmatpush3.bf16.msra.mxu1 %v1357_v31  ;;  %1257 = vmatprep.subr.bf16.mxu0 %v1364_v36  ;;  %30 = vst.msk [vmem:[%s2101_s3 + $0x50] sm:$0xff] %vm19_vm0, %v1428_v20  ;;  %31 = vst.msk [vmem:[%s2101_s3 + $0x58] sm:$0xff] %vm19_vm0, %v1428_v20 }
  0x22   :  { %1309 = vmatprep.subr.bf16.mxu1 %v1364_v36  ;;  %33 = vst.msk [vmem:[%s2103_s4 + $0x8] sm:$0xff] %vm19_vm0, %v1428_v20  ;;  %32 = vst.msk [vmem:[%s2103_s4] sm:$0xff] %vm19_vm0, %v1428_v20 }
  0x23   :  { %677 = vmatmul.mubr.bf16.vlgmr.msra.gmra.mrb[0].mxu0 %v1358_v32  ;;  %34 = vst.msk [vmem:[%s2103_s4 + $0x10] sm:$0xff] %vm19_vm0, %v1428_v20  ;;  %35 = vst.msk [vmem:[%s2103_s4 + $0x18] sm:$0xff] %vm19_vm0, %v1428_v20 }
  0x24   :  { %758 = vmatmul.mubr.bf16.vlgmr.msra.gmra.mrb[0].mxu1 %v1361_v34  ;;  %1258 = vmatpush3.bf16.msra.mxu0 %v1365_v37  ;;  %36 = vst.msk [vmem:[%s2103_s4 + $0x20] sm:$0xff] %vm19_vm0, %v1428_v20  ;;  %37 = vst.msk [vmem:[%s2103_s4 + $0x28] sm:$0xff] %vm19_vm0, %v1428_v20 }
  0x25   :  { %1317 = vmatpush3.bf16.msra.mxu1 %v1365_v37  ;;  %684 = vmatprep.mubr.bf16.mxu0 %v1367_v39  ;;  %38 = vst.msk [vmem:[%s2103_s4 + $0x30] sm:$0xff] %vm19_vm0, %v1428_v20  ;;  %39 = vst.msk [vmem:[%s2103_s4 + $0x38] sm:$0xff] %vm19_vm0, %v1428_v20 }
  0x26   :  { %1310 = vmatprep.subr.bf16.mxu1 %v1366_v38  ;;  %1259 = vmatprep.subr.bf16.mxu0 %v1366_v38  ;;  %40 = vst.msk [vmem:[%s2103_s4 + $0x40] sm:$0xff] %vm19_vm0, %v1428_v20  ;;  %41 = vst.msk [vmem:[%s2103_s4 + $0x48] sm:$0xff] %vm19_vm0, %v1428_v20 }
  0x27   :  { %765 = vmatprep.mubr.bf16.mxu1 %v1369_v40  ;;  %42 = vst.msk [vmem:[%s2103_s4 + $0x50] sm:$0xff] %vm19_vm0, %v1428_v20  ;;  %43 = vst.msk [vmem:[%s2103_s4 + $0x58] sm:$0xff] %vm19_vm0, %v1428_v20 }
  0x28   :  { %1260 = vmatpush3.bf16.msra.mxu0 %v1371_v41 }
  0x29   :  { %1318 = vmatpush3.bf16.msra.mxu1 %v1371_v41  ;;  %1261 = vmatprep.subr.bf16.mxu0 %v1374_v44 }
  0x2a   :  { %1311 = vmatprep.subr.bf16.mxu1 %v1374_v44 }
  0x2b   :  { %685 = vmatmul.mubr.bf16.gmra.mrb[4].mxu0 %v1372_v42 }
  0x2c   :  { %766 = vmatmul.mubr.bf16.gmra.mrb[4].mxu1 %v1373_v43  ;;  %692 = vmatprep.mubr.bf16.mxu0 %v1376_v46 }
  0x2d   :  { %1319 = vmatpush3.bf16.msra.mxu1 %v1375_v45  ;;  %773 = vmatprep.mubr.bf16.mxu1 %v1378_v47 }
  0x2e   :  { %1262 = vmatpush3.bf16.msra.mxu0 %v1375_v45  ;;  %1312 = vmatprep.subr.bf16.mxu1 %v1382_v49 }
  0x2f   :  { %1263 = vmatprep.subr.bf16.mxu0 %v1382_v49 }
  0x31   :  { %1320 = vmatpush3.bf16.msra.mxu1 %v1383_v50 }
  0x32   :  { %1264 = vmatpush3.bf16.msra.mxu0 %v1383_v50  ;;  %1313 = vmatprep.subr.bf16.mxu1 %v1390_v54 }
  0x33   :  { %693 = vmatmul.mubr.bf16.gmra.mrb[8].mxu0 %v1380_v48  ;;  %1265 = vmatprep.subr.bf16.mxu0 %v1390_v54 }
  0x34   :  { %774 = vmatmul.mubr.bf16.gmra.mrb[8].mxu1 %v1381_v51  ;;  %700 = vmatprep.mubr.bf16.mxu0 %v1384_v52 }
  0x35   :  { %781 = vmatprep.mubr.bf16.mxu1 %v1386_v53  ;;  %1321 = vmatpush3.bf16.msra.mxu1 %v1391_v55 }
  0x36   :  { %1266 = vmatpush3.bf16.msra.mxu0 %v1391_v55  ;;  %1314 = vmatprep.subr.bf16.mxu1 %v1392_v56 }
  0x37   :  { %1267 = vmatprep.subr.bf16.mxu0 %v1392_v56 }
  0x39   :  { %1322 = vmatpush3.bf16.msra.mxu1 %v1397_v60 }
  0x3a   :  { %1315 = vmatprep.subr.bf16.mxu1 %v1400_v62  ;;  %1268 = vmatpush3.bf16.msra.mxu0 %v1397_v60 }
  0x3b   :  { %701 = vmatmul.mubr.bf16.gmra.mrb[12].mxu0 %v1388_v57  ;;  %1269 = vmatprep.subr.bf16.mxu0 %v1400_v62 }
  0x3c   :  { %782 = vmatmul.mubr.bf16.gmra.mrb[12].mxu1 %v1389_v58  ;;  %708 = vmatprep.mubr.bf16.mxu0 %v1393_v59 }
  0x3d   :  { %789 = vmatprep.mubr.bf16.mxu1 %v1395_v61  ;;  %1323 = vmatpush3.bf16.msra.mxu1 %v1401_v63 }
  0x3e   :  { %1316 = vmatprep.subr.bf16.mxu1 %v1408_v1  ;;  %1270 = vmatpush3.bf16.msra.mxu0 %v1401_v63 }
  0x3f   :  { %1271 = vmatprep.subr.bf16.mxu0 %v1408_v1 }
  0x41   :  { %1324 = vmatpush3.bf16.msra.mxu1 %v1409_v2 }
  0x42   :  { %1272 = vmatpush3.bf16.msra.mxu0 %v1409_v2 }
  0x43   :  { %709 = vmatmul.mubr.bf16.gmra.mrb[16].mxu0 %v1398_v0 }
  0x44   :  { %790 = vmatmul.mubr.bf16.gmra.mrb[16].mxu1 %v1399_v3  ;;  %716 = vmatprep.mubr.bf16.mxu0 %v1402_v4 }
  0x45   :  { %797 = vmatprep.mubr.bf16.mxu1 %v1404_v5 }
  0x4b   :  { %717 = vmatmul.mubr.bf16.gmra.mrb[20].mxu0 %v1406_v6 }
  0x4c   :  { %798 = vmatmul.mubr.bf16.gmra.mrb[20].mxu1 %v1407_v7  ;;  %838 = vmatprep.mubr.bf16.mxu0 %v1412_v8 }
  0x4d   :  { %862 = vmatprep.mubr.bf16.mxu1 %v1415_v9 }
  0x53   :  { %839 = vmatmul.mubr.bf16.vlgmr.msra.gmra.mrb[24].mxu0 %v1410_v10 }
  0x54   :  { %863 = vmatmul.mubr.bf16.vlgmr.msra.gmra.mrb[24].mxu1 %v1413_v11  ;;  %846 = vmatprep.mubr.bf16.mxu0 %v1416_v12 }
  0x55   :  { %870 = vmatprep.mubr.bf16.mxu1 %v1418_v13 }
  0x5b   :  { %847 = vmatmul.mubr.bf16.gmra.mrb[28].mxu0 %v1420_v14 }
  0x5c   :  { %871 = vmatmul.mubr.bf16.gmra.mrb[28].mxu1 %v1421_v15  ;;  %854 = vmatprep.mubr.bf16.mxu0 %v1422_v16 }
  0x5d   :  { %878 = vmatprep.mubr.bf16.mxu1 %v1424_v17 }
  0x63   :  { %855 = vmatmul.mubr.bf16.gmra.mrb[32].mxu0 %v1426_v18 }
  0x64   :  { %879 = vmatmul.mubr.bf16.gmra.mrb[32].mxu1 %v1427_v19 }
  0xf6   :  { %v1169_v21 = vpop.f32.mrb[0].mxu0 }
  0xf7   :  { %v1221_v22 = vpop.f32.mrb[0].mxu1  ;;  %v1170_v23 = vpop.f32.mrb[1].mxu0 }
  0xf8   :  { %v1171_v24 = vadd.f32 %v1170_v23, %v1169_v21  ;;  %v1222_v25 = vpop.f32.mrb[1].mxu1  ;;  %v1172_v26 = vpop.f32.mrb[2].mxu0 }
  0xf9   :  { %v1223_v27 = vadd.f32 %v1222_v25, %v1221_v22  ;;  %v1224_v28 = vpop.f32.mrb[2].mxu1  ;;  %v1173_v29 = vpop.f32.mrb[3].mxu0 }
  0xfa   :  { %v1174_v30 = vadd.f32 %v1173_v29, %v1172_v26  ;;  %v1225_v31 = vpop.f32.mrb[3].mxu1 }
  0xfb   :  { %v1766_v32 = vadd.f32 %v1223_v27, %v1171_v24  ;;  %v1226_v33 = vadd.f32 %v1225_v31, %v1224_v28 }
  0xfd   :  { %v1768_v34 = vadd.f32 %v1226_v33, %v1174_v30 }
  0xfe   :  { %v1175_v35 = vpop.f32.mrb[4].mxu0 }
  0xff   :  { %v1227_v36 = vpop.f32.mrb[4].mxu1  ;;  %v1176_v37 = vpop.f32.mrb[5].mxu0 }
 0x100   :  { %v1177_v38 = vadd.f32 %v1176_v37, %v1175_v35  ;;  %v1228_v39 = vpop.f32.mrb[5].mxu1  ;;  %v1178_v40 = vpop.f32.mrb[6].mxu0 }
 0x101   :  { %v1229_v41 = vadd.f32 %v1228_v39, %v1227_v36  ;;  %v1230_v42 = vpop.f32.mrb[6].mxu1  ;;  %v1179_v43 = vpop.f32.mrb[7].mxu0 }
 0x102   :  { %v1180_v44 = vadd.f32 %v1179_v43, %v1178_v40  ;;  %v1231_v45 = vpop.f32.mrb[7].mxu1 }
 0x103   :  { %v1770_v46 = vadd.f32 %v1229_v41, %v1177_v38  ;;  %v1232_v47 = vadd.f32 %v1231_v45, %v1230_v42 }
 0x105   :  { %v1772_v48 = vadd.f32 %v1232_v47, %v1180_v44 }
 0x106   :  { %v1181_v49 = vpop.f32.mrb[8].mxu0 }
 0x107   :  { %v1233_v50 = vpop.f32.mrb[8].mxu1  ;;  %v1182_v51 = vpop.f32.mrb[9].mxu0 }
 0x108   :  { %v1183_v52 = vadd.f32 %v1182_v51, %v1181_v49  ;;  %v1234_v53 = vpop.f32.mrb[9].mxu1  ;;  %v1184_v54 = vpop.f32.mrb[10].mxu0 }
 0x109   :  { %v1235_v55 = vadd.f32 %v1234_v53, %v1233_v50  ;;  %v1236_v56 = vpop.f32.mrb[10].mxu1  ;;  %v1185_v57 = vpop.f32.mrb[11].mxu0 }
 0x10a   :  { %v1186_v58 = vadd.f32 %v1185_v57, %v1184_v54  ;;  %v1237_v59 = vpop.f32.mrb[11].mxu1 }
 0x10b   :  { %v1774_v60 = vadd.f32 %v1235_v55, %v1183_v52  ;;  %v1238_v61 = vadd.f32 %v1237_v59, %v1236_v56 }
 0x10d   :  { %v1776_v62 = vadd.f32 %v1238_v61, %v1186_v58 }
 0x10e   :  { %v1187_v63 = vpop.f32.mrb[12].mxu0 }
 0x10f   :  { %v1239_v0 = vpop.f32.mrb[12].mxu1  ;;  %v1188_v1 = vpop.f32.mrb[13].mxu0 }
 0x110   :  { %v1189_v2 = vadd.f32 %v1188_v1, %v1187_v63  ;;  %v1240_v3 = vpop.f32.mrb[13].mxu1  ;;  %v1190_v4 = vpop.f32.mrb[14].mxu0 }
 0x111   :  { %v1241_v5 = vadd.f32 %v1240_v3, %v1239_v0  ;;  %v1242_v6 = vpop.f32.mrb[14].mxu1  ;;  %v1191_v7 = vpop.f32.mrb[15].mxu0 }
 0x112   :  { %v1192_v8 = vadd.f32 %v1191_v7, %v1190_v4  ;;  %v1243_v9 = vpop.f32.mrb[15].mxu1 }
 0x113   :  { %v784_v10 = vadd.f32 %v1241_v5, %v1189_v2  ;;  %v1244_v11 = vadd.f32 %v1243_v9, %v1242_v6 }
 0x115   :  { %v787_v12 = vadd.f32 %v1244_v11, %v1192_v8 }
 0x116   :  { %v1193_v13 = vpop.f32.mrb[16].mxu0 }
 0x117   :  { %v1245_v14 = vpop.f32.mrb[16].mxu1  ;;  %v1194_v15 = vpop.f32.mrb[17].mxu0 }
 0x118   :  { %v1195_v16 = vadd.f32 %v1194_v15, %v1193_v13  ;;  %v1246_v17 = vpop.f32.mrb[17].mxu1  ;;  %v1196_v18 = vpop.f32.mrb[18].mxu0 }
 0x119   :  { %v1247_v19 = vadd.f32 %v1246_v17, %v1245_v14  ;;  %v1248_v21 = vpop.f32.mrb[18].mxu1  ;;  %v1197_v22 = vpop.f32.mrb[19].mxu0 }
 0x11a   :  { %v1198_v23 = vadd.f32 %v1197_v22, %v1196_v18  ;;  %v1249_v24 = vpop.f32.mrb[19].mxu1 }
 0x11b   :  { %v792_v25 = vadd.f32 %v1247_v19, %v1195_v16  ;;  %v1250_v26 = vadd.f32 %v1249_v24, %v1248_v21 }
 0x11d   :  { %v1778_v27 = vadd.f32 %v1250_v26, %v1198_v23 }
 0x11e   :  { %v1199_v28 = vpop.f32.mrb[20].mxu0 }
 0x11f   :  { %v1251_v29 = vpop.f32.mrb[20].mxu1  ;;  %v1200_v30 = vpop.f32.mrb[21].mxu0 }
 0x120   :  { %v1201_v31 = vadd.f32 %v1200_v30, %v1199_v28  ;;  %v1252_v33 = vpop.f32.mrb[21].mxu1  ;;  %v1202_v35 = vpop.f32.mrb[22].mxu0 }
 0x121   :  { %v1253_v36 = vadd.f32 %v1252_v33, %v1251_v29  ;;  %v1254_v37 = vpop.f32.mrb[22].mxu1  ;;  %v1203_v38 = vpop.f32.mrb[23].mxu0 }
 0x122   :  { %v1204_v39 = vadd.f32 %v1203_v38, %v1202_v35  ;;  %v1255_v40 = vpop.f32.mrb[23].mxu1 }
 0x123   :  { %v1780_v41 = vadd.f32 %v1253_v36, %v1201_v31  ;;  %v1256_v42 = vadd.f32 %v1255_v40, %v1254_v37 }
 0x125   :  { %v1782_v43 = vadd.f32 %v1256_v42, %v1204_v39 }
 0x126   :  { %v1273_v44 = vpop.f32.mrb[24].mxu0 }
 0x127   :  { %v1291_v45 = vpop.f32.mrb[24].mxu1  ;;  %v1274_v47 = vpop.f32.mrb[25].mxu0 }
 0x128   :  { %v1275_v49 = vadd.f32 %v1274_v47, %v1273_v44  ;;  %v1292_v50 = vpop.f32.mrb[25].mxu1  ;;  %v1276_v51 = vpop.f32.mrb[26].mxu0 }
 0x129   :  { %v1293_v52 = vadd.f32 %v1292_v50, %v1291_v45  ;;  %v1294_v53 = vpop.f32.mrb[26].mxu1  ;;  %v1277_v54 = vpop.f32.mrb[27].mxu0 }
 0x12a   :  { %v841_v55 = vadd.f32 %v1275_v49, %v1766_v32  ;;  %v1278_v56 = vadd.f32 %v1277_v54, %v1276_v51  ;;  %v1295_v57 = vpop.f32.mrb[27].mxu1 }
 0x12b   :  { %v865_v58 = vadd.f32 %v1293_v52, %v784_v10  ;;  %v1296_v59 = vadd.f32 %v1295_v57, %v1294_v53 }
 0x12c   :  { %888 = vst.msk [vmem:[%s2102_s2] sm:$0xff] %vm887_vm1, %v841_v55  ;;  %v844_v61 = vadd.f32 %v1278_v56, %v1768_v34  ;;  %v912_v63 = vsel %vm887_vm1, %v841_v55, 0.0  ;;  %v985_v21 = vmul.f32 %v841_v55, %v841_v55 }
 0x12d   :  { %894 = vst.msk [vmem:[%s2102_s2 + $0x30] sm:$0xff] %vm887_vm1, %v865_v58  ;;  %v868_v0 = vadd.f32 %v1296_v59, %v787_v12  ;;  %913 = vadd.xlane.f32.xlu0 %v912_v63  ;;  %v930_v7 = vsel %vm887_vm1, %v865_v58, 0.0  ;;  %v991_v29 = vmul.f32 %v865_v58, %v865_v58 }
 0x12e   :  { %889 = vst.msk [vmem:[%s2102_s2 + $0x8] sm:$0xff] %vm887_vm1, %v844_v61  ;;  %v1279_v32 = vpop.f32.mrb[28].mxu0  ;;  %v986_v3 = vmul.f32 %v844_v61, %v844_v61  ;;  %v915_v19 = vsel %vm887_vm1, %v844_v61, 0.0  ;;  %v997_v28 = vsel %vm887_vm1, %v985_v21, 0.0 }
 0x12f   :  { %895 = vst.msk [vmem:[%s2102_s2 + $0x38] sm:$0xff] %vm887_vm1, %v868_v0  ;;  %v1297_v34 = vpop.f32.mrb[28].mxu1  ;;  %v1280_v1 = vpop.f32.mrb[29].mxu0  ;;  %v933_v2 = vsel %vm887_vm1, %v868_v0, 0.0  ;;  %v992_v17 = vmul.f32 %v868_v0, %v868_v0  ;;  %v1015_v42 = vsel %vm887_vm1, %v991_v29, 0.0  ;;  %v908_v29 = vld [vmem:[%s2101_s3 + $0x40] sm:$0xff] }
 0x130   :  { %v1281_v4 = vadd.f32 %v1280_v1, %v1279_v32  ;;  %v1298_v5 = vpop.f32.mrb[29].mxu1  ;;  %934 = vadd.xlane.f32.xlu1 %v933_v2  ;;  %v1282_v6 = vpop.f32.mrb[30].mxu0  ;;  %v1000_v16 = vsel %vm887_vm1, %v986_v3, 0.0  ;;  %v900_v2 = vld [vmem:[%s2101_s3] sm:$0xff] }
 0x131   :  { %v1299_v8 = vadd.f32 %v1298_v5, %v1297_v34  ;;  %v1300_v9 = vpop.f32.mrb[30].mxu1  ;;  %v1283_v10 = vpop.f32.mrb[31].mxu0  ;;  %931 = vadd.xlane.f32.xlu0 %v930_v7  ;;  %v1018_v24 = vsel %vm887_vm1, %v992_v17, 0.0  ;;  %v907_v5 = vld [vmem:[%s2101_s3 + $0x38] sm:$0xff] }
 0x132   :  { %v849_v11 = vadd.f32 %v1281_v4, %v1770_v46  ;;  %v1284_v12 = vadd.f32 %v1283_v10, %v1282_v6  ;;  %v1301_v13 = vpop.f32.mrb[31].mxu1  ;;  %v906_v6 = vld [vmem:[%s2101_s3 + $0x30] sm:$0xff]  ;;  %v980_v17 = vld [vmem:[%s2103_s4 + $0x38] sm:$0xff] }
 0x133   :  { %v1806_v14 = vadd.f32 %v1299_v8, %v792_v25  ;;  %v1302_v15 = vadd.f32 %v1301_v13, %v1300_v9 }
 0x134   :  { %890 = vst.msk [vmem:[%s2102_s2 + $0x10] sm:$0xff] %vm887_vm1, %v849_v11  ;;  %v852_v18 = vadd.f32 %v1284_v12, %v1772_v48  ;;  %1001 = vadd.xlane.f32.xlu1 %v1000_v16  ;;  %v918_v39 = vsel %vm887_vm1, %v849_v11, 0.0  ;;  %v987_v44 = vmul.f32 %v849_v11, %v849_v11  ;;  %v974_v11 = vld [vmem:[%s2103_s4 + $0x8] sm:$0xff] }
 0x135   :  { %896 = vst.msk [vmem:[%s2102_s2 + $0x40] sm:$0xff] %vm887_vm1, %v1806_v14  ;;  %v876_v46 = vadd.f32 %v1302_v15, %v1778_v27  ;;  %916 = vadd.xlane.f32.xlu0 %v915_v19  ;;  %v993_v49 = vmul.f32 %v1806_v14, %v1806_v14  ;;  %v901_v12 = vld [vmem:[%s2101_s3 + $0x8] sm:$0xff] }
 0x136   :  { %891 = vst.msk [vmem:[%s2102_s2 + $0x18] sm:$0xff] %vm887_vm1, %v852_v18  ;;  %v1285_v22 = vpop.f32.mrb[32].mxu0  ;;  %v988_v45 = vmul.f32 %v852_v18, %v852_v18  ;;  %v1003_v47 = vsel %vm887_vm1, %v987_v44, 0.0 }
 0x137   :  { %897 = vst.msk [vmem:[%s2102_s2 + $0x48] sm:$0xff] %vm887_vm1, %v876_v46  ;;  %v1303_v48 = vpop.f32.mrb[32].mxu1  ;;  %v1286_v23 = vpop.f32.mrb[33].mxu0  ;;  %v994_v51 = vmul.f32 %v876_v46, %v876_v46  ;;  %v1021_v52 = vsel %vm887_vm1, %v993_v49, 0.0 }
 0x138   :  { %v1287_v25 = vadd.f32 %v1286_v23, %v1285_v22  ;;  %v1304_v26 = vpop.f32.mrb[33].mxu1  ;;  %1019 = vadd.xlane.f32.xlu1 %v1018_v24  ;;  %v1288_v27 = vpop.f32.mrb[34].mxu0  ;;  %v1006_v50 = vsel %vm887_vm1, %v988_v45, 0.0  ;;  %v979_v23 = vld [vmem:[%s2103_s4 + $0x30] sm:$0xff]  ;;  %v982_v45 = vld [vmem:[%s2103_s4 + $0x48] sm:$0xff] }
 0x139   :  { %v1305_v30 = vadd.f32 %v1304_v26, %v1303_v48  ;;  %v1306_v31 = vpop.f32.mrb[34].mxu1  ;;  %v1289_v33 = vpop.f32.mrb[35].mxu0  ;;  %998 = vadd.xlane.f32.xlu0 %v997_v28  ;;  %v1024_v53 = vsel %vm887_vm1, %v994_v51, 0.0  ;;  %v902_v48 = vld [vmem:[%s2101_s3 + $0x10] sm:$0xff]  ;;  %v903_v28 = vld [vmem:[%s2101_s3 + $0x18] sm:$0xff] }
 0x13a   :  { %v857_v35 = vadd.f32 %v1287_v25, %v1774_v60  ;;  %v1290_v36 = vadd.f32 %v1289_v33, %v1288_v27  ;;  %v1307_v37 = vpop.f32.mrb[35].mxu1 }
 0x13b   :  { %v881_v60 = vadd.f32 %v1305_v30, %v1780_v41  ;;  %v1308_v38 = vadd.f32 %v1307_v37, %v1306_v31  ;;  %v936_v41 = vsel %vm887_vm1, %v1806_v14, 0.0  ;;  %v975_v37 = vld [vmem:[%s2103_s4 + $0x10] sm:$0xff] }
 0x13c   :  { %892 = vst.msk [vmem:[%s2102_s2 + $0x20] sm:$0xff] %vm887_vm1, %v857_v35  ;;  %v860_v40 = vadd.f32 %v1290_v36, %v1776_v62  ;;  %919 = vadd.xlane.f32.xlu1 %v918_v39  ;;  %v921_v62 = vsel %vm887_vm1, %v852_v18, 0.0  ;;  %v924_v54 = vsel %vm887_vm1, %v857_v35, 0.0  ;;  %v989_v57 = vmul.f32 %v857_v35, %v857_v35  ;;  %v973_v18 = vld [vmem:[%s2103_s4] sm:$0xff]  ;;  %v909_v36 = vld [vmem:[%s2101_s3 + $0x48] sm:$0xff] }
 0x13d   :  { %898 = vst.msk [vmem:[%s2102_s2 + $0x50] sm:$0xff] %vm887_vm1, %v881_v60  ;;  %v884_v20 = vadd.f32 %v1308_v38, %v1782_v43  ;;  %1016 = vadd.xlane.f32.xlu0 %v1015_v42  ;;  %v939_v43 = vsel %vm887_vm1, %v876_v46, 0.0  ;;  %v942_v56 = vsel %vm887_vm1, %v881_v60, 0.0  ;;  %v995_v63 = vmul.f32 %v881_v60, %v881_v60  ;;  %v976_v42 = vld [vmem:[%s2103_s4 + $0x18] sm:$0xff] }
 0x13e   :  { %893 = vst.msk [vmem:[%s2102_s2 + $0x28] sm:$0xff] %vm887_vm1, %v860_v40  ;;  %v927_v55 = vsel %vm887_vm1, %v860_v40, 0.0  ;;  %v990_v59 = vmul.f32 %v860_v40, %v860_v40  ;;  %v1009_v61 = vsel %vm887_vm1, %v989_v57, 0.0 }
 0x13f   :  { %899 = vst.msk [vmem:[%s2102_s2 + $0x58] sm:$0xff] %vm887_vm1, %v884_v20  ;;  %v945_v58 = vsel %vm887_vm1, %v884_v20, 0.0  ;;  %v996_v32 = vmul.f32 %v884_v20, %v884_v20  ;;  %v1027_v34 = vsel %vm887_vm1, %v995_v63, 0.0  ;;  %v981_v20 = vld [vmem:[%s2103_s4 + $0x40] sm:$0xff] }
 0x140   :  { %922 = vadd.xlane.f32.xlu1 %v921_v62  ;;  %v1012_v0 = vsel %vm887_vm1, %v990_v59, 0.0  ;;  %v911_v59 = vld [vmem:[%s2101_s3 + $0x58] sm:$0xff] }
 0x141   :  { %937 = vadd.xlane.f32.xlu0 %v936_v41  ;;  %v1030_v1 = vsel %vm887_vm1, %v996_v32, 0.0 }
 0x144   :  { %940 = vadd.xlane.f32.xlu1 %v939_v43 }
 0x145   :  { %1004 = vadd.xlane.f32.xlu0 %v1003_v47  ;;  %v904_v47 = vld [vmem:[%s2101_s3 + $0x20] sm:$0xff] }
 0x148   :  { %1007 = vadd.xlane.f32.xlu1 %v1006_v50 }
 0x149   :  { %1022 = vadd.xlane.f32.xlu0 %v1021_v52 }
 0x14c   :  { %1025 = vadd.xlane.f32.xlu1 %v1024_v53  ;;  %v905_v53 = vld [vmem:[%s2101_s3 + $0x28] sm:$0xff] }
 0x14d   :  { %925 = vadd.xlane.f32.xlu0 %v924_v54  ;;  %v910_v54 = vld [vmem:[%s2101_s3 + $0x50] sm:$0xff] }
 0x150   :  { %928 = vadd.xlane.f32.xlu1 %v927_v55 }
 0x151   :  { %943 = vadd.xlane.f32.xlu0 %v942_v56 }
 0x154   :  { %946 = vadd.xlane.f32.xlu1 %v945_v58 }
 0x155   :  { %1010 = vadd.xlane.f32.xlu0 %v1009_v61  ;;  %v977_v61 = vld [vmem:[%s2103_s4 + $0x20] sm:$0xff] }
 0x158   :  { %1013 = vadd.xlane.f32.xlu1 %v1012_v0 }
 0x159   :  { %1028 = vadd.xlane.f32.xlu0 %v1027_v34 }
 0x15c   :  { %1031 = vadd.xlane.f32.xlu1 %v1030_v1  ;;  %v978_v1 = vld [vmem:[%s2103_s4 + $0x28] sm:$0xff] }
 0x1ba   :  { %v914_v3 = vpop.xlane.xlu0 %913 }
 0x1bb   :  { %v948_v4 = vadd.f32 %v914_v3, %v900_v2  ;;  %v983_v2 = vld [vmem:[%s2103_s4 + $0x50] sm:$0xff] }
 0x1bd   :  { %961 = vst.msk [vmem:[%s2101_s3] sm:$0xff] %vm19_vm0, %v948_v4  ;;  %v935_v7 = vpop.xlane.xlu1 %934 }
 0x1be   :  { %v955_v8 = vadd.f32 %v935_v7, %v907_v5  ;;  %v932_v9 = vpop.xlane.xlu0 %931  ;;  %v984_v7 = vld [vmem:[%s2103_s4 + $0x58] sm:$0xff] }
 0x1bf   :  { %v954_v10 = vadd.f32 %v932_v9, %v906_v6 }
 0x1c0   :  { %968 = vst.msk [vmem:[%s2101_s3 + $0x38] sm:$0xff] %vm19_vm0, %v955_v8 }
 0x1c1   :  { %967 = vst.msk [vmem:[%s2101_s3 + $0x30] sm:$0xff] %vm19_vm0, %v954_v10  ;;  %v1002_v13 = vpop.xlane.xlu1 %1001 }
 0x1c2   :  { %v1034_v14 = vadd.f32 %v1002_v13, %v974_v11  ;;  %v917_v15 = vpop.xlane.xlu0 %916 }
 0x1c3   :  { %v949_v16 = vadd.f32 %v917_v15, %v901_v12 }
 0x1c4   :  { %1046 = vst.msk [vmem:[%s2103_s4 + $0x8] sm:$0xff] %vm19_vm0, %v1034_v14 }
 0x1c5   :  { %962 = vst.msk [vmem:[%s2101_s3 + $0x8] sm:$0xff] %vm19_vm0, %v949_v16  ;;  %v1020_v19 = vpop.xlane.xlu1 %1019 }
 0x1c6   :  { %v1040_v21 = vadd.f32 %v1020_v19, %v980_v17  ;;  %v999_v46 = vpop.xlane.xlu0 %998 }
 0x1c7   :  { %v1033_v22 = vadd.f32 %v999_v46, %v973_v18 }
 0x1c8   :  { %1052 = vst.msk [vmem:[%s2103_s4 + $0x38] sm:$0xff] %vm19_vm0, %v1040_v21 }
 0x1c9   :  { %1045 = vst.msk [vmem:[%s2103_s4] sm:$0xff] %vm19_vm0, %v1033_v22  ;;  %v920_v24 = vpop.xlane.xlu1 %919 }
 0x1ca   :  { %v950_v25 = vadd.f32 %v920_v24, %v902_v48  ;;  %v1017_v26 = vpop.xlane.xlu0 %1016 }
 0x1cb   :  { %v1039_v27 = vadd.f32 %v1017_v26, %v979_v23 }
 0x1cc   :  { %963 = vst.msk [vmem:[%s2101_s3 + $0x10] sm:$0xff] %vm19_vm0, %v950_v25 }
 0x1cd   :  { %1051 = vst.msk [vmem:[%s2103_s4 + $0x30] sm:$0xff] %vm19_vm0, %v1039_v27  ;;  %v923_v30 = vpop.xlane.xlu1 %922 }
 0x1ce   :  { %v951_v31 = vadd.f32 %v923_v30, %v903_v28  ;;  %v938_v33 = vpop.xlane.xlu0 %937 }
 0x1cf   :  { %v956_v35 = vadd.f32 %v938_v33, %v908_v29 }
 0x1d0   :  { %964 = vst.msk [vmem:[%s2101_s3 + $0x18] sm:$0xff] %vm19_vm0, %v951_v31 }
 0x1d1   :  { %969 = vst.msk [vmem:[%s2101_s3 + $0x40] sm:$0xff] %vm19_vm0, %v956_v35  ;;  %v941_v60 = vpop.xlane.xlu1 %940 }
 0x1d2   :  { %v957_v38 = vadd.f32 %v941_v60, %v909_v36  ;;  %v1005_v39 = vpop.xlane.xlu0 %1004 }
 0x1d3   :  { %v1035_v40 = vadd.f32 %v1005_v39, %v975_v37 }
 0x1d4   :  { %970 = vst.msk [vmem:[%s2101_s3 + $0x48] sm:$0xff] %vm19_vm0, %v957_v38 }
 0x1d5   :  { %1047 = vst.msk [vmem:[%s2103_s4 + $0x10] sm:$0xff] %vm19_vm0, %v1035_v40  ;;  %v1008_v62 = vpop.xlane.xlu1 %1007 }
 0x1d6   :  { %v1036_v41 = vadd.f32 %v1008_v62, %v976_v42  ;;  %v1023_v44 = vpop.xlane.xlu0 %1022 }
 0x1d7   :  { %v1041_v43 = vadd.f32 %v1023_v44, %v981_v20 }
 0x1d8   :  { %1048 = vst.msk [vmem:[%s2103_s4 + $0x18] sm:$0xff] %vm19_vm0, %v1036_v41 }
 0x1d9   :  { %1053 = vst.msk [vmem:[%s2103_s4 + $0x40] sm:$0xff] %vm19_vm0, %v1041_v43  ;;  %v1026_v49 = vpop.xlane.xlu1 %1025 }
 0x1da   :  { %v1042_v50 = vadd.f32 %v1026_v49, %v982_v45  ;;  %v926_v51 = vpop.xlane.xlu0 %925 }
 0x1db   :  { %v952_v52 = vadd.f32 %v926_v51, %v904_v47 }
 0x1dc   :  { %1054 = vst.msk [vmem:[%s2103_s4 + $0x48] sm:$0xff] %vm19_vm0, %v1042_v50 }
 0x1dd   :  { %965 = vst.msk [vmem:[%s2101_s3 + $0x20] sm:$0xff] %vm19_vm0, %v952_v52  ;;  %v929_v55 = vpop.xlane.xlu1 %928 }
 0x1de   :  { %v953_v56 = vadd.f32 %v929_v55, %v905_v53  ;;  %v944_v57 = vpop.xlane.xlu0 %943 }
 0x1df   :  { %v958_v58 = vadd.f32 %v944_v57, %v910_v54 }
 0x1e0   :  { %966 = vst.msk [vmem:[%s2101_s3 + $0x28] sm:$0xff] %vm19_vm0, %v953_v56 }
 0x1e1   :  { %971 = vst.msk [vmem:[%s2101_s3 + $0x50] sm:$0xff] %vm19_vm0, %v958_v58  ;;  %v947_v63 = vpop.xlane.xlu1 %946 }
 0x1e2   :  { %v959_v0 = vadd.f32 %v947_v63, %v911_v59  ;;  %v1011_v32 = vpop.xlane.xlu0 %1010 }
 0x1e3   :  { %v1037_v34 = vadd.f32 %v1011_v32, %v977_v61 }
 0x1e4   :  { %972 = vst.msk [vmem:[%s2101_s3 + $0x58] sm:$0xff] %vm19_vm0, %v959_v0 }
 0x1e5   :  { %1049 = vst.msk [vmem:[%s2103_s4 + $0x20] sm:$0xff] %vm19_vm0, %v1037_v34  ;;  %v1014_v3 = vpop.xlane.xlu1 %1013 }
 0x1e6   :  { %v1038_v4 = vadd.f32 %v1014_v3, %v978_v1  ;;  %v1029_v5 = vpop.xlane.xlu0 %1028 }
 0x1e7   :  { %v1043_v6 = vadd.f32 %v1029_v5, %v983_v2 }
 0x1e8   :  { %1050 = vst.msk [vmem:[%s2103_s4 + $0x28] sm:$0xff] %vm19_vm0, %v1038_v4 }
 0x1e9   :  { %1055 = vst.msk [vmem:[%s2103_s4 + $0x50] sm:$0xff] %vm19_vm0, %v1043_v6  ;;  %v1032_v8 = vpop.xlane.xlu1 %1031 }
 0x1ea   :  { %v1044_v9 = vadd.f32 %v1032_v8, %v984_v7 }
 0x1ec   :  { %1056 = vst.msk [vmem:[%s2103_s4 + $0x58] sm:$0xff] %vm19_vm0, %v1044_v9 }

// kernel: discriminator_forward.15
= control target key start
LH: loop header
LB: loop body
LE: loop exit
PB: predicated region body
PF: predicated region fallthrough
CT: control target
= control target key end

     0   :  { %v165_v29 = vlaneseq  ;;  %v1186_v35 = vmov 1966171168   ;;  %s1453_s0 = inlined_call_operand.vmem [shape: bf16[1,1152], index: 0, kind: input, shape index: {}]   ;;  %s1454_s1 = inlined_call_operand.vmem [shape: bf16[1152,2], index: 1, kind: input, shape index: {}]   ;;  %s1455_s2 = inlined_call_operand.hbm [shape: f32[1,2], index: 2, kind: output, shape index: {}]  }
   0x1   :  { %v1085_v0 = vld [vmem:[%s1454_s1 + $0x40] sm:$0xff]   ;;  %v1089_v4 = vld [vmem:[%s1454_s1 + $0x48] sm:$0xff]   ;;  %v1093_v8 = vld [vmem:[%s1454_s1 + $0x50] sm:$0xff]   ;;  %v163_v36 = vunpack.c.l.s4 %v1186_v35 }
   0x2   :  { %v1086_v1 = vld [vmem:[%s1454_s1 + $0xc0] sm:$0xff]   ;;  %964 = vmatprep.subr.bf16.mxu0 %v1085_v0  ;;  %v1090_v5 = vld [vmem:[%s1454_s1 + $0xc8] sm:$0xff]   ;;  %v1094_v9 = vld [vmem:[%s1454_s1 + $0xd0] sm:$0xff]   ;;  %v166_v33 = vshrl.u32 %v165_v29, 7 }
   0x3   :  { %v1087_v2 = vld [vmem:[%s1454_s1] sm:$0xff]   ;;  %986 = vmatprep.subr.bf16.mxu1 %v1086_v1  ;;  %v1091_v6 = vld [vmem:[%s1454_s1 + $0x8] sm:$0xff]   ;;  %v1095_v10 = vld [vmem:[%s1454_s1 + $0x10] sm:$0xff]   ;;  %v164_v39 = vunpack.c.0.s8 %v163_v36 }
   0x4   :  { %v1088_v3 = vld [vmem:[%s1454_s1 + $0x80] sm:$0xff]   ;;  %965 = vmatpush3.bf16.msra.mxu0 %v1087_v2  ;;  %v1092_v7 = vld [vmem:[%s1454_s1 + $0x88] sm:$0xff]   ;;  %v1096_v11 = vld [vmem:[%s1454_s1 + $0x90] sm:$0xff]  }
   0x5   :  { %987 = vmatpush3.bf16.msra.mxu1 %v1088_v3  ;;  %966 = vmatprep.subr.bf16.mxu0 %v1089_v4  ;;  %v1097_v12 = vld [vmem:[%s1454_s1 + $0x58] sm:$0xff]   ;;  %v1101_v16 = vld [vmem:[%s1454_s1 + $0x60] sm:$0xff]   ;;  %v1105_v20 = vld [vmem:[%s1454_s1 + $0x68] sm:$0xff]   ;;  %v1310_v41 = vsub.s32 %v164_v39, %v166_v33 }
   0x6   :  { %988 = vmatprep.subr.bf16.mxu1 %v1090_v5  ;;  %v1098_v13 = vld [vmem:[%s1454_s1 + $0xd8] sm:$0xff]   ;;  %v1102_v17 = vld [vmem:[%s1454_s1 + $0xe0] sm:$0xff]   ;;  %v1106_v21 = vld [vmem:[%s1454_s1 + $0xe8] sm:$0xff]  }
   0x7   :  { %v1099_v14 = vld [vmem:[%s1454_s1 + $0x18] sm:$0xff]   ;;  %v1103_v18 = vld [vmem:[%s1454_s1 + $0x20] sm:$0xff]   ;;  %v1107_v22 = vld [vmem:[%s1454_s1 + $0x28] sm:$0xff]  }
   0x8   :  { %967 = vmatpush3.bf16.msra.mxu0 %v1091_v6  ;;  %v1100_v15 = vld [vmem:[%s1454_s1 + $0x98] sm:$0xff]   ;;  %v1104_v19 = vld [vmem:[%s1454_s1 + $0xa0] sm:$0xff]   ;;  %v1108_v23 = vld [vmem:[%s1454_s1 + $0xa8] sm:$0xff]  }
   0x9   :  { %989 = vmatpush3.bf16.msra.mxu1 %v1092_v7  ;;  %968 = vmatprep.subr.bf16.mxu0 %v1093_v8  ;;  %v1109_v24 = vld [vmem:[%s1454_s1 + $0x70] sm:$0xff]   ;;  %v1113_v28 = vld [vmem:[%s1454_s1 + $0x78] sm:$0xff]   ;;  %v1118_v34 = vld [vmem:[%s1454_s1 + $0x140] sm:$0xff]  }
   0xa   :  { %990 = vmatprep.subr.bf16.mxu1 %v1094_v9  ;;  %v1110_v25 = vld [vmem:[%s1454_s1 + $0xf0] sm:$0xff]   ;;  %v1114_v30 = vld [vmem:[%s1454_s1 + $0xf8] sm:$0xff]   ;;  %v13_v37 = vld [vmem:[%s1453_s0] sm:$0xff] }
   0xb   :  { %v1111_v26 = vld [vmem:[%s1454_s1 + $0x30] sm:$0xff]   ;;  %v1115_v31 = vld [vmem:[%s1454_s1 + $0x38] sm:$0xff]   ;;  %v161_v38 = vcombine.high %v13_v37, %v13_v37  ;;  %v1120_v40 = vld [vmem:[%s1454_s1 + $0x1c0] sm:$0xff]   ;;  %v168_v42 = vrot.slane %v13_v37, %v1310_v41 }
   0xc   :  { %969 = vmatpush3.bf16.msra.mxu0 %v1095_v10  ;;  %v1112_v27 = vld [vmem:[%s1454_s1 + $0xb0] sm:$0xff]   ;;  %v1116_v32 = vld [vmem:[%s1454_s1 + $0xb8] sm:$0xff]   ;;  %v1119_v48 = vld [vmem:[%s1454_s1 + $0x100] sm:$0xff]  }
   0xd   :  { %991 = vmatpush3.bf16.msra.mxu1 %v1096_v11  ;;  %970 = vmatprep.subr.bf16.mxu0 %v1097_v12  ;;  %v1314_v43 = vrot.slane %v161_v38, %v1310_v41  ;;  %v176_v44 = vcombine.high %v168_v42, %v168_v42  ;;  %v184_v45 = vrot.slane %v168_v42, %v1310_v41  ;;  %v1122_v51 = vld [vmem:[%s1454_s1 + $0x148] sm:$0xff]   ;;  %v1121_v53 = vld [vmem:[%s1454_s1 + $0x180] sm:$0xff]   ;;  %v1126_v57 = vld [vmem:[%s1454_s1 + $0x150] sm:$0xff]  }
   0xe   :  { %992 = vmatprep.subr.bf16.mxu1 %v1098_v13  ;;  %v1124_v54 = vld [vmem:[%s1454_s1 + $0x1c8] sm:$0xff]   ;;  %v1128_v59 = vld [vmem:[%s1454_s1 + $0x1d0] sm:$0xff]   ;;  %v1130_v61 = vld [vmem:[%s1454_s1 + $0x158] sm:$0xff]  }
   0xf   :  { %v177_v46 = vcombine.high %v1314_v43, %v1314_v43  ;;  %v198_v47 = vrot.slane %v176_v44, %v1310_v41  ;;  %v206_v50 = vcombine.high %v184_v45, %v184_v45  ;;  %v1123_v56 = vld [vmem:[%s1454_s1 + $0x108] sm:$0xff]   ;;  %v1127_v60 = vld [vmem:[%s1454_s1 + $0x110] sm:$0xff]   ;;  %v1132_v63 = vld [vmem:[%s1454_s1 + $0x1d8] sm:$0xff]  }
  0x10   :  { %971 = vmatpush3.bf16.msra.mxu0 %v1099_v14  ;;  %v1125_v58 = vld [vmem:[%s1454_s1 + $0x188] sm:$0xff]   ;;  %v1129_v62 = vld [vmem:[%s1454_s1 + $0x190] sm:$0xff]   ;;  %v1131_v0 = vld [vmem:[%s1454_s1 + $0x118] sm:$0xff]  }
  0x11   :  { %993 = vmatpush3.bf16.msra.mxu1 %v1100_v15  ;;  %972 = vmatprep.subr.bf16.mxu0 %v1101_v16  ;;  %v205_v49 = vrot.slane %v177_v46, %v1310_v41  ;;  %v208_v52 = vcombine.high %v198_v47, %v198_v47  ;;  %v1134_v1 = vld [vmem:[%s1454_s1 + $0x160] sm:$0xff]   ;;  %v1133_v2 = vld [vmem:[%s1454_s1 + $0x198] sm:$0xff]   ;;  %v1138_v5 = vld [vmem:[%s1454_s1 + $0x168] sm:$0xff]  }
  0x12   :  { %994 = vmatprep.subr.bf16.mxu1 %v1102_v17  ;;  %697 = vmatprep.mubr.bf16.mxu0 %v198_v47  ;;  %v1136_v3 = vld [vmem:[%s1454_s1 + $0x1e0] sm:$0xff]   ;;  %v1140_v7 = vld [vmem:[%s1454_s1 + $0x1e8] sm:$0xff]   ;;  %v1142_v9 = vld [vmem:[%s1454_s1 + $0x170] sm:$0xff]   ;;  %v191_v17 = vrot.slane %v1314_v43, %v1310_v41 }
  0x13   :  { %v209_v55 = vcombine.high %v205_v49, %v205_v49  ;;  %737 = vmatprep.mubr.bf16.mxu1 %v208_v52  ;;  %v1135_v4 = vld [vmem:[%s1454_s1 + $0x120] sm:$0xff]   ;;  %v1139_v8 = vld [vmem:[%s1454_s1 + $0x128] sm:$0xff]   ;;  %v1144_v11 = vld [vmem:[%s1454_s1 + $0x1f0] sm:$0xff]  }
  0x14   :  { %973 = vmatpush3.bf16.msra.mxu0 %v1103_v18  ;;  %v1137_v6 = vld [vmem:[%s1454_s1 + $0x1a0] sm:$0xff]   ;;  %v1141_v10 = vld [vmem:[%s1454_s1 + $0x1a8] sm:$0xff]   ;;  %v1143_v12 = vld [vmem:[%s1454_s1 + $0x130] sm:$0xff]  }
  0x15   :  { %995 = vmatpush3.bf16.msra.mxu1 %v1104_v19  ;;  %974 = vmatprep.subr.bf16.mxu0 %v1105_v20  ;;  %v1146_v13 = vld [vmem:[%s1454_s1 + $0x178] sm:$0xff]   ;;  %v1145_v14 = vld [vmem:[%s1454_s1 + $0x1b0] sm:$0xff]  }
  0x16   :  { %996 = vmatprep.subr.bf16.mxu1 %v1106_v21  ;;  %v1148_v15 = vld [vmem:[%s1454_s1 + $0x1f8] sm:$0xff]  }
  0x17   :  { %v1147_v16 = vld [vmem:[%s1454_s1 + $0x138] sm:$0xff]  }
  0x18   :  { %975 = vmatpush3.bf16.msra.mxu0 %v1107_v22  ;;  %v1149_v18 = vld [vmem:[%s1454_s1 + $0x1b8] sm:$0xff]  }
  0x19   :  { %997 = vmatpush3.bf16.msra.mxu1 %v1108_v23  ;;  %976 = vmatprep.subr.bf16.mxu0 %v1109_v24 }
  0x1a   :  { %998 = vmatprep.subr.bf16.mxu1 %v1110_v25 }
  0x1c   :  { %977 = vmatpush3.bf16.msra.mxu0 %v1111_v26 }
  0x1d   :  { %999 = vmatpush3.bf16.msra.mxu1 %v1112_v27  ;;  %978 = vmatprep.subr.bf16.mxu0 %v1113_v28 }
  0x1e   :  { %1000 = vmatprep.subr.bf16.mxu1 %v1114_v30 }
  0x20   :  { %979 = vmatpush3.bf16.msra.mxu0 %v1115_v31 }
  0x21   :  { %1001 = vmatpush3.bf16.msra.mxu1 %v1116_v32  ;;  %1008 = vmatprep.subr.bf16.mxu0 %v1118_v34 }
  0x22   :  { %1030 = vmatprep.subr.bf16.mxu1 %v1120_v40 }
  0x23   :  { %698 = vmatmul.mubr.bf16.vlgmr.msra.gmra.mrb[0].mxu0 %v184_v45 }
  0x24   :  { %1009 = vmatpush3.bf16.msra.mxu0 %v1119_v48  ;;  %738 = vmatmul.mubr.bf16.vlgmr.msra.gmra.mrb[0].mxu1 %v206_v50 }
  0x25   :  { %1010 = vmatprep.subr.bf16.mxu0 %v1122_v51  ;;  %1031 = vmatpush3.bf16.msra.mxu1 %v1121_v53 }
  0x26   :  { %777 = vmatprep.mubr.bf16.mxu0 %v205_v49  ;;  %1032 = vmatprep.subr.bf16.mxu1 %v1124_v54 }
  0x27   :  { %817 = vmatprep.mubr.bf16.mxu1 %v209_v55 }
  0x28   :  { %1011 = vmatpush3.bf16.msra.mxu0 %v1123_v56 }
  0x29   :  { %1012 = vmatprep.subr.bf16.mxu0 %v1126_v57  ;;  %1033 = vmatpush3.bf16.msra.mxu1 %v1125_v58 }
  0x2a   :  { %1034 = vmatprep.subr.bf16.mxu1 %v1128_v59 }
  0x2c   :  { %1013 = vmatpush3.bf16.msra.mxu0 %v1127_v60 }
  0x2d   :  { %1014 = vmatprep.subr.bf16.mxu0 %v1130_v61  ;;  %1035 = vmatpush3.bf16.msra.mxu1 %v1129_v62 }
  0x2e   :  { %1036 = vmatprep.subr.bf16.mxu1 %v1132_v63 }
  0x30   :  { %1015 = vmatpush3.bf16.msra.mxu0 %v1131_v0 }
  0x31   :  { %1016 = vmatprep.subr.bf16.mxu0 %v1134_v1  ;;  %1037 = vmatpush3.bf16.msra.mxu1 %v1133_v2 }
  0x32   :  { %1038 = vmatprep.subr.bf16.mxu1 %v1136_v3 }
  0x34   :  { %1017 = vmatpush3.bf16.msra.mxu0 %v1135_v4 }
  0x35   :  { %1018 = vmatprep.subr.bf16.mxu0 %v1138_v5  ;;  %1039 = vmatpush3.bf16.msra.mxu1 %v1137_v6 }
  0x36   :  { %1040 = vmatprep.subr.bf16.mxu1 %v1140_v7 }
  0x38   :  { %1019 = vmatpush3.bf16.msra.mxu0 %v1139_v8 }
  0x39   :  { %1020 = vmatprep.subr.bf16.mxu0 %v1142_v9  ;;  %1041 = vmatpush3.bf16.msra.mxu1 %v1141_v10 }
  0x3a   :  { %1042 = vmatprep.subr.bf16.mxu1 %v1144_v11 }
  0x3c   :  { %1021 = vmatpush3.bf16.msra.mxu0 %v1143_v12 }
  0x3d   :  { %1022 = vmatprep.subr.bf16.mxu0 %v1146_v13  ;;  %1043 = vmatpush3.bf16.msra.mxu1 %v1145_v14 }
  0x3e   :  { %7 = vsyncpa [#allocation3], 0  ;;  %1044 = vmatprep.subr.bf16.mxu1 %v1148_v15  ;;  %v1150_v19 = vld [vmem:[%s1454_s1 + $0x200] sm:$0xff]   ;;  %v1187_v20 = vmov 0.0   ;;  %v207_v21 = vcombine.high %v191_v17, %v191_v17  ;;  %v1151_v22 = vld [vmem:[%s1454_s1 + $0x208] sm:$0xff]   ;;  %vm1188_vm0 = vmmov 0  }
  0x3f   :  { %v1152_v23 = vld [vmem:[%s1454_s1 + $0x210] sm:$0xff]   ;;  %v1153_v24 = vld [vmem:[%s1454_s1 + $0x218] sm:$0xff]   ;;  %v1154_v25 = vld [vmem:[%s1454_s1 + $0x220] sm:$0xff]   ;;  %vm875_vm1 = vcmask 8192  }
  0x40   :  { %1023 = vmatpush3.bf16.msra.mxu0 %v1147_v16  ;;  %v1155_v26 = vld [vmem:[%s1454_s1 + $0x228] sm:$0xff]   ;;  %v1156_v27 = vld [vmem:[%s1454_s1 + $0x230] sm:$0xff]   ;;  %v1157_v28 = vld [vmem:[%s1454_s1 + $0x238] sm:$0xff]  }
  0x41   :  { %1061 = vmatprep.subr.bf16.mxu0 %v1187_v20  ;;  %1045 = vmatpush3.bf16.msra.mxu1 %v1149_v18  ;;  %v891_v29 = vld.sshfl [vmem:[%s1453_s0 + $0x8] sm:$0x1 pattern:$0x75316420]  ;;  %s1189_s0 = smov [#allocation2]  }
  0x42   :  { %v223_v30 = vrot.slane %v891_v29, %v1310_v41  ;;  %s883_s1 = sshll.u32 %s1189_s0, 4  ;;  %s884_s1 = int_to_ptr.vmem [resolvable:$true] %s883_s1 }
  0x43   :  { %778 = vmatmul.mubr.bf16.vlgmr.msra.gmra.mrb[4].mxu0 %v191_v17  ;;  %s1162_s17 = scalar_lea.vmem %s884_s1, 16  ;;  %s1166_s18 = scalar_lea.vmem %s884_s1, 32 }
  0x44   :  { %1062 = vmatpush3.bf16.msra.mxu0 %v1150_v19  ;;  %1077 = vmatprep.mubr.msk.bf16.mxu0 %vm1188_vm0, %v1187_v20  ;;  %p1163_p0 = scmp.ne.s32.totalorder %s884_s1, %s1162_s17  ;;  %p1167_p1 = scmp.lt.s32.totalorder %s884_s1, %s884_s1 }
  0x45   :  { %818 = vmatmul.mubr.bf16.vlgmr.msra.gmra.mrb[4].mxu1 %v207_v21  ;;  %1063 = vmatprep.subr.bf16.mxu0 %v1187_v20  ;;  %p1168_p2 = scmp.lt.s32.totalorder %s1166_s18, %s1162_s17 }
  0x47   :  { %p1169_p3 = por %p1168_p2, %p1167_p1 }
  0x48   :  { %1064 = vmatpush3.bf16.msra.mxu0 %v1151_v22 }
  0x49   :  { %1065 = vmatprep.subr.bf16.mxu0 %v1187_v20  ;;  %p1170_p4 = pnand %p1169_p3, %p1163_p0 }
  0x4c   :  { %1066 = vmatpush3.bf16.msra.mxu0 %v1152_v23 }
  0x4d   :  { %1067 = vmatprep.subr.bf16.mxu0 %v1187_v20 }
  0x50   :  { %1068 = vmatpush3.bf16.msra.mxu0 %v1153_v24 }
  0x51   :  { %1069 = vmatprep.subr.bf16.mxu0 %v1187_v20 }
  0x54   :  { %1070 = vmatpush3.bf16.msra.mxu0 %v1154_v25 }
  0x55   :  { %1071 = vmatprep.subr.bf16.mxu0 %v1187_v20 }
  0x58   :  { %1072 = vmatpush3.bf16.msra.mxu0 %v1155_v26 }
  0x59   :  { %1073 = vmatprep.subr.bf16.mxu0 %v1187_v20 }
  0x5c   :  { %1074 = vmatpush3.bf16.msra.mxu0 %v1156_v27 }
  0x5d   :  { %1075 = vmatprep.subr.bf16.mxu0 %v1187_v20 }
  0x60   :  { %1076 = vmatpush3.bf16.msra.mxu0 %v1157_v28 }
  0x63   :  { %1078 = vmatmul.mubr.bf16.vlgmr.msra.gmra.mrb[8].mxu0 %v223_v30 }
  0xf6   :  { %v980_v31 = vpop.f32.mrb[0].mxu0 }
  0xf7   :  { %v981_v32 = vpop.f32.mrb[1].mxu0  ;;  %v1002_v33 = vpop.f32.mrb[0].mxu1 }
  0xf8   :  { %v982_v34 = vadd.f32 %v981_v32, %v980_v31  ;;  %v983_v35 = vpop.f32.mrb[2].mxu0  ;;  %v1003_v36 = vpop.f32.mrb[1].mxu1 }
  0xf9   :  { %v984_v37 = vpop.f32.mrb[3].mxu0  ;;  %v1004_v38 = vadd.f32 %v1003_v36, %v1002_v33  ;;  %v1005_v39 = vpop.f32.mrb[2].mxu1 }
  0xfa   :  { %v1006_v40 = vpop.f32.mrb[3].mxu1 }
  0xfb   :  { %v740_v42 = vadd.f32 %v1004_v38, %v982_v34 }
 0x116   :  { %v1024_v43 = vpop.f32.mrb[4].mxu0 }
 0x117   :  { %v1025_v44 = vpop.f32.mrb[5].mxu0 }
 0x118   :  { %v1026_v45 = vadd.f32 %v1025_v44, %v1024_v43  ;;  %v1027_v46 = vpop.f32.mrb[6].mxu0  ;;  %v1046_v47 = vpop.f32.mrb[4].mxu1 }
 0x119   :  { %v1028_v48 = vpop.f32.mrb[7].mxu0  ;;  %v1047_v41 = vpop.f32.mrb[5].mxu1 }
 0x11a   :  { %v780_v49 = vadd.f32 %v1026_v45, %v740_v42  ;;  %v1048_v50 = vadd.f32 %v1047_v41, %v1046_v47  ;;  %v1049_v51 = vpop.f32.mrb[6].mxu1 }
 0x11b   :  { %v1050_v52 = vpop.f32.mrb[7].mxu1 }
 0x11c   :  { %v820_v53 = vadd.f32 %v1048_v50, %v780_v49 }
 0x136   :  { %v859_v54 = vpop.f32.mrb[8].mxu0 }
 0x137   :  { %v860_v55 = vadd.f32 %v859_v54, %v820_v53  ;;  %v1079_v56 = vpop.f32.mrb[9].mxu0 }
 0x138   :  { %v862_v57 = vpop.f32.mrb[10].mxu0 }
 0x139   :  { %v865_v58 = vand.u32 2147483647, %v860_v55  ;;  %v1080_v59 = vpop.f32.mrb[11].mxu0  ;;  %vm869_vm2 = vcmp.ge.f32.partialorder %v860_v55, 0.0 }
 0x13b   :  { %v866_v60 = vsub.f32 0.0, %v865_v58 }
 0x13d   :  { %v867_v61 = vmul.f32 1.442695, %v866_v60 }
 0x13f   :  { %1158 = vpow2.f32 %v867_v61 }
 0x149   :  { %v1159_v62 = vpop.eup %1158 }
 0x14a   :  { %v870_v63 = vadd.f32 1.0, %v1159_v62 }
 0x14c   :  { %1160 = vrcp.f32 %v870_v63 }
 0x156   :  { %v1161_v0 = vpop.eup %1160 }
 0x157   :  { %v873_v1 = vmul.f32 %v1161_v0, %v1159_v62 }
 0x159   :  { %v874_v2 = vsel %vm869_vm2, %v1161_v0, %v873_v1 }
 0x15a   :  { %876 = vst.msk [vmem:[#allocation2] sm:$0x1] %vm875_vm1, %v874_v2 }
 0x15b   :  { %1173 = shalt.err (!%p1170_p4)
}
 0x15c   :  { %s1174_s21 = scalar_lea.hbm %s1455_s2, 16 }
 0x15d   :  { %p1175_p5 = scmp.ne.s32.totalorder %s1455_s2, %s1174_s21  ;;  %p1178_p6 = scmp.lt.u32.totalorder %s1174_s21, %s1455_s2 }
 0x15f   :  { %p1180_p7 = pnand %p1178_p6, %p1175_p5 }
 0x161   :  { %1183 = shalt.err (!%p1180_p7)
}
 0x162   :  { %886 = dma.vmem_to_hbm [thread:$0]  %s884_s1, 16, %s1455_s2, [#allocation3]  }
 0x163   :  { %1184 = dma.done.wait [#allocation3], 16  }
 0x164   :  { %1185 = vsyncadd [#allocation3], 4294967280 }
 0x165   :  { %890 = vsyncpa [#allocation3], 1 }

</bundles_post_ra>
